<compile_context>
chip_gen: v6e
topology: v6e:2x2x1
jax: 0.10.0
libtpu: 0.0.40
codegen_flags: <defaults>
</compile_context>

<pallas_src>
import functools

import jax
import jax.numpy as jnp
from jax import lax
from jax.experimental import pallas as pl
from jax.experimental.pallas import tpu as pltpu


# ----------------------------- in-kernel math helpers -----------------------------

def _erf_approx(x):
    # Abramowitz & Stegun 7.1.26 (|err| ~ 1.5e-7), exact divide for torch-erf parity.
    a1, a2, a3, a4, a5 = 0.254829592, -0.284496736, 1.421413741, -1.453152027, 1.061405429
    p = 0.3275911
    s = jnp.where(x >= 0.0, 1.0, -1.0)
    ax = jnp.abs(x)
    t = 1.0 / (1.0 + p * ax)
    poly = ((((a5 * t + a4) * t + a3) * t + a2) * t + a1) * t
    return s * (1.0 - poly * jnp.exp(-ax * ax))


def _gelu(v):
    # torch nn.GELU default = exact erf formulation
    return 0.5 * v * (1.0 + _erf_approx(v * 0.7071067811865476))


def _layernorm(v, g, b, eps=1e-5):
    # sum(x) and sum(x*x) computed independently -> the two XLU reductions can overlap.
    mu = jnp.mean(v, axis=-1, keepdims=True)
    ms = jnp.mean(v * v, axis=-1, keepdims=True)
    var = ms - mu * mu
    return (v - mu) * lax.rsqrt(var + eps) * g + b


# ----------------------------------- the kernel ------------------------------------

def mixer_kernel(x_ref, ccw_ref, ccb_ref,
                 ln0g_ref, ln0b_ref,
                 pW0_ref, pc0_ref, pW1_ref, pc1_ref, pW2_ref, pc2_ref, pW3_ref, pc3_ref,
                 ln1g_ref, ln1b_ref,
                 cW0_ref, cb0_ref, cW1_ref, cb1_ref, cW2_ref, cb2_ref, cW3_ref, cb3_ref,
                 clsw_ref, clsb_ref,
                 o_ref):
    """One sample per grid step: channel_change + all mixer blocks + classifier.

    Activation slab x is (P, C): rows = patches, lanes = channels.
    Patch mixing = left-multiplies with transposed fused block-diagonal weights
    (no transposes of the activations); channel mixing = right-multiplies.
    """
    f32 = jnp.float32
    bf16 = jnp.bfloat16
    num_blocks = ln0g_ref.shape[0]
    P = x_ref.shape[0]

    # channel_change: Linear(init_dim -> C) applied to every patch token.
    x = jnp.dot(x_ref[...].astype(bf16), ccw_ref[...],
                preferred_element_type=f32) + ccb_ref[...]

    for blk in range(num_blocks):            # static unroll (num_blocks is small)
        # ---- token (patch) mixing: mix across the P patches per channel ----
        y = _layernorm(x, ln0g_ref[blk], ln0b_ref[blk])
        t = _gelu(jnp.dot(pW0_ref[blk], y.astype(bf16),
                          preferred_element_type=f32) + pc0_ref[blk])
        t = jnp.dot(pW1_ref[blk], t.astype(bf16),
                    preferred_element_type=f32) + pc1_ref[blk]
        t = _gelu(jnp.dot(pW2_ref[blk], t.astype(bf16),
                          preferred_element_type=f32) + pc2_ref[blk])
        x = x + jnp.dot(pW3_ref[blk], t.astype(bf16),
                        preferred_element_type=f32) + pc3_ref[blk]

        # ---- channel mixing: mix across the C channels per patch ----
        y = _layernorm(x, ln1g_ref[blk], ln1b_ref[blk])
        t = _gelu(jnp.dot(y.astype(bf16), cW0_ref[blk],
                          preferred_element_type=f32) + cb0_ref[blk])
        t = jnp.dot(t.astype(bf16), cW1_ref[blk],
                    preferred_element_type=f32) + cb1_ref[blk]
        t = _gelu(jnp.dot(t.astype(bf16), cW2_ref[blk],
                          preferred_element_type=f32) + cb2_ref[blk])
        x = x + jnp.dot(t.astype(bf16), cW3_ref[blk],
                        preferred_element_type=f32) + cb3_ref[blk]

    # ---- fused classifier: logits = bias + sum_p x[p,:] @ W[p]  (lane-dense 128) ----
    logits = clsb_ref[...]
    for p in range(P):
        logits = logits + jnp.dot(x[p:p + 1, :].astype(bf16), clsw_ref[p],
                                  preferred_element_type=f32)
    o_ref[...] = logits.astype(o_ref.dtype)


# --------------------------------- pallas wrapper -----------------------------------

_KP_ORDER = ("cc_w", "cc_b",
             "ln0_g", "ln0_b",
             "p_W0", "p_c0", "p_W1", "p_c1", "p_W2", "p_c2", "p_W3", "p_c3",
             "ln1_g", "ln1_b",
             "c_W0", "c_c0", "c_W1", "c_c1", "c_W2", "c_c2", "c_W3", "c_c3",
             "cls_w", "cls_b")


def _extract_patches(x, patch_size):
    # nn.Unfold(kernel=patch, stride=patch).swapaxes(-1,-2):
    # (bs, c, H, W) -> (bs, P, c*ph*pw), feature order (c, kh, kw), patches row-major.
    bs, c, H, W = x.shape
    ph, pw = patch_size
    d0, d1 = H // ph, W // pw
    return (x.reshape(bs, c, d0, ph, d1, pw)
             .transpose(0, 2, 4, 1, 3, 5)
             .reshape(bs, d0 * d1, c * ph * pw))


def mlp_mixer_forward(x, kparams, *, image_dim, patch_size, num_classes):
    bs, c_img, H, W = x.shape
    # nn.UpsamplingBilinear2d(size=image_dim[-2:]) is the identity at this size.
    assert (H, W) == (image_dim[-2], image_dim[-1])

    patches = _extract_patches(x, patch_size)                 # (bs, P, init_dim)
    _, P, din = patches.shape
    Kp = kparams["cls_b"].shape[-1]

    weight_args = [kparams[k] for k in _KP_ORDER]
    in_specs = [pl.BlockSpec((None, P, din), lambda i: (i, 0, 0))]
    # constant index_map -> weights DMA'd once, VMEM-resident across parallel steps
    in_specs += [pl.BlockSpec(a.shape, lambda i, _n=a.ndim: (0,) * _n)
                 for a in weight_args]

    out = pl.pallas_call(
        mixer_kernel,
        out_shape=jax.ShapeDtypeStruct((bs, 1, Kp), jnp.float32),
        grid=(bs,),                                          # >=2 parallel steps (v7x)
        in_specs=in_specs,
        out_specs=pl.BlockSpec((None, 1, Kp), lambda i: (i, 0, 0)),
        compiler_params=pltpu.CompilerParams(
            dimension_semantics=("parallel",),
            vmem_limit_bytes=32 * 1024 * 1024),
    )(patches, *weight_args)
    return out.reshape(bs, Kp)[:, :num_classes]


# ------------------------------- parameter construction -----------------------------

def _perm_matrix(b):
    # flat (p*b + q) -> (q*b + p); symmetric & involutive.
    d = b * b
    i = jnp.arange(d)
    pi = (i % b) * b + (i // b)
    return jnp.zeros((d, d), jnp.float32).at[i, pi].set(1.0)


def _block_diag(w):
    # w: (nblk, m, n) per-block weights -> (nblk*m, nblk*n) block-diagonal matrix
    nblk, m, n = w.shape
    eye = jnp.eye(nblk, dtype=w.dtype)
    return (eye[:, None, :, None] * w[:, :, None, :]).reshape(nblk * m, nblk * n)


def _fuse_facto(facto, b):
    """Fuse a BlockMLP_MixerBlock (2 facto nets) into 4 dense matmuls (right-mult form),
    folding the inter-/post-facto (p,q)<->(q,p) permutations into W2/W3/c3."""
    (W0, B0, W1, B1), (V0, D0, V1, D1) = facto
    pm = _perm_matrix(b)
    return (_block_diag(W0),         B0.reshape(1, -1),
            _block_diag(W1),         B1.reshape(1, -1),
            pm @ _block_diag(V0),    D0.reshape(1, -1),
            _block_diag(V1) @ pm,    D1.reshape(1, -1) @ pm)


def init_mlp_mixer_raw(key, image_dim, patch_size, hidden_expansion, num_blocks,
                       num_classes, mlp_expansion):
    """Raw (unfused) parameters mirroring the torch module's init."""
    c_img, H, W = image_dim
    ph, pw = patch_size
    d0, d1 = H // ph, W // pw
    assert d0 * ph == H and d1 * pw == W
    init_dim = ph * pw * c_img
    C = int(init_dim * hidden_expansion)
    P = d0 * d1
    bp, bc = int(round(P ** 0.5)), int(round(C ** 0.5))
    assert bp * bp == P and bc * bc == C, "mixing dims must be perfect squares"

    keys = jax.random.split(key, num_blocks + 2)
    s = 1.0 / (init_dim ** 0.5)          # nn.Linear default init
    k0, k1 = jax.random.split(keys[0])
    raw = {"cc_w": jax.random.uniform(k0, (init_dim, C), jnp.float32, -s, s),
           "cc_b": jax.random.uniform(k1, (C,), jnp.float32, -s, s),
           "blocks": []}

    def facto_params(k, b, e):
        kk = jax.random.split(k, 4)
        eb = e * b
        nets = []
        for fi in range(2):
            W0 = jax.random.normal(kk[2 * fi], (b, b, eb), jnp.float32)      # randn
            B0 = jnp.zeros((b, 1, eb), jnp.float32)                          # zero bias
            W1 = jax.random.normal(kk[2 * fi + 1], (b, eb, b), jnp.float32)
            B1 = jnp.zeros((b, 1, b), jnp.float32)
            nets.append((W0, B0, W1, B1))
        return nets

    for i in range(num_blocks):
        kp_, kc_ = jax.random.split(keys[1 + i])
        raw["blocks"].append({
            "ln0_g": jnp.ones((C,), jnp.float32), "ln0_b": jnp.zeros((C,), jnp.float32),
            "patch": facto_params(kp_, bp, mlp_expansion),
            "ln1_g": jnp.ones((C,), jnp.float32), "ln1_b": jnp.zeros((C,), jnp.float32),
            "chan": facto_params(kc_, bc, mlp_expansion),
        })

    s = 1.0 / ((P * C) ** 0.5)
    kw, kb = jax.random.split(keys[-1])
    raw["cls_w"] = jax.random.uniform(kw, (P * C, num_classes), jnp.float32, -s, s)
    raw["cls_b"] = jax.random.uniform(kb, (num_classes,), jnp.float32, -s, s)
    dims = dict(P=P, C=C, bp=bp, bc=bc, init_dim=init_dim)
    return raw, dims


def prepare_kernel_params(raw, dims, num_classes):
    """Fused / transposed / bf16-cast / padded parameters for the Pallas kernel."""
    P, C, bp, bc = dims["P"], dims["C"], dims["bp"], dims["bc"]
    bf16, f32 = jnp.bfloat16, jnp.float32
    kp = {"cc_w": raw["cc_w"].astype(bf16),
          "cc_b": raw["cc_b"].reshape(1, C).astype(f32)}

    ln = {k: [] for k in ("ln0_g", "ln0_b", "ln1_g", "ln1_b")}
    pw = [[] for _ in range(4)]
    pc = [[] for _ in range(4)]
    cw = [[] for _ in range(4)]
    cb = [[] for _ in range(4)]
    for blk in raw["blocks"]:
        for k in ln:
            ln[k].append(blk[k].reshape(1, C))
        fp = _fuse_facto(blk["patch"], bp)
        fc = _fuse_facto(blk["chan"], bc)
        for j in range(4):
            pw[j].append(fp[2 * j].T)          # left-mult form: transposed weights
            pc[j].append(fp[2 * j + 1].T)      # column biases (H, 1)
            cw[j].append(fc[2 * j])            # right-mult form
            cb[j].append(fc[2 * j + 1])        # row biases (1, H)
    for k in ln:
        kp[k] = jnp.stack(ln[k]).astype(f32)
    for j in range(4):
        kp[f"p_W{j}"] = jnp.stack(pw[j]).astype(bf16)
        kp[f"p_c{j}"] = jnp.stack(pc[j]).astype(f32)
        kp[f"c_W{j}"] = jnp.stack(cw[j]).astype(bf16)
        kp[f"c_c{j}"] = jnp.stack(cb[j]).astype(f32)

    # classifier padded to a lane-dense 128-wide output; reshaped (P, C, Kp) so the
    # kernel can accumulate per-patch (1,C)@(C,Kp) matmuls.
    Kp = max(128, ((num_classes + 127) // 128) * 128)
    clsw = jnp.zeros((P * C, Kp), f32).at[:, :num_classes].set(raw["cls_w"])
    kp["cls_w"] = clsw.reshape(P, C, Kp).astype(bf16)
    kp["cls_b"] = jnp.zeros((1, Kp), f32).at[:, :num_classes].set(raw["cls_b"])
    return kp


# ------------------------- pure-JAX reference (unfused torch ops) --------------------

def ref_forward(x, raw, *, image_dim, patch_size, dims):
    bs = x.shape[0]
    P, C, bp, bc = dims["P"], dims["C"], dims["bp"], dims["bc"]
    bf16, f32 = jnp.bfloat16, jnp.float32
    assert (x.shape[2], x.shape[3]) == (image_dim[-2], image_dim[-1])

    patches = _extract_patches(x, patch_size)
    din = patches.shape[-1]
    h = (jnp.dot(patches.reshape(bs * P, din).astype(bf16), raw["cc_w"].astype(bf16),
                 preferred_element_type=f32) + raw["cc_b"]).reshape(bs, P, C)

    def ln(v, g, b, eps=1e-5):
        mu = jnp.mean(v, axis=-1, keepdims=True)
        var = jnp.mean(jnp.square(v - mu), axis=-1, keepdims=True)
        return (v - mu) / jnp.sqrt(var + eps) * g + b

    def block_mlp(y, W0, B0, W1, B1, bd):
        rows, d = y.shape
        t = jnp.swapaxes(y.reshape(rows, d // bd, bd), 0, 1)          # (nblk, rows, bd)
        t = jnp.einsum("nrb,nbh->nrh", t.astype(bf16), W0.astype(bf16),
                       preferred_element_type=f32) + B0
        t = jax.nn.gelu(t, approximate=False)
        t = jnp.einsum("nrh,nhb->nrb", t.astype(bf16), W1.astype(bf16),
                       preferred_element_type=f32) + B1
        return jnp.swapaxes(t, 0, 1).reshape(rows, d)

    def block_mixer(y, facto, bd):
        rows, d = y.shape
        out = y
        for i, (W0, B0, W1, B1) in enumerate(facto):
            out = jnp.swapaxes(out.reshape(-1, bd, bd ** i), 1, 2).reshape(rows, d)
            out = block_mlp(out, W0, B0, W1, B1, bd)
            out = jnp.swapaxes(out.reshape(-1, bd ** i, bd), 1, 2).reshape(rows, d)
        return out

    for blk in raw["blocks"]:
        y = ln(h, blk["ln0_g"], blk["ln0_b"])
        y = jnp.swapaxes(y, 1, 2).reshape(bs * C, P)
        y = block_mixer(y, blk["patch"], bp)
        h = h + jnp.swapaxes(y.reshape(bs, C, P), 1, 2)
        y = ln(h, blk["ln1_g"], blk["ln1_b"]).reshape(bs * P, C)
        y = block_mixer(y, blk["chan"], bc)
        h = h + y.reshape(bs, P, C)

    flat = h.reshape(bs, P * C)
    return (jnp.dot(flat.astype(bf16), raw["cls_w"].astype(bf16),
                    preferred_element_type=f32) + raw["cls_b"])


# --------------------------------------- main ----------------------------------------

if __name__ == "__main__":
    image_dim = (4, 16, 16)      # (C_img, H, W)
    patch_size = (4, 4)          # -> patch_dim P = 16 (bp = 4)
    hidden_expansion = 1.0       # channel_dim C = 4*4*4 * 1.0 = 64 (bc = 8)
    num_blocks = 2
    num_classes = 10
    mlp_expansion = 2
    bs = 2

    key = jax.random.PRNGKey(0)
    kx, kparam = jax.random.split(key)
    x = jax.random.normal(kx, (bs,) + image_dim, jnp.float32)

    raw, dims = init_mlp_mixer_raw(kparam, image_dim, patch_size, hidden_expansion,
                                   num_blocks, num_classes, mlp_expansion)
    kparams = prepare_kernel_params(raw, dims, num_classes)

    fwd = jax.jit(functools.partial(mlp_mixer_forward, image_dim=image_dim,
                                    patch_size=patch_size, num_classes=num_classes))
    out = jax.block_until_ready(fwd(x, kparams))
    assert out.shape == (bs, num_classes)
    assert bool(jnp.all(jnp.isfinite(out)))

    # correctness gate: unfused pure-JAX reference (explicit BlockLinear bmm + permutes)
    ref_fn = jax.jit(functools.partial(ref_forward, image_dim=image_dim,
                                       patch_size=patch_size, dims=dims))
    ref = jax.block_until_ready(ref_fn(x, raw))
    err = float(jnp.max(jnp.abs(out - ref)))
    scale = float(jnp.max(jnp.abs(ref)))
    assert err <= 2e-2 * max(scale, 1.0), f"kernel vs reference mismatch: {err} (scale {scale})"

    print("KERNEL_OK")
</pallas_src>

<mosaic_0001>
module attributes {stable_mosaic.version = 11 : i64} {
  func.func @mixer_kernel(%arg0: i32, %arg1: memref<1x16x64xf32, #tpu.memory_space<vmem>>, %arg2: memref<64x64xbf16, #tpu.memory_space<vmem>>, %arg3: memref<1x64xf32, #tpu.memory_space<vmem>>, %arg4: memref<2x1x64xf32, #tpu.memory_space<vmem>>, %arg5: memref<2x1x64xf32, #tpu.memory_space<vmem>>, %arg6: memref<2x32x16xbf16, #tpu.memory_space<vmem>>, %arg7: memref<2x32x1xf32, #tpu.memory_space<vmem>>, %arg8: memref<2x16x32xbf16, #tpu.memory_space<vmem>>, %arg9: memref<2x16x1xf32, #tpu.memory_space<vmem>>, %arg10: memref<2x32x16xbf16, #tpu.memory_space<vmem>>, %arg11: memref<2x32x1xf32, #tpu.memory_space<vmem>>, %arg12: memref<2x16x32xbf16, #tpu.memory_space<vmem>>, %arg13: memref<2x16x1xf32, #tpu.memory_space<vmem>>, %arg14: memref<2x1x64xf32, #tpu.memory_space<vmem>>, %arg15: memref<2x1x64xf32, #tpu.memory_space<vmem>>, %arg16: memref<2x64x128xbf16, #tpu.memory_space<vmem>>, %arg17: memref<2x1x128xf32, #tpu.memory_space<vmem>>, %arg18: memref<2x128x64xbf16, #tpu.memory_space<vmem>>, %arg19: memref<2x1x64xf32, #tpu.memory_space<vmem>>, %arg20: memref<2x64x128xbf16, #tpu.memory_space<vmem>>, %arg21: memref<2x1x128xf32, #tpu.memory_space<vmem>>, %arg22: memref<2x128x64xbf16, #tpu.memory_space<vmem>>, %arg23: memref<2x1x64xf32, #tpu.memory_space<vmem>>, %arg24: memref<16x64x128xbf16, #tpu.memory_space<vmem>>, %arg25: memref<1x128xf32, #tpu.memory_space<vmem>>, %arg26: memref<1x1x128xf32, #tpu.memory_space<vmem>>) attributes {dimension_semantics = [#tpu.dimension_semantics<parallel>], iteration_bounds = array<i64: 2>, scalar_prefetch = 0 : i64, scratch_operands = 0 : i64, tpu.core_type = #tpu.core_type<tc>, window_params = [{transform_indices = @transform_0, window_bounds = array<i64: 1, 16, 64>}, {pipeline_mode = #tpu.pipeline_mode<synchronous>, transform_indices = @transform_1, window_bounds = array<i64: 64, 64>}, {pipeline_mode = #tpu.pipeline_mode<synchronous>, transform_indices = @transform_2, window_bounds = array<i64: 1, 64>}, {pipeline_mode = #tpu.pipeline_mode<synchronous>, transform_indices = @transform_3, window_bounds = array<i64: 2, 1, 64>}, {pipeline_mode = #tpu.pipeline_mode<synchronous>, transform_indices = @transform_4, window_bounds = array<i64: 2, 1, 64>}, {pipeline_mode = #tpu.pipeline_mode<synchronous>, transform_indices = @transform_5, window_bounds = array<i64: 2, 32, 16>}, {pipeline_mode = #tpu.pipeline_mode<synchronous>, transform_indices = @transform_6, window_bounds = array<i64: 2, 32, 1>}, {pipeline_mode = #tpu.pipeline_mode<synchronous>, transform_indices = @transform_7, window_bounds = array<i64: 2, 16, 32>}, {pipeline_mode = #tpu.pipeline_mode<synchronous>, transform_indices = @transform_8, window_bounds = array<i64: 2, 16, 1>}, {pipeline_mode = #tpu.pipeline_mode<synchronous>, transform_indices = @transform_9, window_bounds = array<i64: 2, 32, 16>}, {pipeline_mode = #tpu.pipeline_mode<synchronous>, transform_indices = @transform_10, window_bounds = array<i64: 2, 32, 1>}, {pipeline_mode = #tpu.pipeline_mode<synchronous>, transform_indices = @transform_11, window_bounds = array<i64: 2, 16, 32>}, {pipeline_mode = #tpu.pipeline_mode<synchronous>, transform_indices = @transform_12, window_bounds = array<i64: 2, 16, 1>}, {pipeline_mode = #tpu.pipeline_mode<synchronous>, transform_indices = @transform_13, window_bounds = array<i64: 2, 1, 64>}, {pipeline_mode = #tpu.pipeline_mode<synchronous>, transform_indices = @transform_14, window_bounds = array<i64: 2, 1, 64>}, {pipeline_mode = #tpu.pipeline_mode<synchronous>, transform_indices = @transform_15, window_bounds = array<i64: 2, 64, 128>}, {pipeline_mode = #tpu.pipeline_mode<synchronous>, transform_indices = @transform_16, window_bounds = array<i64: 2, 1, 128>}, {pipeline_mode = #tpu.pipeline_mode<synchronous>, transform_indices = @transform_17, window_bounds = array<i64: 2, 128, 64>}, {pipeline_mode = #tpu.pipeline_mode<synchronous>, transform_indices = @transform_18, window_bounds = array<i64: 2, 1, 64>}, {pipeline_mode = #tpu.pipeline_mode<synchronous>, transform_indices = @transform_19, window_bounds = array<i64: 2, 64, 128>}, {pipeline_mode = #tpu.pipeline_mode<synchronous>, transform_indices = @transform_20, window_bounds = array<i64: 2, 1, 128>}, {pipeline_mode = #tpu.pipeline_mode<synchronous>, transform_indices = @transform_21, window_bounds = array<i64: 2, 128, 64>}, {pipeline_mode = #tpu.pipeline_mode<synchronous>, transform_indices = @transform_22, window_bounds = array<i64: 2, 1, 64>}, {pipeline_mode = #tpu.pipeline_mode<synchronous>, transform_indices = @transform_23, window_bounds = array<i64: 16, 64, 128>}, {pipeline_mode = #tpu.pipeline_mode<synchronous>, transform_indices = @transform_24, window_bounds = array<i64: 1, 128>}, {transform_indices = @transform_25, window_bounds = array<i64: 1, 1, 128>}]} {
    %c0 = arith.constant 0 : index
    %c0_0 = arith.constant 0 : index
    %c0_1 = arith.constant 0 : index
    %0 = vector.load %arg1[%c0, %c0_0, %c0_1] : memref<1x16x64xf32, #tpu.memory_space<vmem>>, vector<1x16x64xf32>
    %1 = vector.shape_cast %0 : vector<1x16x64xf32> to vector<16x64xf32>
    %2 = arith.truncf %1 : vector<16x64xf32> to vector<16x64xbf16>
    %c0_2 = arith.constant 0 : index
    %c0_3 = arith.constant 0 : index
    %3 = vector.load %arg2[%c0_2, %c0_3] : memref<64x64xbf16, #tpu.memory_space<vmem>>, vector<64x64xbf16>
    %cst = arith.constant dense<0.000000e+00> : vector<16x64xf32>
    %4 = tpu.matmul %2, %3, %cst {dimension_numbers = #tpu.dot_dimension_numbers<[1], [0], [0], [1], [0, 0, 1, 1], [], []>} : vector<16x64xbf16>, vector<64x64xbf16>, vector<16x64xf32> -> vector<16x64xf32>
    %c0_4 = arith.constant 0 : index
    %c0_5 = arith.constant 0 : index
    %5 = vector.load %arg3[%c0_4, %c0_5] : memref<1x64xf32, #tpu.memory_space<vmem>>, vector<1x64xf32>
    %6 = vector.broadcast %5 : vector<1x64xf32> to vector<16x64xf32>
    %7 = arith.addf %4, %6 : vector<16x64xf32>
    %c0_6 = arith.constant 0 : index
    %c0_7 = arith.constant 0 : index
    %c0_8 = arith.constant 0 : index
    %8 = vector.load %arg4[%c0_6, %c0_7, %c0_8] : memref<2x1x64xf32, #tpu.memory_space<vmem>>, vector<1x1x64xf32>
    %9 = vector.shape_cast %8 : vector<1x1x64xf32> to vector<1x64xf32>
    %c0_9 = arith.constant 0 : index
    %c0_10 = arith.constant 0 : index
    %c0_11 = arith.constant 0 : index
    %10 = vector.load %arg5[%c0_9, %c0_10, %c0_11] : memref<2x1x64xf32, #tpu.memory_space<vmem>>, vector<1x1x64xf32>
    %11 = vector.shape_cast %10 : vector<1x1x64xf32> to vector<1x64xf32>
    %cst_12 = arith.constant dense<0.000000e+00> : vector<16xf32>
    %12 = vector.multi_reduction <add>, %7, %cst_12 [1] : vector<16x64xf32> to vector<16xf32>
    %13 = vector.shape_cast %12 : vector<16xf32> to vector<16x1xf32>
    %cst_13 = arith.constant 6.400000e+01 : f32
    %14 = vector.broadcast %cst_13 : f32 to vector<16x1xf32>
    %15 = arith.divf %13, %14 : vector<16x1xf32>
    %16 = arith.mulf %7, %7 : vector<16x64xf32>
    %cst_14 = arith.constant dense<0.000000e+00> : vector<16xf32>
    %17 = vector.multi_reduction <add>, %16, %cst_14 [1] : vector<16x64xf32> to vector<16xf32>
    %18 = vector.shape_cast %17 : vector<16xf32> to vector<16x1xf32>
    %cst_15 = arith.constant 6.400000e+01 : f32
    %19 = vector.broadcast %cst_15 : f32 to vector<16x1xf32>
    %20 = arith.divf %18, %19 : vector<16x1xf32>
    %21 = arith.mulf %15, %15 : vector<16x1xf32>
    %22 = arith.subf %20, %21 : vector<16x1xf32>
    %23 = vector.broadcast %15 : vector<16x1xf32> to vector<16x64xf32>
    %24 = arith.subf %7, %23 : vector<16x64xf32>
    %cst_16 = arith.constant 9.99999974E-6 : f32
    %25 = vector.broadcast %cst_16 : f32 to vector<16x1xf32>
    %26 = arith.addf %22, %25 : vector<16x1xf32>
    %27 = math.rsqrt %26 : vector<16x1xf32>
    %28 = vector.broadcast %27 : vector<16x1xf32> to vector<16x64xf32>
    %29 = arith.mulf %24, %28 : vector<16x64xf32>
    %30 = vector.broadcast %9 : vector<1x64xf32> to vector<16x64xf32>
    %31 = arith.mulf %29, %30 : vector<16x64xf32>
    %32 = vector.broadcast %11 : vector<1x64xf32> to vector<16x64xf32>
    %33 = arith.addf %31, %32 : vector<16x64xf32>
    %c0_17 = arith.constant 0 : index
    %c0_18 = arith.constant 0 : index
    %c0_19 = arith.constant 0 : index
    %34 = vector.load %arg6[%c0_17, %c0_18, %c0_19] : memref<2x32x16xbf16, #tpu.memory_space<vmem>>, vector<1x32x16xbf16>
    %35 = vector.shape_cast %34 : vector<1x32x16xbf16> to vector<32x16xbf16>
    %36 = arith.truncf %33 : vector<16x64xf32> to vector<16x64xbf16>
    %cst_20 = arith.constant dense<0.000000e+00> : vector<32x64xf32>
    %37 = tpu.matmul %35, %36, %cst_20 {dimension_numbers = #tpu.dot_dimension_numbers<[1], [0], [0], [1], [0, 0, 1, 1], [], []>} : vector<32x16xbf16>, vector<16x64xbf16>, vector<32x64xf32> -> vector<32x64xf32>
    %c0_21 = arith.constant 0 : index
    %c0_22 = arith.constant 0 : index
    %c0_23 = arith.constant 0 : index
    %38 = vector.load %arg7[%c0_21, %c0_22, %c0_23] : memref<2x32x1xf32, #tpu.memory_space<vmem>>, vector<1x32x1xf32>
    %39 = vector.shape_cast %38 : vector<1x32x1xf32> to vector<32x1xf32>
    %40 = vector.broadcast %39 : vector<32x1xf32> to vector<32x64xf32>
    %41 = arith.addf %37, %40 : vector<32x64xf32>
    %cst_24 = arith.constant 5.000000e-01 : f32
    %42 = vector.broadcast %cst_24 : f32 to vector<32x64xf32>
    %43 = arith.mulf %42, %41 : vector<32x64xf32>
    %cst_25 = arith.constant 0.707106769 : f32
    %44 = vector.broadcast %cst_25 : f32 to vector<32x64xf32>
    %45 = arith.mulf %41, %44 : vector<32x64xf32>
    %cst_26 = arith.constant 0.000000e+00 : f32
    %46 = vector.broadcast %cst_26 : f32 to vector<32x64xf32>
    %47 = arith.cmpf oge, %45, %46 : vector<32x64xf32>
    %cst_27 = arith.constant 1.000000e+00 : f32
    %cst_28 = arith.constant -1.000000e+00 : f32
    %48 = vector.broadcast %cst_27 : f32 to vector<32x64xf32>
    %49 = vector.broadcast %cst_28 : f32 to vector<32x64xf32>
    %50 = arith.select %47, %48, %49 : vector<32x64xi1>, vector<32x64xf32>
    %51 = math.absf %45 : vector<32x64xf32>
    %cst_29 = arith.constant 0.327591091 : f32
    %52 = vector.broadcast %cst_29 : f32 to vector<32x64xf32>
    %53 = arith.mulf %52, %51 : vector<32x64xf32>
    %cst_30 = arith.constant 1.000000e+00 : f32
    %54 = vector.broadcast %cst_30 : f32 to vector<32x64xf32>
    %55 = arith.addf %54, %53 : vector<32x64xf32>
    %cst_31 = arith.constant 1.000000e+00 : f32
    %56 = vector.broadcast %cst_31 : f32 to vector<32x64xf32>
    %57 = arith.divf %56, %55 : vector<32x64xf32>
    %cst_32 = arith.constant 1.06140542 : f32
    %58 = vector.broadcast %cst_32 : f32 to vector<32x64xf32>
    %59 = arith.mulf %58, %57 : vector<32x64xf32>
    %cst_33 = arith.constant -1.45315206 : f32
    %60 = vector.broadcast %cst_33 : f32 to vector<32x64xf32>
    %61 = arith.addf %59, %60 : vector<32x64xf32>
    %62 = arith.mulf %61, %57 : vector<32x64xf32>
    %cst_34 = arith.constant 1.42141378 : f32
    %63 = vector.broadcast %cst_34 : f32 to vector<32x64xf32>
    %64 = arith.addf %62, %63 : vector<32x64xf32>
    %65 = arith.mulf %64, %57 : vector<32x64xf32>
    %cst_35 = arith.constant -0.284496725 : f32
    %66 = vector.broadcast %cst_35 : f32 to vector<32x64xf32>
    %67 = arith.addf %65, %66 : vector<32x64xf32>
    %68 = arith.mulf %67, %57 : vector<32x64xf32>
    %cst_36 = arith.constant 0.254829586 : f32
    %69 = vector.broadcast %cst_36 : f32 to vector<32x64xf32>
    %70 = arith.addf %68, %69 : vector<32x64xf32>
    %71 = arith.mulf %70, %57 : vector<32x64xf32>
    %cst_37 = arith.constant 0.000000e+00 : f32
    %72 = vector.broadcast %cst_37 : f32 to vector<32x64xf32>
    %73 = arith.subf %72, %51 : vector<32x64xf32>
    %74 = arith.mulf %73, %51 : vector<32x64xf32>
    %75 = math.exp %74 : vector<32x64xf32>
    %76 = arith.mulf %71, %75 : vector<32x64xf32>
    %cst_38 = arith.constant 1.000000e+00 : f32
    %77 = vector.broadcast %cst_38 : f32 to vector<32x64xf32>
    %78 = arith.subf %77, %76 : vector<32x64xf32>
    %79 = arith.mulf %50, %78 : vector<32x64xf32>
    %cst_39 = arith.constant 1.000000e+00 : f32
    %80 = vector.broadcast %cst_39 : f32 to vector<32x64xf32>
    %81 = arith.addf %80, %79 : vector<32x64xf32>
    %82 = arith.mulf %43, %81 : vector<32x64xf32>
    %c0_40 = arith.constant 0 : index
    %c0_41 = arith.constant 0 : index
    %c0_42 = arith.constant 0 : index
    %83 = vector.load %arg8[%c0_40, %c0_41, %c0_42] : memref<2x16x32xbf16, #tpu.memory_space<vmem>>, vector<1x16x32xbf16>
    %84 = vector.shape_cast %83 : vector<1x16x32xbf16> to vector<16x32xbf16>
    %85 = arith.truncf %82 : vector<32x64xf32> to vector<32x64xbf16>
    %cst_43 = arith.constant dense<0.000000e+00> : vector<16x64xf32>
    %86 = tpu.matmul %84, %85, %cst_43 {dimension_numbers = #tpu.dot_dimension_numbers<[1], [0], [0], [1], [0, 0, 1, 1], [], []>} : vector<16x32xbf16>, vector<32x64xbf16>, vector<16x64xf32> -> vector<16x64xf32>
    %c0_44 = arith.constant 0 : index
    %c0_45 = arith.constant 0 : index
    %c0_46 = arith.constant 0 : index
    %87 = vector.load %arg9[%c0_44, %c0_45, %c0_46] : memref<2x16x1xf32, #tpu.memory_space<vmem>>, vector<1x16x1xf32>
    %88 = vector.shape_cast %87 : vector<1x16x1xf32> to vector<16x1xf32>
    %89 = vector.broadcast %88 : vector<16x1xf32> to vector<16x64xf32>
    %90 = arith.addf %86, %89 : vector<16x64xf32>
    %c0_47 = arith.constant 0 : index
    %c0_48 = arith.constant 0 : index
    %c0_49 = arith.constant 0 : index
    %91 = vector.load %arg10[%c0_47, %c0_48, %c0_49] : memref<2x32x16xbf16, #tpu.memory_space<vmem>>, vector<1x32x16xbf16>
    %92 = vector.shape_cast %91 : vector<1x32x16xbf16> to vector<32x16xbf16>
    %93 = arith.truncf %90 : vector<16x64xf32> to vector<16x64xbf16>
    %cst_50 = arith.constant dense<0.000000e+00> : vector<32x64xf32>
    %94 = tpu.matmul %92, %93, %cst_50 {dimension_numbers = #tpu.dot_dimension_numbers<[1], [0], [0], [1], [0, 0, 1, 1], [], []>} : vector<32x16xbf16>, vector<16x64xbf16>, vector<32x64xf32> -> vector<32x64xf32>
    %c0_51 = arith.constant 0 : index
    %c0_52 = arith.constant 0 : index
    %c0_53 = arith.constant 0 : index
    %95 = vector.load %arg11[%c0_51, %c0_52, %c0_53] : memref<2x32x1xf32, #tpu.memory_space<vmem>>, vector<1x32x1xf32>
    %96 = vector.shape_cast %95 : vector<1x32x1xf32> to vector<32x1xf32>
    %97 = vector.broadcast %96 : vector<32x1xf32> to vector<32x64xf32>
    %98 = arith.addf %94, %97 : vector<32x64xf32>
    %cst_54 = arith.constant 5.000000e-01 : f32
    %99 = vector.broadcast %cst_54 : f32 to vector<32x64xf32>
    %100 = arith.mulf %99, %98 : vector<32x64xf32>
    %cst_55 = arith.constant 0.707106769 : f32
    %101 = vector.broadcast %cst_55 : f32 to vector<32x64xf32>
    %102 = arith.mulf %98, %101 : vector<32x64xf32>
    %cst_56 = arith.constant 0.000000e+00 : f32
    %103 = vector.broadcast %cst_56 : f32 to vector<32x64xf32>
    %104 = arith.cmpf oge, %102, %103 : vector<32x64xf32>
    %cst_57 = arith.constant 1.000000e+00 : f32
    %cst_58 = arith.constant -1.000000e+00 : f32
    %105 = vector.broadcast %cst_57 : f32 to vector<32x64xf32>
    %106 = vector.broadcast %cst_58 : f32 to vector<32x64xf32>
    %107 = arith.select %104, %105, %106 : vector<32x64xi1>, vector<32x64xf32>
    %108 = math.absf %102 : vector<32x64xf32>
    %cst_59 = arith.constant 0.327591091 : f32
    %109 = vector.broadcast %cst_59 : f32 to vector<32x64xf32>
    %110 = arith.mulf %109, %108 : vector<32x64xf32>
    %cst_60 = arith.constant 1.000000e+00 : f32
    %111 = vector.broadcast %cst_60 : f32 to vector<32x64xf32>
    %112 = arith.addf %111, %110 : vector<32x64xf32>
    %cst_61 = arith.constant 1.000000e+00 : f32
    %113 = vector.broadcast %cst_61 : f32 to vector<32x64xf32>
    %114 = arith.divf %113, %112 : vector<32x64xf32>
    %cst_62 = arith.constant 1.06140542 : f32
    %115 = vector.broadcast %cst_62 : f32 to vector<32x64xf32>
    %116 = arith.mulf %115, %114 : vector<32x64xf32>
    %cst_63 = arith.constant -1.45315206 : f32
    %117 = vector.broadcast %cst_63 : f32 to vector<32x64xf32>
    %118 = arith.addf %116, %117 : vector<32x64xf32>
    %119 = arith.mulf %118, %114 : vector<32x64xf32>
    %cst_64 = arith.constant 1.42141378 : f32
    %120 = vector.broadcast %cst_64 : f32 to vector<32x64xf32>
    %121 = arith.addf %119, %120 : vector<32x64xf32>
    %122 = arith.mulf %121, %114 : vector<32x64xf32>
    %cst_65 = arith.constant -0.284496725 : f32
    %123 = vector.broadcast %cst_65 : f32 to vector<32x64xf32>
    %124 = arith.addf %122, %123 : vector<32x64xf32>
    %125 = arith.mulf %124, %114 : vector<32x64xf32>
    %cst_66 = arith.constant 0.254829586 : f32
    %126 = vector.broadcast %cst_66 : f32 to vector<32x64xf32>
    %127 = arith.addf %125, %126 : vector<32x64xf32>
    %128 = arith.mulf %127, %114 : vector<32x64xf32>
    %cst_67 = arith.constant 0.000000e+00 : f32
    %129 = vector.broadcast %cst_67 : f32 to vector<32x64xf32>
    %130 = arith.subf %129, %108 : vector<32x64xf32>
    %131 = arith.mulf %130, %108 : vector<32x64xf32>
    %132 = math.exp %131 : vector<32x64xf32>
    %133 = arith.mulf %128, %132 : vector<32x64xf32>
    %cst_68 = arith.constant 1.000000e+00 : f32
    %134 = vector.broadcast %cst_68 : f32 to vector<32x64xf32>
    %135 = arith.subf %134, %133 : vector<32x64xf32>
    %136 = arith.mulf %107, %135 : vector<32x64xf32>
    %cst_69 = arith.constant 1.000000e+00 : f32
    %137 = vector.broadcast %cst_69 : f32 to vector<32x64xf32>
    %138 = arith.addf %137, %136 : vector<32x64xf32>
    %139 = arith.mulf %100, %138 : vector<32x64xf32>
    %c0_70 = arith.constant 0 : index
    %c0_71 = arith.constant 0 : index
    %c0_72 = arith.constant 0 : index
    %140 = vector.load %arg12[%c0_70, %c0_71, %c0_72] : memref<2x16x32xbf16, #tpu.memory_space<vmem>>, vector<1x16x32xbf16>
    %141 = vector.shape_cast %140 : vector<1x16x32xbf16> to vector<16x32xbf16>
    %142 = arith.truncf %139 : vector<32x64xf32> to vector<32x64xbf16>
    %cst_73 = arith.constant dense<0.000000e+00> : vector<16x64xf32>
    %143 = tpu.matmul %141, %142, %cst_73 {dimension_numbers = #tpu.dot_dimension_numbers<[1], [0], [0], [1], [0, 0, 1, 1], [], []>} : vector<16x32xbf16>, vector<32x64xbf16>, vector<16x64xf32> -> vector<16x64xf32>
    %144 = arith.addf %7, %143 : vector<16x64xf32>
    %c0_74 = arith.constant 0 : index
    %c0_75 = arith.constant 0 : index
    %c0_76 = arith.constant 0 : index
    %145 = vector.load %arg13[%c0_74, %c0_75, %c0_76] : memref<2x16x1xf32, #tpu.memory_space<vmem>>, vector<1x16x1xf32>
    %146 = vector.shape_cast %145 : vector<1x16x1xf32> to vector<16x1xf32>
    %147 = vector.broadcast %146 : vector<16x1xf32> to vector<16x64xf32>
    %148 = arith.addf %144, %147 : vector<16x64xf32>
    %c0_77 = arith.constant 0 : index
    %c0_78 = arith.constant 0 : index
    %c0_79 = arith.constant 0 : index
    %149 = vector.load %arg14[%c0_77, %c0_78, %c0_79] : memref<2x1x64xf32, #tpu.memory_space<vmem>>, vector<1x1x64xf32>
    %150 = vector.shape_cast %149 : vector<1x1x64xf32> to vector<1x64xf32>
    %c0_80 = arith.constant 0 : index
    %c0_81 = arith.constant 0 : index
    %c0_82 = arith.constant 0 : index
    %151 = vector.load %arg15[%c0_80, %c0_81, %c0_82] : memref<2x1x64xf32, #tpu.memory_space<vmem>>, vector<1x1x64xf32>
    %152 = vector.shape_cast %151 : vector<1x1x64xf32> to vector<1x64xf32>
    %cst_83 = arith.constant dense<0.000000e+00> : vector<16xf32>
    %153 = vector.multi_reduction <add>, %148, %cst_83 [1] : vector<16x64xf32> to vector<16xf32>
    %154 = vector.shape_cast %153 : vector<16xf32> to vector<16x1xf32>
    %cst_84 = arith.constant 6.400000e+01 : f32
    %155 = vector.broadcast %cst_84 : f32 to vector<16x1xf32>
    %156 = arith.divf %154, %155 : vector<16x1xf32>
    %157 = arith.mulf %148, %148 : vector<16x64xf32>
    %cst_85 = arith.constant dense<0.000000e+00> : vector<16xf32>
    %158 = vector.multi_reduction <add>, %157, %cst_85 [1] : vector<16x64xf32> to vector<16xf32>
    %159 = vector.shape_cast %158 : vector<16xf32> to vector<16x1xf32>
    %cst_86 = arith.constant 6.400000e+01 : f32
    %160 = vector.broadcast %cst_86 : f32 to vector<16x1xf32>
    %161 = arith.divf %159, %160 : vector<16x1xf32>
    %162 = arith.mulf %156, %156 : vector<16x1xf32>
    %163 = arith.subf %161, %162 : vector<16x1xf32>
    %164 = vector.broadcast %156 : vector<16x1xf32> to vector<16x64xf32>
    %165 = arith.subf %148, %164 : vector<16x64xf32>
    %cst_87 = arith.constant 9.99999974E-6 : f32
    %166 = vector.broadcast %cst_87 : f32 to vector<16x1xf32>
    %167 = arith.addf %163, %166 : vector<16x1xf32>
    %168 = math.rsqrt %167 : vector<16x1xf32>
    %169 = vector.broadcast %168 : vector<16x1xf32> to vector<16x64xf32>
    %170 = arith.mulf %165, %169 : vector<16x64xf32>
    %171 = vector.broadcast %150 : vector<1x64xf32> to vector<16x64xf32>
    %172 = arith.mulf %170, %171 : vector<16x64xf32>
    %173 = vector.broadcast %152 : vector<1x64xf32> to vector<16x64xf32>
    %174 = arith.addf %172, %173 : vector<16x64xf32>
    %175 = arith.truncf %174 : vector<16x64xf32> to vector<16x64xbf16>
    %c0_88 = arith.constant 0 : index
    %c0_89 = arith.constant 0 : index
    %c0_90 = arith.constant 0 : index
    %176 = vector.load %arg16[%c0_88, %c0_89, %c0_90] : memref<2x64x128xbf16, #tpu.memory_space<vmem>>, vector<1x64x128xbf16>
    %177 = vector.shape_cast %176 : vector<1x64x128xbf16> to vector<64x128xbf16>
    %cst_91 = arith.constant dense<0.000000e+00> : vector<16x128xf32>
    %178 = tpu.matmul %175, %177, %cst_91 {dimension_numbers = #tpu.dot_dimension_numbers<[1], [0], [0], [1], [0, 0, 1, 1], [], []>} : vector<16x64xbf16>, vector<64x128xbf16>, vector<16x128xf32> -> vector<16x128xf32>
    %c0_92 = arith.constant 0 : index
    %c0_93 = arith.constant 0 : index
    %c0_94 = arith.constant 0 : index
    %179 = vector.load %arg17[%c0_92, %c0_93, %c0_94] : memref<2x1x128xf32, #tpu.memory_space<vmem>>, vector<1x1x128xf32>
    %180 = vector.shape_cast %179 : vector<1x1x128xf32> to vector<1x128xf32>
    %181 = vector.broadcast %180 : vector<1x128xf32> to vector<16x128xf32>
    %182 = arith.addf %178, %181 : vector<16x128xf32>
    %cst_95 = arith.constant 5.000000e-01 : f32
    %183 = vector.broadcast %cst_95 : f32 to vector<16x128xf32>
    %184 = arith.mulf %183, %182 : vector<16x128xf32>
    %cst_96 = arith.constant 0.707106769 : f32
    %185 = vector.broadcast %cst_96 : f32 to vector<16x128xf32>
    %186 = arith.mulf %182, %185 : vector<16x128xf32>
    %cst_97 = arith.constant 0.000000e+00 : f32
    %187 = vector.broadcast %cst_97 : f32 to vector<16x128xf32>
    %188 = arith.cmpf oge, %186, %187 : vector<16x128xf32>
    %cst_98 = arith.constant 1.000000e+00 : f32
    %cst_99 = arith.constant -1.000000e+00 : f32
    %189 = vector.broadcast %cst_98 : f32 to vector<16x128xf32>
    %190 = vector.broadcast %cst_99 : f32 to vector<16x128xf32>
    %191 = arith.select %188, %189, %190 : vector<16x128xi1>, vector<16x128xf32>
    %192 = math.absf %186 : vector<16x128xf32>
    %cst_100 = arith.constant 0.327591091 : f32
    %193 = vector.broadcast %cst_100 : f32 to vector<16x128xf32>
    %194 = arith.mulf %193, %192 : vector<16x128xf32>
    %cst_101 = arith.constant 1.000000e+00 : f32
    %195 = vector.broadcast %cst_101 : f32 to vector<16x128xf32>
    %196 = arith.addf %195, %194 : vector<16x128xf32>
    %cst_102 = arith.constant 1.000000e+00 : f32
    %197 = vector.broadcast %cst_102 : f32 to vector<16x128xf32>
    %198 = arith.divf %197, %196 : vector<16x128xf32>
    %cst_103 = arith.constant 1.06140542 : f32
    %199 = vector.broadcast %cst_103 : f32 to vector<16x128xf32>
    %200 = arith.mulf %199, %198 : vector<16x128xf32>
    %cst_104 = arith.constant -1.45315206 : f32
    %201 = vector.broadcast %cst_104 : f32 to vector<16x128xf32>
    %202 = arith.addf %200, %201 : vector<16x128xf32>
    %203 = arith.mulf %202, %198 : vector<16x128xf32>
    %cst_105 = arith.constant 1.42141378 : f32
    %204 = vector.broadcast %cst_105 : f32 to vector<16x128xf32>
    %205 = arith.addf %203, %204 : vector<16x128xf32>
    %206 = arith.mulf %205, %198 : vector<16x128xf32>
    %cst_106 = arith.constant -0.284496725 : f32
    %207 = vector.broadcast %cst_106 : f32 to vector<16x128xf32>
    %208 = arith.addf %206, %207 : vector<16x128xf32>
    %209 = arith.mulf %208, %198 : vector<16x128xf32>
    %cst_107 = arith.constant 0.254829586 : f32
    %210 = vector.broadcast %cst_107 : f32 to vector<16x128xf32>
    %211 = arith.addf %209, %210 : vector<16x128xf32>
    %212 = arith.mulf %211, %198 : vector<16x128xf32>
    %cst_108 = arith.constant 0.000000e+00 : f32
    %213 = vector.broadcast %cst_108 : f32 to vector<16x128xf32>
    %214 = arith.subf %213, %192 : vector<16x128xf32>
    %215 = arith.mulf %214, %192 : vector<16x128xf32>
    %216 = math.exp %215 : vector<16x128xf32>
    %217 = arith.mulf %212, %216 : vector<16x128xf32>
    %cst_109 = arith.constant 1.000000e+00 : f32
    %218 = vector.broadcast %cst_109 : f32 to vector<16x128xf32>
    %219 = arith.subf %218, %217 : vector<16x128xf32>
    %220 = arith.mulf %191, %219 : vector<16x128xf32>
    %cst_110 = arith.constant 1.000000e+00 : f32
    %221 = vector.broadcast %cst_110 : f32 to vector<16x128xf32>
    %222 = arith.addf %221, %220 : vector<16x128xf32>
    %223 = arith.mulf %184, %222 : vector<16x128xf32>
    %224 = arith.truncf %223 : vector<16x128xf32> to vector<16x128xbf16>
    %c0_111 = arith.constant 0 : index
    %c0_112 = arith.constant 0 : index
    %c0_113 = arith.constant 0 : index
    %225 = vector.load %arg18[%c0_111, %c0_112, %c0_113] : memref<2x128x64xbf16, #tpu.memory_space<vmem>>, vector<1x128x64xbf16>
    %226 = vector.shape_cast %225 : vector<1x128x64xbf16> to vector<128x64xbf16>
    %cst_114 = arith.constant dense<0.000000e+00> : vector<16x64xf32>
    %227 = tpu.matmul %224, %226, %cst_114 {dimension_numbers = #tpu.dot_dimension_numbers<[1], [0], [0], [1], [0, 0, 1, 1], [], []>} : vector<16x128xbf16>, vector<128x64xbf16>, vector<16x64xf32> -> vector<16x64xf32>
    %c0_115 = arith.constant 0 : index
    %c0_116 = arith.constant 0 : index
    %c0_117 = arith.constant 0 : index
    %228 = vector.load %arg19[%c0_115, %c0_116, %c0_117] : memref<2x1x64xf32, #tpu.memory_space<vmem>>, vector<1x1x64xf32>
    %229 = vector.shape_cast %228 : vector<1x1x64xf32> to vector<1x64xf32>
    %230 = vector.broadcast %229 : vector<1x64xf32> to vector<16x64xf32>
    %231 = arith.addf %227, %230 : vector<16x64xf32>
    %232 = arith.truncf %231 : vector<16x64xf32> to vector<16x64xbf16>
    %c0_118 = arith.constant 0 : index
    %c0_119 = arith.constant 0 : index
    %c0_120 = arith.constant 0 : index
    %233 = vector.load %arg20[%c0_118, %c0_119, %c0_120] : memref<2x64x128xbf16, #tpu.memory_space<vmem>>, vector<1x64x128xbf16>
    %234 = vector.shape_cast %233 : vector<1x64x128xbf16> to vector<64x128xbf16>
    %cst_121 = arith.constant dense<0.000000e+00> : vector<16x128xf32>
    %235 = tpu.matmul %232, %234, %cst_121 {dimension_numbers = #tpu.dot_dimension_numbers<[1], [0], [0], [1], [0, 0, 1, 1], [], []>} : vector<16x64xbf16>, vector<64x128xbf16>, vector<16x128xf32> -> vector<16x128xf32>
    %c0_122 = arith.constant 0 : index
    %c0_123 = arith.constant 0 : index
    %c0_124 = arith.constant 0 : index
    %236 = vector.load %arg21[%c0_122, %c0_123, %c0_124] : memref<2x1x128xf32, #tpu.memory_space<vmem>>, vector<1x1x128xf32>
    %237 = vector.shape_cast %236 : vector<1x1x128xf32> to vector<1x128xf32>
    %238 = vector.broadcast %237 : vector<1x128xf32> to vector<16x128xf32>
    %239 = arith.addf %235, %238 : vector<16x128xf32>
    %cst_125 = arith.constant 5.000000e-01 : f32
    %240 = vector.broadcast %cst_125 : f32 to vector<16x128xf32>
    %241 = arith.mulf %240, %239 : vector<16x128xf32>
    %cst_126 = arith.constant 0.707106769 : f32
    %242 = vector.broadcast %cst_126 : f32 to vector<16x128xf32>
    %243 = arith.mulf %239, %242 : vector<16x128xf32>
    %cst_127 = arith.constant 0.000000e+00 : f32
    %244 = vector.broadcast %cst_127 : f32 to vector<16x128xf32>
    %245 = arith.cmpf oge, %243, %244 : vector<16x128xf32>
    %cst_128 = arith.constant 1.000000e+00 : f32
    %cst_129 = arith.constant -1.000000e+00 : f32
    %246 = vector.broadcast %cst_128 : f32 to vector<16x128xf32>
    %247 = vector.broadcast %cst_129 : f32 to vector<16x128xf32>
    %248 = arith.select %245, %246, %247 : vector<16x128xi1>, vector<16x128xf32>
    %249 = math.absf %243 : vector<16x128xf32>
    %cst_130 = arith.constant 0.327591091 : f32
    %250 = vector.broadcast %cst_130 : f32 to vector<16x128xf32>
    %251 = arith.mulf %250, %249 : vector<16x128xf32>
    %cst_131 = arith.constant 1.000000e+00 : f32
    %252 = vector.broadcast %cst_131 : f32 to vector<16x128xf32>
    %253 = arith.addf %252, %251 : vector<16x128xf32>
    %cst_132 = arith.constant 1.000000e+00 : f32
    %254 = vector.broadcast %cst_132 : f32 to vector<16x128xf32>
    %255 = arith.divf %254, %253 : vector<16x128xf32>
    %cst_133 = arith.constant 1.06140542 : f32
    %256 = vector.broadcast %cst_133 : f32 to vector<16x128xf32>
    %257 = arith.mulf %256, %255 : vector<16x128xf32>
    %cst_134 = arith.constant -1.45315206 : f32
    %258 = vector.broadcast %cst_134 : f32 to vector<16x128xf32>
    %259 = arith.addf %257, %258 : vector<16x128xf32>
    %260 = arith.mulf %259, %255 : vector<16x128xf32>
    %cst_135 = arith.constant 1.42141378 : f32
    %261 = vector.broadcast %cst_135 : f32 to vector<16x128xf32>
    %262 = arith.addf %260, %261 : vector<16x128xf32>
    %263 = arith.mulf %262, %255 : vector<16x128xf32>
    %cst_136 = arith.constant -0.284496725 : f32
    %264 = vector.broadcast %cst_136 : f32 to vector<16x128xf32>
    %265 = arith.addf %263, %264 : vector<16x128xf32>
    %266 = arith.mulf %265, %255 : vector<16x128xf32>
    %cst_137 = arith.constant 0.254829586 : f32
    %267 = vector.broadcast %cst_137 : f32 to vector<16x128xf32>
    %268 = arith.addf %266, %267 : vector<16x128xf32>
    %269 = arith.mulf %268, %255 : vector<16x128xf32>
    %cst_138 = arith.constant 0.000000e+00 : f32
    %270 = vector.broadcast %cst_138 : f32 to vector<16x128xf32>
    %271 = arith.subf %270, %249 : vector<16x128xf32>
    %272 = arith.mulf %271, %249 : vector<16x128xf32>
    %273 = math.exp %272 : vector<16x128xf32>
    %274 = arith.mulf %269, %273 : vector<16x128xf32>
    %cst_139 = arith.constant 1.000000e+00 : f32
    %275 = vector.broadcast %cst_139 : f32 to vector<16x128xf32>
    %276 = arith.subf %275, %274 : vector<16x128xf32>
    %277 = arith.mulf %248, %276 : vector<16x128xf32>
    %cst_140 = arith.constant 1.000000e+00 : f32
    %278 = vector.broadcast %cst_140 : f32 to vector<16x128xf32>
    %279 = arith.addf %278, %277 : vector<16x128xf32>
    %280 = arith.mulf %241, %279 : vector<16x128xf32>
    %281 = arith.truncf %280 : vector<16x128xf32> to vector<16x128xbf16>
    %c0_141 = arith.constant 0 : index
    %c0_142 = arith.constant 0 : index
    %c0_143 = arith.constant 0 : index
    %282 = vector.load %arg22[%c0_141, %c0_142, %c0_143] : memref<2x128x64xbf16, #tpu.memory_space<vmem>>, vector<1x128x64xbf16>
    %283 = vector.shape_cast %282 : vector<1x128x64xbf16> to vector<128x64xbf16>
    %cst_144 = arith.constant dense<0.000000e+00> : vector<16x64xf32>
    %284 = tpu.matmul %281, %283, %cst_144 {dimension_numbers = #tpu.dot_dimension_numbers<[1], [0], [0], [1], [0, 0, 1, 1], [], []>} : vector<16x128xbf16>, vector<128x64xbf16>, vector<16x64xf32> -> vector<16x64xf32>
    %285 = arith.addf %148, %284 : vector<16x64xf32>
    %c0_145 = arith.constant 0 : index
    %c0_146 = arith.constant 0 : index
    %c0_147 = arith.constant 0 : index
    %286 = vector.load %arg23[%c0_145, %c0_146, %c0_147] : memref<2x1x64xf32, #tpu.memory_space<vmem>>, vector<1x1x64xf32>
    %287 = vector.shape_cast %286 : vector<1x1x64xf32> to vector<1x64xf32>
    %288 = vector.broadcast %287 : vector<1x64xf32> to vector<16x64xf32>
    %289 = arith.addf %285, %288 : vector<16x64xf32>
    %c1 = arith.constant 1 : index
    %c0_148 = arith.constant 0 : index
    %c0_149 = arith.constant 0 : index
    %290 = vector.load %arg4[%c1, %c0_148, %c0_149] : memref<2x1x64xf32, #tpu.memory_space<vmem>>, vector<1x1x64xf32>
    %291 = vector.shape_cast %290 : vector<1x1x64xf32> to vector<1x64xf32>
    %c1_150 = arith.constant 1 : index
    %c0_151 = arith.constant 0 : index
    %c0_152 = arith.constant 0 : index
    %292 = vector.load %arg5[%c1_150, %c0_151, %c0_152] : memref<2x1x64xf32, #tpu.memory_space<vmem>>, vector<1x1x64xf32>
    %293 = vector.shape_cast %292 : vector<1x1x64xf32> to vector<1x64xf32>
    %cst_153 = arith.constant dense<0.000000e+00> : vector<16xf32>
    %294 = vector.multi_reduction <add>, %289, %cst_153 [1] : vector<16x64xf32> to vector<16xf32>
    %295 = vector.shape_cast %294 : vector<16xf32> to vector<16x1xf32>
    %cst_154 = arith.constant 6.400000e+01 : f32
    %296 = vector.broadcast %cst_154 : f32 to vector<16x1xf32>
    %297 = arith.divf %295, %296 : vector<16x1xf32>
    %298 = arith.mulf %289, %289 : vector<16x64xf32>
    %cst_155 = arith.constant dense<0.000000e+00> : vector<16xf32>
    %299 = vector.multi_reduction <add>, %298, %cst_155 [1] : vector<16x64xf32> to vector<16xf32>
    %300 = vector.shape_cast %299 : vector<16xf32> to vector<16x1xf32>
    %cst_156 = arith.constant 6.400000e+01 : f32
    %301 = vector.broadcast %cst_156 : f32 to vector<16x1xf32>
    %302 = arith.divf %300, %301 : vector<16x1xf32>
    %303 = arith.mulf %297, %297 : vector<16x1xf32>
    %304 = arith.subf %302, %303 : vector<16x1xf32>
    %305 = vector.broadcast %297 : vector<16x1xf32> to vector<16x64xf32>
    %306 = arith.subf %289, %305 : vector<16x64xf32>
    %cst_157 = arith.constant 9.99999974E-6 : f32
    %307 = vector.broadcast %cst_157 : f32 to vector<16x1xf32>
    %308 = arith.addf %304, %307 : vector<16x1xf32>
    %309 = math.rsqrt %308 : vector<16x1xf32>
    %310 = vector.broadcast %309 : vector<16x1xf32> to vector<16x64xf32>
    %311 = arith.mulf %306, %310 : vector<16x64xf32>
    %312 = vector.broadcast %291 : vector<1x64xf32> to vector<16x64xf32>
    %313 = arith.mulf %311, %312 : vector<16x64xf32>
    %314 = vector.broadcast %293 : vector<1x64xf32> to vector<16x64xf32>
    %315 = arith.addf %313, %314 : vector<16x64xf32>
    %c1_158 = arith.constant 1 : index
    %c0_159 = arith.constant 0 : index
    %c0_160 = arith.constant 0 : index
    %316 = vector.load %arg6[%c1_158, %c0_159, %c0_160] : memref<2x32x16xbf16, #tpu.memory_space<vmem>>, vector<1x32x16xbf16>
    %317 = vector.shape_cast %316 : vector<1x32x16xbf16> to vector<32x16xbf16>
    %318 = arith.truncf %315 : vector<16x64xf32> to vector<16x64xbf16>
    %cst_161 = arith.constant dense<0.000000e+00> : vector<32x64xf32>
    %319 = tpu.matmul %317, %318, %cst_161 {dimension_numbers = #tpu.dot_dimension_numbers<[1], [0], [0], [1], [0, 0, 1, 1], [], []>} : vector<32x16xbf16>, vector<16x64xbf16>, vector<32x64xf32> -> vector<32x64xf32>
    %c1_162 = arith.constant 1 : index
    %c0_163 = arith.constant 0 : index
    %c0_164 = arith.constant 0 : index
    %320 = vector.load %arg7[%c1_162, %c0_163, %c0_164] : memref<2x32x1xf32, #tpu.memory_space<vmem>>, vector<1x32x1xf32>
    %321 = vector.shape_cast %320 : vector<1x32x1xf32> to vector<32x1xf32>
    %322 = vector.broadcast %321 : vector<32x1xf32> to vector<32x64xf32>
    %323 = arith.addf %319, %322 : vector<32x64xf32>
    %cst_165 = arith.constant 5.000000e-01 : f32
    %324 = vector.broadcast %cst_165 : f32 to vector<32x64xf32>
    %325 = arith.mulf %324, %323 : vector<32x64xf32>
    %cst_166 = arith.constant 0.707106769 : f32
    %326 = vector.broadcast %cst_166 : f32 to vector<32x64xf32>
    %327 = arith.mulf %323, %326 : vector<32x64xf32>
    %cst_167 = arith.constant 0.000000e+00 : f32
    %328 = vector.broadcast %cst_167 : f32 to vector<32x64xf32>
    %329 = arith.cmpf oge, %327, %328 : vector<32x64xf32>
    %cst_168 = arith.constant 1.000000e+00 : f32
    %cst_169 = arith.constant -1.000000e+00 : f32
    %330 = vector.broadcast %cst_168 : f32 to vector<32x64xf32>
    %331 = vector.broadcast %cst_169 : f32 to vector<32x64xf32>
    %332 = arith.select %329, %330, %331 : vector<32x64xi1>, vector<32x64xf32>
    %333 = math.absf %327 : vector<32x64xf32>
    %cst_170 = arith.constant 0.327591091 : f32
    %334 = vector.broadcast %cst_170 : f32 to vector<32x64xf32>
    %335 = arith.mulf %334, %333 : vector<32x64xf32>
    %cst_171 = arith.constant 1.000000e+00 : f32
    %336 = vector.broadcast %cst_171 : f32 to vector<32x64xf32>
    %337 = arith.addf %336, %335 : vector<32x64xf32>
    %cst_172 = arith.constant 1.000000e+00 : f32
    %338 = vector.broadcast %cst_172 : f32 to vector<32x64xf32>
    %339 = arith.divf %338, %337 : vector<32x64xf32>
    %cst_173 = arith.constant 1.06140542 : f32
    %340 = vector.broadcast %cst_173 : f32 to vector<32x64xf32>
    %341 = arith.mulf %340, %339 : vector<32x64xf32>
    %cst_174 = arith.constant -1.45315206 : f32
    %342 = vector.broadcast %cst_174 : f32 to vector<32x64xf32>
    %343 = arith.addf %341, %342 : vector<32x64xf32>
    %344 = arith.mulf %343, %339 : vector<32x64xf32>
    %cst_175 = arith.constant 1.42141378 : f32
    %345 = vector.broadcast %cst_175 : f32 to vector<32x64xf32>
    %346 = arith.addf %344, %345 : vector<32x64xf32>
    %347 = arith.mulf %346, %339 : vector<32x64xf32>
    %cst_176 = arith.constant -0.284496725 : f32
    %348 = vector.broadcast %cst_176 : f32 to vector<32x64xf32>
    %349 = arith.addf %347, %348 : vector<32x64xf32>
    %350 = arith.mulf %349, %339 : vector<32x64xf32>
    %cst_177 = arith.constant 0.254829586 : f32
    %351 = vector.broadcast %cst_177 : f32 to vector<32x64xf32>
    %352 = arith.addf %350, %351 : vector<32x64xf32>
    %353 = arith.mulf %352, %339 : vector<32x64xf32>
    %cst_178 = arith.constant 0.000000e+00 : f32
    %354 = vector.broadcast %cst_178 : f32 to vector<32x64xf32>
    %355 = arith.subf %354, %333 : vector<32x64xf32>
    %356 = arith.mulf %355, %333 : vector<32x64xf32>
    %357 = math.exp %356 : vector<32x64xf32>
    %358 = arith.mulf %353, %357 : vector<32x64xf32>
    %cst_179 = arith.constant 1.000000e+00 : f32
    %359 = vector.broadcast %cst_179 : f32 to vector<32x64xf32>
    %360 = arith.subf %359, %358 : vector<32x64xf32>
    %361 = arith.mulf %332, %360 : vector<32x64xf32>
    %cst_180 = arith.constant 1.000000e+00 : f32
    %362 = vector.broadcast %cst_180 : f32 to vector<32x64xf32>
    %363 = arith.addf %362, %361 : vector<32x64xf32>
    %364 = arith.mulf %325, %363 : vector<32x64xf32>
    %c1_181 = arith.constant 1 : index
    %c0_182 = arith.constant 0 : index
    %c0_183 = arith.constant 0 : index
    %365 = vector.load %arg8[%c1_181, %c0_182, %c0_183] : memref<2x16x32xbf16, #tpu.memory_space<vmem>>, vector<1x16x32xbf16>
    %366 = vector.shape_cast %365 : vector<1x16x32xbf16> to vector<16x32xbf16>
    %367 = arith.truncf %364 : vector<32x64xf32> to vector<32x64xbf16>
    %cst_184 = arith.constant dense<0.000000e+00> : vector<16x64xf32>
    %368 = tpu.matmul %366, %367, %cst_184 {dimension_numbers = #tpu.dot_dimension_numbers<[1], [0], [0], [1], [0, 0, 1, 1], [], []>} : vector<16x32xbf16>, vector<32x64xbf16>, vector<16x64xf32> -> vector<16x64xf32>
    %c1_185 = arith.constant 1 : index
    %c0_186 = arith.constant 0 : index
    %c0_187 = arith.constant 0 : index
    %369 = vector.load %arg9[%c1_185, %c0_186, %c0_187] : memref<2x16x1xf32, #tpu.memory_space<vmem>>, vector<1x16x1xf32>
    %370 = vector.shape_cast %369 : vector<1x16x1xf32> to vector<16x1xf32>
    %371 = vector.broadcast %370 : vector<16x1xf32> to vector<16x64xf32>
    %372 = arith.addf %368, %371 : vector<16x64xf32>
    %c1_188 = arith.constant 1 : index
    %c0_189 = arith.constant 0 : index
    %c0_190 = arith.constant 0 : index
    %373 = vector.load %arg10[%c1_188, %c0_189, %c0_190] : memref<2x32x16xbf16, #tpu.memory_space<vmem>>, vector<1x32x16xbf16>
    %374 = vector.shape_cast %373 : vector<1x32x16xbf16> to vector<32x16xbf16>
    %375 = arith.truncf %372 : vector<16x64xf32> to vector<16x64xbf16>
    %cst_191 = arith.constant dense<0.000000e+00> : vector<32x64xf32>
    %376 = tpu.matmul %374, %375, %cst_191 {dimension_numbers = #tpu.dot_dimension_numbers<[1], [0], [0], [1], [0, 0, 1, 1], [], []>} : vector<32x16xbf16>, vector<16x64xbf16>, vector<32x64xf32> -> vector<32x64xf32>
    %c1_192 = arith.constant 1 : index
    %c0_193 = arith.constant 0 : index
    %c0_194 = arith.constant 0 : index
    %377 = vector.load %arg11[%c1_192, %c0_193, %c0_194] : memref<2x32x1xf32, #tpu.memory_space<vmem>>, vector<1x32x1xf32>
    %378 = vector.shape_cast %377 : vector<1x32x1xf32> to vector<32x1xf32>
    %379 = vector.broadcast %378 : vector<32x1xf32> to vector<32x64xf32>
    %380 = arith.addf %376, %379 : vector<32x64xf32>
    %cst_195 = arith.constant 5.000000e-01 : f32
    %381 = vector.broadcast %cst_195 : f32 to vector<32x64xf32>
    %382 = arith.mulf %381, %380 : vector<32x64xf32>
    %cst_196 = arith.constant 0.707106769 : f32
    %383 = vector.broadcast %cst_196 : f32 to vector<32x64xf32>
    %384 = arith.mulf %380, %383 : vector<32x64xf32>
    %cst_197 = arith.constant 0.000000e+00 : f32
    %385 = vector.broadcast %cst_197 : f32 to vector<32x64xf32>
    %386 = arith.cmpf oge, %384, %385 : vector<32x64xf32>
    %cst_198 = arith.constant 1.000000e+00 : f32
    %cst_199 = arith.constant -1.000000e+00 : f32
    %387 = vector.broadcast %cst_198 : f32 to vector<32x64xf32>
    %388 = vector.broadcast %cst_199 : f32 to vector<32x64xf32>
    %389 = arith.select %386, %387, %388 : vector<32x64xi1>, vector<32x64xf32>
    %390 = math.absf %384 : vector<32x64xf32>
    %cst_200 = arith.constant 0.327591091 : f32
    %391 = vector.broadcast %cst_200 : f32 to vector<32x64xf32>
    %392 = arith.mulf %391, %390 : vector<32x64xf32>
    %cst_201 = arith.constant 1.000000e+00 : f32
    %393 = vector.broadcast %cst_201 : f32 to vector<32x64xf32>
    %394 = arith.addf %393, %392 : vector<32x64xf32>
    %cst_202 = arith.constant 1.000000e+00 : f32
    %395 = vector.broadcast %cst_202 : f32 to vector<32x64xf32>
    %396 = arith.divf %395, %394 : vector<32x64xf32>
    %cst_203 = arith.constant 1.06140542 : f32
    %397 = vector.broadcast %cst_203 : f32 to vector<32x64xf32>
    %398 = arith.mulf %397, %396 : vector<32x64xf32>
    %cst_204 = arith.constant -1.45315206 : f32
    %399 = vector.broadcast %cst_204 : f32 to vector<32x64xf32>
    %400 = arith.addf %398, %399 : vector<32x64xf32>
    %401 = arith.mulf %400, %396 : vector<32x64xf32>
    %cst_205 = arith.constant 1.42141378 : f32
    %402 = vector.broadcast %cst_205 : f32 to vector<32x64xf32>
    %403 = arith.addf %401, %402 : vector<32x64xf32>
    %404 = arith.mulf %403, %396 : vector<32x64xf32>
    %cst_206 = arith.constant -0.284496725 : f32
    %405 = vector.broadcast %cst_206 : f32 to vector<32x64xf32>
    %406 = arith.addf %404, %405 : vector<32x64xf32>
    %407 = arith.mulf %406, %396 : vector<32x64xf32>
    %cst_207 = arith.constant 0.254829586 : f32
    %408 = vector.broadcast %cst_207 : f32 to vector<32x64xf32>
    %409 = arith.addf %407, %408 : vector<32x64xf32>
    %410 = arith.mulf %409, %396 : vector<32x64xf32>
    %cst_208 = arith.constant 0.000000e+00 : f32
    %411 = vector.broadcast %cst_208 : f32 to vector<32x64xf32>
    %412 = arith.subf %411, %390 : vector<32x64xf32>
    %413 = arith.mulf %412, %390 : vector<32x64xf32>
    %414 = math.exp %413 : vector<32x64xf32>
    %415 = arith.mulf %410, %414 : vector<32x64xf32>
    %cst_209 = arith.constant 1.000000e+00 : f32
    %416 = vector.broadcast %cst_209 : f32 to vector<32x64xf32>
    %417 = arith.subf %416, %415 : vector<32x64xf32>
    %418 = arith.mulf %389, %417 : vector<32x64xf32>
    %cst_210 = arith.constant 1.000000e+00 : f32
    %419 = vector.broadcast %cst_210 : f32 to vector<32x64xf32>
    %420 = arith.addf %419, %418 : vector<32x64xf32>
    %421 = arith.mulf %382, %420 : vector<32x64xf32>
    %c1_211 = arith.constant 1 : index
    %c0_212 = arith.constant 0 : index
    %c0_213 = arith.constant 0 : index
    %422 = vector.load %arg12[%c1_211, %c0_212, %c0_213] : memref<2x16x32xbf16, #tpu.memory_space<vmem>>, vector<1x16x32xbf16>
    %423 = vector.shape_cast %422 : vector<1x16x32xbf16> to vector<16x32xbf16>
    %424 = arith.truncf %421 : vector<32x64xf32> to vector<32x64xbf16>
    %cst_214 = arith.constant dense<0.000000e+00> : vector<16x64xf32>
    %425 = tpu.matmul %423, %424, %cst_214 {dimension_numbers = #tpu.dot_dimension_numbers<[1], [0], [0], [1], [0, 0, 1, 1], [], []>} : vector<16x32xbf16>, vector<32x64xbf16>, vector<16x64xf32> -> vector<16x64xf32>
    %426 = arith.addf %289, %425 : vector<16x64xf32>
    %c1_215 = arith.constant 1 : index
    %c0_216 = arith.constant 0 : index
    %c0_217 = arith.constant 0 : index
    %427 = vector.load %arg13[%c1_215, %c0_216, %c0_217] : memref<2x16x1xf32, #tpu.memory_space<vmem>>, vector<1x16x1xf32>
    %428 = vector.shape_cast %427 : vector<1x16x1xf32> to vector<16x1xf32>
    %429 = vector.broadcast %428 : vector<16x1xf32> to vector<16x64xf32>
    %430 = arith.addf %426, %429 : vector<16x64xf32>
    %c1_218 = arith.constant 1 : index
    %c0_219 = arith.constant 0 : index
    %c0_220 = arith.constant 0 : index
    %431 = vector.load %arg14[%c1_218, %c0_219, %c0_220] : memref<2x1x64xf32, #tpu.memory_space<vmem>>, vector<1x1x64xf32>
    %432 = vector.shape_cast %431 : vector<1x1x64xf32> to vector<1x64xf32>
    %c1_221 = arith.constant 1 : index
    %c0_222 = arith.constant 0 : index
    %c0_223 = arith.constant 0 : index
    %433 = vector.load %arg15[%c1_221, %c0_222, %c0_223] : memref<2x1x64xf32, #tpu.memory_space<vmem>>, vector<1x1x64xf32>
    %434 = vector.shape_cast %433 : vector<1x1x64xf32> to vector<1x64xf32>
    %cst_224 = arith.constant dense<0.000000e+00> : vector<16xf32>
    %435 = vector.multi_reduction <add>, %430, %cst_224 [1] : vector<16x64xf32> to vector<16xf32>
    %436 = vector.shape_cast %435 : vector<16xf32> to vector<16x1xf32>
    %cst_225 = arith.constant 6.400000e+01 : f32
    %437 = vector.broadcast %cst_225 : f32 to vector<16x1xf32>
    %438 = arith.divf %436, %437 : vector<16x1xf32>
    %439 = arith.mulf %430, %430 : vector<16x64xf32>
    %cst_226 = arith.constant dense<0.000000e+00> : vector<16xf32>
    %440 = vector.multi_reduction <add>, %439, %cst_226 [1] : vector<16x64xf32> to vector<16xf32>
    %441 = vector.shape_cast %440 : vector<16xf32> to vector<16x1xf32>
    %cst_227 = arith.constant 6.400000e+01 : f32
    %442 = vector.broadcast %cst_227 : f32 to vector<16x1xf32>
    %443 = arith.divf %441, %442 : vector<16x1xf32>
    %444 = arith.mulf %438, %438 : vector<16x1xf32>
    %445 = arith.subf %443, %444 : vector<16x1xf32>
    %446 = vector.broadcast %438 : vector<16x1xf32> to vector<16x64xf32>
    %447 = arith.subf %430, %446 : vector<16x64xf32>
    %cst_228 = arith.constant 9.99999974E-6 : f32
    %448 = vector.broadcast %cst_228 : f32 to vector<16x1xf32>
    %449 = arith.addf %445, %448 : vector<16x1xf32>
    %450 = math.rsqrt %449 : vector<16x1xf32>
    %451 = vector.broadcast %450 : vector<16x1xf32> to vector<16x64xf32>
    %452 = arith.mulf %447, %451 : vector<16x64xf32>
    %453 = vector.broadcast %432 : vector<1x64xf32> to vector<16x64xf32>
    %454 = arith.mulf %452, %453 : vector<16x64xf32>
    %455 = vector.broadcast %434 : vector<1x64xf32> to vector<16x64xf32>
    %456 = arith.addf %454, %455 : vector<16x64xf32>
    %457 = arith.truncf %456 : vector<16x64xf32> to vector<16x64xbf16>
    %c1_229 = arith.constant 1 : index
    %c0_230 = arith.constant 0 : index
    %c0_231 = arith.constant 0 : index
    %458 = vector.load %arg16[%c1_229, %c0_230, %c0_231] : memref<2x64x128xbf16, #tpu.memory_space<vmem>>, vector<1x64x128xbf16>
    %459 = vector.shape_cast %458 : vector<1x64x128xbf16> to vector<64x128xbf16>
    %cst_232 = arith.constant dense<0.000000e+00> : vector<16x128xf32>
    %460 = tpu.matmul %457, %459, %cst_232 {dimension_numbers = #tpu.dot_dimension_numbers<[1], [0], [0], [1], [0, 0, 1, 1], [], []>} : vector<16x64xbf16>, vector<64x128xbf16>, vector<16x128xf32> -> vector<16x128xf32>
    %c1_233 = arith.constant 1 : index
    %c0_234 = arith.constant 0 : index
    %c0_235 = arith.constant 0 : index
    %461 = vector.load %arg17[%c1_233, %c0_234, %c0_235] : memref<2x1x128xf32, #tpu.memory_space<vmem>>, vector<1x1x128xf32>
    %462 = vector.shape_cast %461 : vector<1x1x128xf32> to vector<1x128xf32>
    %463 = vector.broadcast %462 : vector<1x128xf32> to vector<16x128xf32>
    %464 = arith.addf %460, %463 : vector<16x128xf32>
    %cst_236 = arith.constant 5.000000e-01 : f32
    %465 = vector.broadcast %cst_236 : f32 to vector<16x128xf32>
    %466 = arith.mulf %465, %464 : vector<16x128xf32>
    %cst_237 = arith.constant 0.707106769 : f32
    %467 = vector.broadcast %cst_237 : f32 to vector<16x128xf32>
    %468 = arith.mulf %464, %467 : vector<16x128xf32>
    %cst_238 = arith.constant 0.000000e+00 : f32
    %469 = vector.broadcast %cst_238 : f32 to vector<16x128xf32>
    %470 = arith.cmpf oge, %468, %469 : vector<16x128xf32>
    %cst_239 = arith.constant 1.000000e+00 : f32
    %cst_240 = arith.constant -1.000000e+00 : f32
    %471 = vector.broadcast %cst_239 : f32 to vector<16x128xf32>
    %472 = vector.broadcast %cst_240 : f32 to vector<16x128xf32>
    %473 = arith.select %470, %471, %472 : vector<16x128xi1>, vector<16x128xf32>
    %474 = math.absf %468 : vector<16x128xf32>
    %cst_241 = arith.constant 0.327591091 : f32
    %475 = vector.broadcast %cst_241 : f32 to vector<16x128xf32>
    %476 = arith.mulf %475, %474 : vector<16x128xf32>
    %cst_242 = arith.constant 1.000000e+00 : f32
    %477 = vector.broadcast %cst_242 : f32 to vector<16x128xf32>
    %478 = arith.addf %477, %476 : vector<16x128xf32>
    %cst_243 = arith.constant 1.000000e+00 : f32
    %479 = vector.broadcast %cst_243 : f32 to vector<16x128xf32>
    %480 = arith.divf %479, %478 : vector<16x128xf32>
    %cst_244 = arith.constant 1.06140542 : f32
    %481 = vector.broadcast %cst_244 : f32 to vector<16x128xf32>
    %482 = arith.mulf %481, %480 : vector<16x128xf32>
    %cst_245 = arith.constant -1.45315206 : f32
    %483 = vector.broadcast %cst_245 : f32 to vector<16x128xf32>
    %484 = arith.addf %482, %483 : vector<16x128xf32>
    %485 = arith.mulf %484, %480 : vector<16x128xf32>
    %cst_246 = arith.constant 1.42141378 : f32
    %486 = vector.broadcast %cst_246 : f32 to vector<16x128xf32>
    %487 = arith.addf %485, %486 : vector<16x128xf32>
    %488 = arith.mulf %487, %480 : vector<16x128xf32>
    %cst_247 = arith.constant -0.284496725 : f32
    %489 = vector.broadcast %cst_247 : f32 to vector<16x128xf32>
    %490 = arith.addf %488, %489 : vector<16x128xf32>
    %491 = arith.mulf %490, %480 : vector<16x128xf32>
    %cst_248 = arith.constant 0.254829586 : f32
    %492 = vector.broadcast %cst_248 : f32 to vector<16x128xf32>
    %493 = arith.addf %491, %492 : vector<16x128xf32>
    %494 = arith.mulf %493, %480 : vector<16x128xf32>
    %cst_249 = arith.constant 0.000000e+00 : f32
    %495 = vector.broadcast %cst_249 : f32 to vector<16x128xf32>
    %496 = arith.subf %495, %474 : vector<16x128xf32>
    %497 = arith.mulf %496, %474 : vector<16x128xf32>
    %498 = math.exp %497 : vector<16x128xf32>
    %499 = arith.mulf %494, %498 : vector<16x128xf32>
    %cst_250 = arith.constant 1.000000e+00 : f32
    %500 = vector.broadcast %cst_250 : f32 to vector<16x128xf32>
    %501 = arith.subf %500, %499 : vector<16x128xf32>
    %502 = arith.mulf %473, %501 : vector<16x128xf32>
    %cst_251 = arith.constant 1.000000e+00 : f32
    %503 = vector.broadcast %cst_251 : f32 to vector<16x128xf32>
    %504 = arith.addf %503, %502 : vector<16x128xf32>
    %505 = arith.mulf %466, %504 : vector<16x128xf32>
    %506 = arith.truncf %505 : vector<16x128xf32> to vector<16x128xbf16>
    %c1_252 = arith.constant 1 : index
    %c0_253 = arith.constant 0 : index
    %c0_254 = arith.constant 0 : index
    %507 = vector.load %arg18[%c1_252, %c0_253, %c0_254] : memref<2x128x64xbf16, #tpu.memory_space<vmem>>, vector<1x128x64xbf16>
    %508 = vector.shape_cast %507 : vector<1x128x64xbf16> to vector<128x64xbf16>
    %cst_255 = arith.constant dense<0.000000e+00> : vector<16x64xf32>
    %509 = tpu.matmul %506, %508, %cst_255 {dimension_numbers = #tpu.dot_dimension_numbers<[1], [0], [0], [1], [0, 0, 1, 1], [], []>} : vector<16x128xbf16>, vector<128x64xbf16>, vector<16x64xf32> -> vector<16x64xf32>
    %c1_256 = arith.constant 1 : index
    %c0_257 = arith.constant 0 : index
    %c0_258 = arith.constant 0 : index
    %510 = vector.load %arg19[%c1_256, %c0_257, %c0_258] : memref<2x1x64xf32, #tpu.memory_space<vmem>>, vector<1x1x64xf32>
    %511 = vector.shape_cast %510 : vector<1x1x64xf32> to vector<1x64xf32>
    %512 = vector.broadcast %511 : vector<1x64xf32> to vector<16x64xf32>
    %513 = arith.addf %509, %512 : vector<16x64xf32>
    %514 = arith.truncf %513 : vector<16x64xf32> to vector<16x64xbf16>
    %c1_259 = arith.constant 1 : index
    %c0_260 = arith.constant 0 : index
    %c0_261 = arith.constant 0 : index
    %515 = vector.load %arg20[%c1_259, %c0_260, %c0_261] : memref<2x64x128xbf16, #tpu.memory_space<vmem>>, vector<1x64x128xbf16>
    %516 = vector.shape_cast %515 : vector<1x64x128xbf16> to vector<64x128xbf16>
    %cst_262 = arith.constant dense<0.000000e+00> : vector<16x128xf32>
    %517 = tpu.matmul %514, %516, %cst_262 {dimension_numbers = #tpu.dot_dimension_numbers<[1], [0], [0], [1], [0, 0, 1, 1], [], []>} : vector<16x64xbf16>, vector<64x128xbf16>, vector<16x128xf32> -> vector<16x128xf32>
    %c1_263 = arith.constant 1 : index
    %c0_264 = arith.constant 0 : index
    %c0_265 = arith.constant 0 : index
    %518 = vector.load %arg21[%c1_263, %c0_264, %c0_265] : memref<2x1x128xf32, #tpu.memory_space<vmem>>, vector<1x1x128xf32>
    %519 = vector.shape_cast %518 : vector<1x1x128xf32> to vector<1x128xf32>
    %520 = vector.broadcast %519 : vector<1x128xf32> to vector<16x128xf32>
    %521 = arith.addf %517, %520 : vector<16x128xf32>
    %cst_266 = arith.constant 5.000000e-01 : f32
    %522 = vector.broadcast %cst_266 : f32 to vector<16x128xf32>
    %523 = arith.mulf %522, %521 : vector<16x128xf32>
    %cst_267 = arith.constant 0.707106769 : f32
    %524 = vector.broadcast %cst_267 : f32 to vector<16x128xf32>
    %525 = arith.mulf %521, %524 : vector<16x128xf32>
    %cst_268 = arith.constant 0.000000e+00 : f32
    %526 = vector.broadcast %cst_268 : f32 to vector<16x128xf32>
    %527 = arith.cmpf oge, %525, %526 : vector<16x128xf32>
    %cst_269 = arith.constant 1.000000e+00 : f32
    %cst_270 = arith.constant -1.000000e+00 : f32
    %528 = vector.broadcast %cst_269 : f32 to vector<16x128xf32>
    %529 = vector.broadcast %cst_270 : f32 to vector<16x128xf32>
    %530 = arith.select %527, %528, %529 : vector<16x128xi1>, vector<16x128xf32>
    %531 = math.absf %525 : vector<16x128xf32>
    %cst_271 = arith.constant 0.327591091 : f32
    %532 = vector.broadcast %cst_271 : f32 to vector<16x128xf32>
    %533 = arith.mulf %532, %531 : vector<16x128xf32>
    %cst_272 = arith.constant 1.000000e+00 : f32
    %534 = vector.broadcast %cst_272 : f32 to vector<16x128xf32>
    %535 = arith.addf %534, %533 : vector<16x128xf32>
    %cst_273 = arith.constant 1.000000e+00 : f32
    %536 = vector.broadcast %cst_273 : f32 to vector<16x128xf32>
    %537 = arith.divf %536, %535 : vector<16x128xf32>
    %cst_274 = arith.constant 1.06140542 : f32
    %538 = vector.broadcast %cst_274 : f32 to vector<16x128xf32>
    %539 = arith.mulf %538, %537 : vector<16x128xf32>
    %cst_275 = arith.constant -1.45315206 : f32
    %540 = vector.broadcast %cst_275 : f32 to vector<16x128xf32>
    %541 = arith.addf %539, %540 : vector<16x128xf32>
    %542 = arith.mulf %541, %537 : vector<16x128xf32>
    %cst_276 = arith.constant 1.42141378 : f32
    %543 = vector.broadcast %cst_276 : f32 to vector<16x128xf32>
    %544 = arith.addf %542, %543 : vector<16x128xf32>
    %545 = arith.mulf %544, %537 : vector<16x128xf32>
    %cst_277 = arith.constant -0.284496725 : f32
    %546 = vector.broadcast %cst_277 : f32 to vector<16x128xf32>
    %547 = arith.addf %545, %546 : vector<16x128xf32>
    %548 = arith.mulf %547, %537 : vector<16x128xf32>
    %cst_278 = arith.constant 0.254829586 : f32
    %549 = vector.broadcast %cst_278 : f32 to vector<16x128xf32>
    %550 = arith.addf %548, %549 : vector<16x128xf32>
    %551 = arith.mulf %550, %537 : vector<16x128xf32>
    %cst_279 = arith.constant 0.000000e+00 : f32
    %552 = vector.broadcast %cst_279 : f32 to vector<16x128xf32>
    %553 = arith.subf %552, %531 : vector<16x128xf32>
    %554 = arith.mulf %553, %531 : vector<16x128xf32>
    %555 = math.exp %554 : vector<16x128xf32>
    %556 = arith.mulf %551, %555 : vector<16x128xf32>
    %cst_280 = arith.constant 1.000000e+00 : f32
    %557 = vector.broadcast %cst_280 : f32 to vector<16x128xf32>
    %558 = arith.subf %557, %556 : vector<16x128xf32>
    %559 = arith.mulf %530, %558 : vector<16x128xf32>
    %cst_281 = arith.constant 1.000000e+00 : f32
    %560 = vector.broadcast %cst_281 : f32 to vector<16x128xf32>
    %561 = arith.addf %560, %559 : vector<16x128xf32>
    %562 = arith.mulf %523, %561 : vector<16x128xf32>
    %563 = arith.truncf %562 : vector<16x128xf32> to vector<16x128xbf16>
    %c1_282 = arith.constant 1 : index
    %c0_283 = arith.constant 0 : index
    %c0_284 = arith.constant 0 : index
    %564 = vector.load %arg22[%c1_282, %c0_283, %c0_284] : memref<2x128x64xbf16, #tpu.memory_space<vmem>>, vector<1x128x64xbf16>
    %565 = vector.shape_cast %564 : vector<1x128x64xbf16> to vector<128x64xbf16>
    %cst_285 = arith.constant dense<0.000000e+00> : vector<16x64xf32>
    %566 = tpu.matmul %563, %565, %cst_285 {dimension_numbers = #tpu.dot_dimension_numbers<[1], [0], [0], [1], [0, 0, 1, 1], [], []>} : vector<16x128xbf16>, vector<128x64xbf16>, vector<16x64xf32> -> vector<16x64xf32>
    %567 = arith.addf %430, %566 : vector<16x64xf32>
    %c1_286 = arith.constant 1 : index
    %c0_287 = arith.constant 0 : index
    %c0_288 = arith.constant 0 : index
    %568 = vector.load %arg23[%c1_286, %c0_287, %c0_288] : memref<2x1x64xf32, #tpu.memory_space<vmem>>, vector<1x1x64xf32>
    %569 = vector.shape_cast %568 : vector<1x1x64xf32> to vector<1x64xf32>
    %570 = vector.broadcast %569 : vector<1x64xf32> to vector<16x64xf32>
    %571 = arith.addf %567, %570 : vector<16x64xf32>
    %c0_289 = arith.constant 0 : index
    %c0_290 = arith.constant 0 : index
    %572 = vector.load %arg25[%c0_289, %c0_290] : memref<1x128xf32, #tpu.memory_space<vmem>>, vector<1x128xf32>
    %573 = vector.extract_strided_slice %571 {offsets = [0, 0], sizes = [1, 64], strides = [1, 1]} : vector<16x64xf32> to vector<1x64xf32>
    %574 = arith.truncf %573 : vector<1x64xf32> to vector<1x64xbf16>
    %c0_291 = arith.constant 0 : index
    %c0_292 = arith.constant 0 : index
    %c0_293 = arith.constant 0 : index
    %575 = vector.load %arg24[%c0_291, %c0_292, %c0_293] : memref<16x64x128xbf16, #tpu.memory_space<vmem>>, vector<1x64x128xbf16>
    %576 = vector.shape_cast %575 : vector<1x64x128xbf16> to vector<64x128xbf16>
    %cst_294 = arith.constant dense<0.000000e+00> : vector<1x128xf32>
    %577 = tpu.matmul %574, %576, %cst_294 {dimension_numbers = #tpu.dot_dimension_numbers<[1], [0], [0], [1], [0, 0, 1, 1], [], []>} : vector<1x64xbf16>, vector<64x128xbf16>, vector<1x128xf32> -> vector<1x128xf32>
    %578 = arith.addf %572, %577 : vector<1x128xf32>
    %579 = vector.extract_strided_slice %571 {offsets = [1, 0], sizes = [1, 64], strides = [1, 1]} : vector<16x64xf32> to vector<1x64xf32>
    %580 = arith.truncf %579 : vector<1x64xf32> to vector<1x64xbf16>
    %c1_295 = arith.constant 1 : index
    %c0_296 = arith.constant 0 : index
    %c0_297 = arith.constant 0 : index
    %581 = vector.load %arg24[%c1_295, %c0_296, %c0_297] : memref<16x64x128xbf16, #tpu.memory_space<vmem>>, vector<1x64x128xbf16>
    %582 = vector.shape_cast %581 : vector<1x64x128xbf16> to vector<64x128xbf16>
    %cst_298 = arith.constant dense<0.000000e+00> : vector<1x128xf32>
    %583 = tpu.matmul %580, %582, %cst_298 {dimension_numbers = #tpu.dot_dimension_numbers<[1], [0], [0], [1], [0, 0, 1, 1], [], []>} : vector<1x64xbf16>, vector<64x128xbf16>, vector<1x128xf32> -> vector<1x128xf32>
    %584 = arith.addf %578, %583 : vector<1x128xf32>
    %585 = vector.extract_strided_slice %571 {offsets = [2, 0], sizes = [1, 64], strides = [1, 1]} : vector<16x64xf32> to vector<1x64xf32>
    %586 = arith.truncf %585 : vector<1x64xf32> to vector<1x64xbf16>
    %c2 = arith.constant 2 : index
    %c0_299 = arith.constant 0 : index
    %c0_300 = arith.constant 0 : index
    %587 = vector.load %arg24[%c2, %c0_299, %c0_300] : memref<16x64x128xbf16, #tpu.memory_space<vmem>>, vector<1x64x128xbf16>
    %588 = vector.shape_cast %587 : vector<1x64x128xbf16> to vector<64x128xbf16>
    %cst_301 = arith.constant dense<0.000000e+00> : vector<1x128xf32>
    %589 = tpu.matmul %586, %588, %cst_301 {dimension_numbers = #tpu.dot_dimension_numbers<[1], [0], [0], [1], [0, 0, 1, 1], [], []>} : vector<1x64xbf16>, vector<64x128xbf16>, vector<1x128xf32> -> vector<1x128xf32>
    %590 = arith.addf %584, %589 : vector<1x128xf32>
    %591 = vector.extract_strided_slice %571 {offsets = [3, 0], sizes = [1, 64], strides = [1, 1]} : vector<16x64xf32> to vector<1x64xf32>
    %592 = arith.truncf %591 : vector<1x64xf32> to vector<1x64xbf16>
    %c3 = arith.constant 3 : index
    %c0_302 = arith.constant 0 : index
    %c0_303 = arith.constant 0 : index
    %593 = vector.load %arg24[%c3, %c0_302, %c0_303] : memref<16x64x128xbf16, #tpu.memory_space<vmem>>, vector<1x64x128xbf16>
    %594 = vector.shape_cast %593 : vector<1x64x128xbf16> to vector<64x128xbf16>
    %cst_304 = arith.constant dense<0.000000e+00> : vector<1x128xf32>
    %595 = tpu.matmul %592, %594, %cst_304 {dimension_numbers = #tpu.dot_dimension_numbers<[1], [0], [0], [1], [0, 0, 1, 1], [], []>} : vector<1x64xbf16>, vector<64x128xbf16>, vector<1x128xf32> -> vector<1x128xf32>
    %596 = arith.addf %590, %595 : vector<1x128xf32>
    %597 = vector.extract_strided_slice %571 {offsets = [4, 0], sizes = [1, 64], strides = [1, 1]} : vector<16x64xf32> to vector<1x64xf32>
    %598 = arith.truncf %597 : vector<1x64xf32> to vector<1x64xbf16>
    %c4 = arith.constant 4 : index
    %c0_305 = arith.constant 0 : index
    %c0_306 = arith.constant 0 : index
    %599 = vector.load %arg24[%c4, %c0_305, %c0_306] : memref<16x64x128xbf16, #tpu.memory_space<vmem>>, vector<1x64x128xbf16>
    %600 = vector.shape_cast %599 : vector<1x64x128xbf16> to vector<64x128xbf16>
    %cst_307 = arith.constant dense<0.000000e+00> : vector<1x128xf32>
    %601 = tpu.matmul %598, %600, %cst_307 {dimension_numbers = #tpu.dot_dimension_numbers<[1], [0], [0], [1], [0, 0, 1, 1], [], []>} : vector<1x64xbf16>, vector<64x128xbf16>, vector<1x128xf32> -> vector<1x128xf32>
    %602 = arith.addf %596, %601 : vector<1x128xf32>
    %603 = vector.extract_strided_slice %571 {offsets = [5, 0], sizes = [1, 64], strides = [1, 1]} : vector<16x64xf32> to vector<1x64xf32>
    %604 = arith.truncf %603 : vector<1x64xf32> to vector<1x64xbf16>
    %c5 = arith.constant 5 : index
    %c0_308 = arith.constant 0 : index
    %c0_309 = arith.constant 0 : index
    %605 = vector.load %arg24[%c5, %c0_308, %c0_309] : memref<16x64x128xbf16, #tpu.memory_space<vmem>>, vector<1x64x128xbf16>
    %606 = vector.shape_cast %605 : vector<1x64x128xbf16> to vector<64x128xbf16>
    %cst_310 = arith.constant dense<0.000000e+00> : vector<1x128xf32>
    %607 = tpu.matmul %604, %606, %cst_310 {dimension_numbers = #tpu.dot_dimension_numbers<[1], [0], [0], [1], [0, 0, 1, 1], [], []>} : vector<1x64xbf16>, vector<64x128xbf16>, vector<1x128xf32> -> vector<1x128xf32>
    %608 = arith.addf %602, %607 : vector<1x128xf32>
    %609 = vector.extract_strided_slice %571 {offsets = [6, 0], sizes = [1, 64], strides = [1, 1]} : vector<16x64xf32> to vector<1x64xf32>
    %610 = arith.truncf %609 : vector<1x64xf32> to vector<1x64xbf16>
    %c6 = arith.constant 6 : index
    %c0_311 = arith.constant 0 : index
    %c0_312 = arith.constant 0 : index
    %611 = vector.load %arg24[%c6, %c0_311, %c0_312] : memref<16x64x128xbf16, #tpu.memory_space<vmem>>, vector<1x64x128xbf16>
    %612 = vector.shape_cast %611 : vector<1x64x128xbf16> to vector<64x128xbf16>
    %cst_313 = arith.constant dense<0.000000e+00> : vector<1x128xf32>
    %613 = tpu.matmul %610, %612, %cst_313 {dimension_numbers = #tpu.dot_dimension_numbers<[1], [0], [0], [1], [0, 0, 1, 1], [], []>} : vector<1x64xbf16>, vector<64x128xbf16>, vector<1x128xf32> -> vector<1x128xf32>
    %614 = arith.addf %608, %613 : vector<1x128xf32>
    %615 = vector.extract_strided_slice %571 {offsets = [7, 0], sizes = [1, 64], strides = [1, 1]} : vector<16x64xf32> to vector<1x64xf32>
    %616 = arith.truncf %615 : vector<1x64xf32> to vector<1x64xbf16>
    %c7 = arith.constant 7 : index
    %c0_314 = arith.constant 0 : index
    %c0_315 = arith.constant 0 : index
    %617 = vector.load %arg24[%c7, %c0_314, %c0_315] : memref<16x64x128xbf16, #tpu.memory_space<vmem>>, vector<1x64x128xbf16>
    %618 = vector.shape_cast %617 : vector<1x64x128xbf16> to vector<64x128xbf16>
    %cst_316 = arith.constant dense<0.000000e+00> : vector<1x128xf32>
    %619 = tpu.matmul %616, %618, %cst_316 {dimension_numbers = #tpu.dot_dimension_numbers<[1], [0], [0], [1], [0, 0, 1, 1], [], []>} : vector<1x64xbf16>, vector<64x128xbf16>, vector<1x128xf32> -> vector<1x128xf32>
    %620 = arith.addf %614, %619 : vector<1x128xf32>
    %621 = vector.extract_strided_slice %571 {offsets = [8, 0], sizes = [1, 64], strides = [1, 1]} : vector<16x64xf32> to vector<1x64xf32>
    %622 = arith.truncf %621 : vector<1x64xf32> to vector<1x64xbf16>
    %c8 = arith.constant 8 : index
    %c0_317 = arith.constant 0 : index
    %c0_318 = arith.constant 0 : index
    %623 = vector.load %arg24[%c8, %c0_317, %c0_318] : memref<16x64x128xbf16, #tpu.memory_space<vmem>>, vector<1x64x128xbf16>
    %624 = vector.shape_cast %623 : vector<1x64x128xbf16> to vector<64x128xbf16>
    %cst_319 = arith.constant dense<0.000000e+00> : vector<1x128xf32>
    %625 = tpu.matmul %622, %624, %cst_319 {dimension_numbers = #tpu.dot_dimension_numbers<[1], [0], [0], [1], [0, 0, 1, 1], [], []>} : vector<1x64xbf16>, vector<64x128xbf16>, vector<1x128xf32> -> vector<1x128xf32>
    %626 = arith.addf %620, %625 : vector<1x128xf32>
    %627 = vector.extract_strided_slice %571 {offsets = [9, 0], sizes = [1, 64], strides = [1, 1]} : vector<16x64xf32> to vector<1x64xf32>
    %628 = arith.truncf %627 : vector<1x64xf32> to vector<1x64xbf16>
    %c9 = arith.constant 9 : index
    %c0_320 = arith.constant 0 : index
    %c0_321 = arith.constant 0 : index
    %629 = vector.load %arg24[%c9, %c0_320, %c0_321] : memref<16x64x128xbf16, #tpu.memory_space<vmem>>, vector<1x64x128xbf16>
    %630 = vector.shape_cast %629 : vector<1x64x128xbf16> to vector<64x128xbf16>
    %cst_322 = arith.constant dense<0.000000e+00> : vector<1x128xf32>
    %631 = tpu.matmul %628, %630, %cst_322 {dimension_numbers = #tpu.dot_dimension_numbers<[1], [0], [0], [1], [0, 0, 1, 1], [], []>} : vector<1x64xbf16>, vector<64x128xbf16>, vector<1x128xf32> -> vector<1x128xf32>
    %632 = arith.addf %626, %631 : vector<1x128xf32>
    %633 = vector.extract_strided_slice %571 {offsets = [10, 0], sizes = [1, 64], strides = [1, 1]} : vector<16x64xf32> to vector<1x64xf32>
    %634 = arith.truncf %633 : vector<1x64xf32> to vector<1x64xbf16>
    %c10 = arith.constant 10 : index
    %c0_323 = arith.constant 0 : index
    %c0_324 = arith.constant 0 : index
    %635 = vector.load %arg24[%c10, %c0_323, %c0_324] : memref<16x64x128xbf16, #tpu.memory_space<vmem>>, vector<1x64x128xbf16>
    %636 = vector.shape_cast %635 : vector<1x64x128xbf16> to vector<64x128xbf16>
    %cst_325 = arith.constant dense<0.000000e+00> : vector<1x128xf32>
    %637 = tpu.matmul %634, %636, %cst_325 {dimension_numbers = #tpu.dot_dimension_numbers<[1], [0], [0], [1], [0, 0, 1, 1], [], []>} : vector<1x64xbf16>, vector<64x128xbf16>, vector<1x128xf32> -> vector<1x128xf32>
    %638 = arith.addf %632, %637 : vector<1x128xf32>
    %639 = vector.extract_strided_slice %571 {offsets = [11, 0], sizes = [1, 64], strides = [1, 1]} : vector<16x64xf32> to vector<1x64xf32>
    %640 = arith.truncf %639 : vector<1x64xf32> to vector<1x64xbf16>
    %c11 = arith.constant 11 : index
    %c0_326 = arith.constant 0 : index
    %c0_327 = arith.constant 0 : index
    %641 = vector.load %arg24[%c11, %c0_326, %c0_327] : memref<16x64x128xbf16, #tpu.memory_space<vmem>>, vector<1x64x128xbf16>
    %642 = vector.shape_cast %641 : vector<1x64x128xbf16> to vector<64x128xbf16>
    %cst_328 = arith.constant dense<0.000000e+00> : vector<1x128xf32>
    %643 = tpu.matmul %640, %642, %cst_328 {dimension_numbers = #tpu.dot_dimension_numbers<[1], [0], [0], [1], [0, 0, 1, 1], [], []>} : vector<1x64xbf16>, vector<64x128xbf16>, vector<1x128xf32> -> vector<1x128xf32>
    %644 = arith.addf %638, %643 : vector<1x128xf32>
    %645 = vector.extract_strided_slice %571 {offsets = [12, 0], sizes = [1, 64], strides = [1, 1]} : vector<16x64xf32> to vector<1x64xf32>
    %646 = arith.truncf %645 : vector<1x64xf32> to vector<1x64xbf16>
    %c12 = arith.constant 12 : index
    %c0_329 = arith.constant 0 : index
    %c0_330 = arith.constant 0 : index
    %647 = vector.load %arg24[%c12, %c0_329, %c0_330] : memref<16x64x128xbf16, #tpu.memory_space<vmem>>, vector<1x64x128xbf16>
    %648 = vector.shape_cast %647 : vector<1x64x128xbf16> to vector<64x128xbf16>
    %cst_331 = arith.constant dense<0.000000e+00> : vector<1x128xf32>
    %649 = tpu.matmul %646, %648, %cst_331 {dimension_numbers = #tpu.dot_dimension_numbers<[1], [0], [0], [1], [0, 0, 1, 1], [], []>} : vector<1x64xbf16>, vector<64x128xbf16>, vector<1x128xf32> -> vector<1x128xf32>
    %650 = arith.addf %644, %649 : vector<1x128xf32>
    %651 = vector.extract_strided_slice %571 {offsets = [13, 0], sizes = [1, 64], strides = [1, 1]} : vector<16x64xf32> to vector<1x64xf32>
    %652 = arith.truncf %651 : vector<1x64xf32> to vector<1x64xbf16>
    %c13 = arith.constant 13 : index
    %c0_332 = arith.constant 0 : index
    %c0_333 = arith.constant 0 : index
    %653 = vector.load %arg24[%c13, %c0_332, %c0_333] : memref<16x64x128xbf16, #tpu.memory_space<vmem>>, vector<1x64x128xbf16>
    %654 = vector.shape_cast %653 : vector<1x64x128xbf16> to vector<64x128xbf16>
    %cst_334 = arith.constant dense<0.000000e+00> : vector<1x128xf32>
    %655 = tpu.matmul %652, %654, %cst_334 {dimension_numbers = #tpu.dot_dimension_numbers<[1], [0], [0], [1], [0, 0, 1, 1], [], []>} : vector<1x64xbf16>, vector<64x128xbf16>, vector<1x128xf32> -> vector<1x128xf32>
    %656 = arith.addf %650, %655 : vector<1x128xf32>
    %657 = vector.extract_strided_slice %571 {offsets = [14, 0], sizes = [1, 64], strides = [1, 1]} : vector<16x64xf32> to vector<1x64xf32>
    %658 = arith.truncf %657 : vector<1x64xf32> to vector<1x64xbf16>
    %c14 = arith.constant 14 : index
    %c0_335 = arith.constant 0 : index
    %c0_336 = arith.constant 0 : index
    %659 = vector.load %arg24[%c14, %c0_335, %c0_336] : memref<16x64x128xbf16, #tpu.memory_space<vmem>>, vector<1x64x128xbf16>
    %660 = vector.shape_cast %659 : vector<1x64x128xbf16> to vector<64x128xbf16>
    %cst_337 = arith.constant dense<0.000000e+00> : vector<1x128xf32>
    %661 = tpu.matmul %658, %660, %cst_337 {dimension_numbers = #tpu.dot_dimension_numbers<[1], [0], [0], [1], [0, 0, 1, 1], [], []>} : vector<1x64xbf16>, vector<64x128xbf16>, vector<1x128xf32> -> vector<1x128xf32>
    %662 = arith.addf %656, %661 : vector<1x128xf32>
    %663 = vector.extract_strided_slice %571 {offsets = [15, 0], sizes = [1, 64], strides = [1, 1]} : vector<16x64xf32> to vector<1x64xf32>
    %664 = arith.truncf %663 : vector<1x64xf32> to vector<1x64xbf16>
    %c15 = arith.constant 15 : index
    %c0_338 = arith.constant 0 : index
    %c0_339 = arith.constant 0 : index
    %665 = vector.load %arg24[%c15, %c0_338, %c0_339] : memref<16x64x128xbf16, #tpu.memory_space<vmem>>, vector<1x64x128xbf16>
    %666 = vector.shape_cast %665 : vector<1x64x128xbf16> to vector<64x128xbf16>
    %cst_340 = arith.constant dense<0.000000e+00> : vector<1x128xf32>
    %667 = tpu.matmul %664, %666, %cst_340 {dimension_numbers = #tpu.dot_dimension_numbers<[1], [0], [0], [1], [0, 0, 1, 1], [], []>} : vector<1x64xbf16>, vector<64x128xbf16>, vector<1x128xf32> -> vector<1x128xf32>
    %668 = arith.addf %662, %667 : vector<1x128xf32>
    %c0_341 = arith.constant 0 : index
    %c0_342 = arith.constant 0 : index
    %c0_343 = arith.constant 0 : index
    %669 = vector.load %arg26[%c0_341, %c0_342, %c0_343] : memref<1x1x128xf32, #tpu.memory_space<vmem>>, vector<1x1x128xf32>
    %670 = vector.shape_cast %669 : vector<1x1x128xf32> to vector<1x128xf32>
    %671 = vector.shape_cast %668 : vector<1x128xf32> to vector<1x1x128xf32>
    tpu.vector_store %arg26[%c0_341, %c0_342, %c0_343], %671 {strides = array<i32>} : memref<1x1x128xf32, #tpu.memory_space<vmem>>, vector<1x1x128xf32>,
    return
  }
  func.func @transform_0(%arg0: i32) -> (i32, i32, i32) {
    %c0_i32 = arith.constant 0 : i32
    %c0_i32_0 = arith.constant 0 : i32
    %c0_i32_1 = arith.constant 0 : i32
    return %arg0, %c0_i32, %c0_i32_0 : i32, i32, i32
  }
  func.func @transform_1(%arg0: i32) -> (i32, i32) {
    %c0_i32 = arith.constant 0 : i32
    %c0_i32_0 = arith.constant 0 : i32
    %c0_i32_1 = arith.constant 0 : i32
    return %c0_i32, %c0_i32_0 : i32, i32
  }
  func.func @transform_2(%arg0: i32) -> (i32, i32) {
    %c0_i32 = arith.constant 0 : i32
    %c0_i32_0 = arith.constant 0 : i32
    %c0_i32_1 = arith.constant 0 : i32
    return %c0_i32, %c0_i32_0 : i32, i32
  }
  func.func @transform_3(%arg0: i32) -> (i32, i32, i32) {
    %c0_i32 = arith.constant 0 : i32
    %c0_i32_0 = arith.constant 0 : i32
    %c0_i32_1 = arith.constant 0 : i32
    %c0_i32_2 = arith.constant 0 : i32
    return %c0_i32, %c0_i32_0, %c0_i32_1 : i32, i32, i32
  }
  func.func @transform_4(%arg0: i32) -> (i32, i32, i32) {
    %c0_i32 = arith.constant 0 : i32
    %c0_i32_0 = arith.constant 0 : i32
    %c0_i32_1 = arith.constant 0 : i32
    %c0_i32_2 = arith.constant 0 : i32
    return %c0_i32, %c0_i32_0, %c0_i32_1 : i32, i32, i32
  }
  func.func @transform_5(%arg0: i32) -> (i32, i32, i32) {
    %c0_i32 = arith.constant 0 : i32
    %c0_i32_0 = arith.constant 0 : i32
    %c0_i32_1 = arith.constant 0 : i32
    %c0_i32_2 = arith.constant 0 : i32
    return %c0_i32, %c0_i32_0, %c0_i32_1 : i32, i32, i32
  }
  func.func @transform_6(%arg0: i32) -> (i32, i32, i32) {
    %c0_i32 = arith.constant 0 : i32
    %c0_i32_0 = arith.constant 0 : i32
    %c0_i32_1 = arith.constant 0 : i32
    %c0_i32_2 = arith.constant 0 : i32
    return %c0_i32, %c0_i32_0, %c0_i32_1 : i32, i32, i32
  }
  func.func @transform_7(%arg0: i32) -> (i32, i32, i32) {
    %c0_i32 = arith.constant 0 : i32
    %c0_i32_0 = arith.constant 0 : i32
    %c0_i32_1 = arith.constant 0 : i32
    %c0_i32_2 = arith.constant 0 : i32
    return %c0_i32, %c0_i32_0, %c0_i32_1 : i32, i32, i32
  }
  func.func @transform_8(%arg0: i32) -> (i32, i32, i32) {
    %c0_i32 = arith.constant 0 : i32
    %c0_i32_0 = arith.constant 0 : i32
    %c0_i32_1 = arith.constant 0 : i32
    %c0_i32_2 = arith.constant 0 : i32
    return %c0_i32, %c0_i32_0, %c0_i32_1 : i32, i32, i32
  }
  func.func @transform_9(%arg0: i32) -> (i32, i32, i32) {
    %c0_i32 = arith.constant 0 : i32
    %c0_i32_0 = arith.constant 0 : i32
    %c0_i32_1 = arith.constant 0 : i32
    %c0_i32_2 = arith.constant 0 : i32
    return %c0_i32, %c0_i32_0, %c0_i32_1 : i32, i32, i32
  }
  func.func @transform_10(%arg0: i32) -> (i32, i32, i32) {
    %c0_i32 = arith.constant 0 : i32
    %c0_i32_0 = arith.constant 0 : i32
    %c0_i32_1 = arith.constant 0 : i32
    %c0_i32_2 = arith.constant 0 : i32
    return %c0_i32, %c0_i32_0, %c0_i32_1 : i32, i32, i32
  }
  func.func @transform_11(%arg0: i32) -> (i32, i32, i32) {
    %c0_i32 = arith.constant 0 : i32
    %c0_i32_0 = arith.constant 0 : i32
    %c0_i32_1 = arith.constant 0 : i32
    %c0_i32_2 = arith.constant 0 : i32
    return %c0_i32, %c0_i32_0, %c0_i32_1 : i32, i32, i32
  }
  func.func @transform_12(%arg0: i32) -> (i32, i32, i32) {
    %c0_i32 = arith.constant 0 : i32
    %c0_i32_0 = arith.constant 0 : i32
    %c0_i32_1 = arith.constant 0 : i32
    %c0_i32_2 = arith.constant 0 : i32
    return %c0_i32, %c0_i32_0, %c0_i32_1 : i32, i32, i32
  }
  func.func @transform_13(%arg0: i32) -> (i32, i32, i32) {
    %c0_i32 = arith.constant 0 : i32
    %c0_i32_0 = arith.constant 0 : i32
    %c0_i32_1 = arith.constant 0 : i32
    %c0_i32_2 = arith.constant 0 : i32
    return %c0_i32, %c0_i32_0, %c0_i32_1 : i32, i32, i32
  }
  func.func @transform_14(%arg0: i32) -> (i32, i32, i32) {
    %c0_i32 = arith.constant 0 : i32
    %c0_i32_0 = arith.constant 0 : i32
    %c0_i32_1 = arith.constant 0 : i32
    %c0_i32_2 = arith.constant 0 : i32
    return %c0_i32, %c0_i32_0, %c0_i32_1 : i32, i32, i32
  }
  func.func @transform_15(%arg0: i32) -> (i32, i32, i32) {
    %c0_i32 = arith.constant 0 : i32
    %c0_i32_0 = arith.constant 0 : i32
    %c0_i32_1 = arith.constant 0 : i32
    %c0_i32_2 = arith.constant 0 : i32
    return %c0_i32, %c0_i32_0, %c0_i32_1 : i32, i32, i32
  }
  func.func @transform_16(%arg0: i32) -> (i32, i32, i32) {
    %c0_i32 = arith.constant 0 : i32
    %c0_i32_0 = arith.constant 0 : i32
    %c0_i32_1 = arith.constant 0 : i32
    %c0_i32_2 = arith.constant 0 : i32
    return %c0_i32, %c0_i32_0, %c0_i32_1 : i32, i32, i32
  }
  func.func @transform_17(%arg0: i32) -> (i32, i32, i32) {
    %c0_i32 = arith.constant 0 : i32
    %c0_i32_0 = arith.constant 0 : i32
    %c0_i32_1 = arith.constant 0 : i32
    %c0_i32_2 = arith.constant 0 : i32
    return %c0_i32, %c0_i32_0, %c0_i32_1 : i32, i32, i32
  }
  func.func @transform_18(%arg0: i32) -> (i32, i32, i32) {
    %c0_i32 = arith.constant 0 : i32
    %c0_i32_0 = arith.constant 0 : i32
    %c0_i32_1 = arith.constant 0 : i32
    %c0_i32_2 = arith.constant 0 : i32
    return %c0_i32, %c0_i32_0, %c0_i32_1 : i32, i32, i32
  }
  func.func @transform_19(%arg0: i32) -> (i32, i32, i32) {
    %c0_i32 = arith.constant 0 : i32
    %c0_i32_0 = arith.constant 0 : i32
    %c0_i32_1 = arith.constant 0 : i32
    %c0_i32_2 = arith.constant 0 : i32
    return %c0_i32, %c0_i32_0, %c0_i32_1 : i32, i32, i32
  }
  func.func @transform_20(%arg0: i32) -> (i32, i32, i32) {
    %c0_i32 = arith.constant 0 : i32
    %c0_i32_0 = arith.constant 0 : i32
    %c0_i32_1 = arith.constant 0 : i32
    %c0_i32_2 = arith.constant 0 : i32
    return %c0_i32, %c0_i32_0, %c0_i32_1 : i32, i32, i32
  }
  func.func @transform_21(%arg0: i32) -> (i32, i32, i32) {
    %c0_i32 = arith.constant 0 : i32
    %c0_i32_0 = arith.constant 0 : i32
    %c0_i32_1 = arith.constant 0 : i32
    %c0_i32_2 = arith.constant 0 : i32
    return %c0_i32, %c0_i32_0, %c0_i32_1 : i32, i32, i32
  }
  func.func @transform_22(%arg0: i32) -> (i32, i32, i32) {
    %c0_i32 = arith.constant 0 : i32
    %c0_i32_0 = arith.constant 0 : i32
    %c0_i32_1 = arith.constant 0 : i32
    %c0_i32_2 = arith.constant 0 : i32
    return %c0_i32, %c0_i32_0, %c0_i32_1 : i32, i32, i32
  }
  func.func @transform_23(%arg0: i32) -> (i32, i32, i32) {
    %c0_i32 = arith.constant 0 : i32
    %c0_i32_0 = arith.constant 0 : i32
    %c0_i32_1 = arith.constant 0 : i32
    %c0_i32_2 = arith.constant 0 : i32
    return %c0_i32, %c0_i32_0, %c0_i32_1 : i32, i32, i32
  }
  func.func @transform_24(%arg0: i32) -> (i32, i32) {
    %c0_i32 = arith.constant 0 : i32
    %c0_i32_0 = arith.constant 0 : i32
    %c0_i32_1 = arith.constant 0 : i32
    return %c0_i32, %c0_i32_0 : i32, i32
  }
  func.func @transform_25(%arg0: i32) -> (i32, i32, i32) {
    %c0_i32 = arith.constant 0 : i32
    %c0_i32_0 = arith.constant 0 : i32
    %c0_i32_1 = arith.constant 0 : i32
    return %arg0, %c0_i32, %c0_i32_0 : i32, i32, i32
  }
}

</mosaic_0001>

<bundles_post_ra>
// kernel: mlp_mixer_forward.1
= control target key start
LH: loop header
LB: loop body
LE: loop exit
PB: predicated region body
PF: predicated region fallthrough
CT: control target
= control target key end

     0   :  { %s6978_s0 = inlined_call_operand.vmem [shape: f32[2,16,64], index: 0, kind: input, shape index: {}]   ;;  %s6979_s1 = inlined_call_operand.vmem [shape: bf16[64,64], index: 1, kind: input, shape index: {}]   ;;  %s6980_s2 = inlined_call_operand.vmem [shape: f32[1,64], index: 2, kind: input, shape index: {}]   ;;  %s6981_s3 = inlined_call_operand.vmem [shape: f32[2,1,64], index: 3, kind: input, shape index: {}]   ;;  %s6982_s4 = inlined_call_operand.vmem [shape: f32[2,1,64], index: 4, kind: input, shape index: {}]   ;;  %s6983_s5 = inlined_call_operand.vmem [shape: bf16[2,32,16], index: 5, kind: input, shape index: {}]   ;;  %s6984_s6 = inlined_call_operand.vmem [shape: f32[2,32,1], index: 6, kind: input, shape index: {}]   ;;  %s6985_s7 = inlined_call_operand.vmem [shape: bf16[2,16,32], index: 7, kind: input, shape index: {}]   ;;  %s6986_s8 = inlined_call_operand.vmem [shape: f32[2,16,1], index: 8, kind: input, shape index: {}]   ;;  %s6987_s9 = inlined_call_operand.vmem [shape: bf16[2,32,16], index: 9, kind: input, shape index: {}]   ;;  %s6988_s10 = inlined_call_operand.vmem [shape: f32[2,32,1], index: 10, kind: input, shape index: {}]   ;;  %s6989_s11 = inlined_call_operand.vmem [shape: bf16[2,16,32], index: 11, kind: input, shape index: {}]   ;;  %s6990_s12 = inlined_call_operand.vmem [shape: f32[2,16,1], index: 12, kind: input, shape index: {}]   ;;  %s6991_s13 = inlined_call_operand.vmem [shape: f32[2,1,64], index: 13, kind: input, shape index: {}]   ;;  %s6992_s14 = inlined_call_operand.vmem [shape: f32[2,1,64], index: 14, kind: input, shape index: {}]   ;;  %s6993_s15 = inlined_call_operand.vmem [shape: bf16[2,64,128], index: 15, kind: input, shape index: {}]   ;;  %s6994_s16 = inlined_call_operand.vmem [shape: f32[2,1,128], index: 16, kind: input, shape index: {}]   ;;  %s6995_s17 = inlined_call_operand.vmem [shape: bf16[2,128,64], index: 17, kind: input, shape index: {}]   ;;  %s6996_s18 = inlined_call_operand.vmem [shape: f32[2,1,64], index: 18, kind: input, shape index: {}]   ;;  %s6997_s19 = inlined_call_operand.vmem [shape: bf16[2,64,128], index: 19, kind: input, shape index: {}]   ;;  %s6998_s20 = inlined_call_operand.vmem [shape: f32[2,1,128], index: 20, kind: input, shape index: {}]   ;;  %s6999_s21 = inlined_call_operand.vmem [shape: bf16[2,128,64], index: 21, kind: input, shape index: {}]   ;;  %s7000_s22 = inlined_call_operand.vmem [shape: f32[2,1,64], index: 22, kind: input, shape index: {}]   ;;  %s7001_s23 = inlined_call_operand.vmem [shape: bf16[16,64,128], index: 23, kind: input, shape index: {}]   ;;  %s7002_s24 = inlined_call_operand.vmem [shape: f32[1,128], index: 24, kind: input, shape index: {}]   ;;  %s7003_s25 = inlined_call_operand.hbm [shape: f32[2,1,128], index: 25, kind: output, shape index: {}]  }
   0x1   :  { %7028 = sst [smem:[#allocation14_spill]] %s6978_s0 }
   0x2   :  { %7029 = sst [smem:[#allocation15_spill]] %s6979_s1 }
   0x3   :  { %7030 = sst [smem:[#allocation16_spill]] %s6980_s2 }
   0x4   :  { %7031 = sst [smem:[#allocation17_spill]] %s6981_s3 }
   0x5   :  { %7032 = sst [smem:[#allocation18_spill]] %s6982_s4 }
   0x6   :  { %7033 = sst [smem:[#allocation19_spill]] %s6983_s5 }
   0x7   :  { %7034 = sst [smem:[#allocation20_spill]] %s6984_s6 }
   0x8   :  { %7035 = sst [smem:[#allocation21_spill]] %s6985_s7 }
   0x9   :  { %7036 = sst [smem:[#allocation22_spill]] %s6986_s8 }
   0xa   :  { %7037 = sst [smem:[#allocation23_spill]] %s6987_s9 }
   0xb   :  { %7038 = sst [smem:[#allocation24_spill]] %s7002_s24 }
   0xc   :  { %7039 = sst [smem:[#allocation25_spill]] %s7003_s25 }
   0xd   :  { %30 = vsyncpa [#allocation3], 0 }
   0xe   :  { %32 = vsyncpa [#allocation3 + $0x1], 0  ;;  %s5897_s29 = smov 0   ;;  %s5899_s2 = smov 0  }
   0xf   :  { %s5901_s6 = smov 0   ;;  %s5903_s30 = smov 0  }
  0x10 LB: > { %7040 = sst [smem:[#allocation5_spill]] %s5748_s29  ;;  %s5918_s7 = sadd.s32 4294967295, %s5760_s30   ;;  %s5760_s30 = sphi %s5903_s30, %s7073_s30   ;;  %s5756_s6 = sphi %s5901_s6, %s7076_s6   ;;  %s5752_s2 = sphi %s5899_s2, %s7075_s2   ;;  %s5748_s29 = sphi %s5897_s29, %s7074_s29  }
  0x11   : > { %7041 = sst [smem:[#allocation6_spill]] %s5752_s2  ;;  %s4474_s3 = sadd.s32 4294967294, %s5760_s30  }
  0x12   : > { %7042 = sst [smem:[#allocation7_spill]] %s5756_s6  ;;  %s5922_s26 = sadd.s32 1, %s5760_s30  }
  0x13   : > { %7043 = sst [smem:[#allocation8_spill]] %s5760_s30  ;;  %s575_s1 = sadd.s32 1, %s5756_s6 }
  0x14   : > { %7044 = sst [smem:[#allocation9_spill]] %s5918_s7  ;;  %s572_s8 = ssub.s32 %s5760_s30, %s5922_s26 }
  0x15   : > { %7045 = sst [smem:[#allocation10_spill]] %s5922_s26  ;;  %p585_p0 = scmp.ne.s32.totalorder %s5756_s6, %s5752_s2 }
  0x16   : > { %p573_p1 = scmp.eq.s32.totalorder %s572_s8, 0  ;;  %p586_p2 = scmp.eq.s32.totalorder %s5918_s7, 1 }
  0x17   : > { %p591_p3 = scmp.ne.s32.totalorder %s5752_s2, %s5748_s29  ;;  %p592_p4 = scmp.eq.s32.totalorder %s4474_s3, 1 }
  0x18   : > { %s5933_s27 = scalar_select %p573_p1, %s5756_s6, %s575_s1  }
  0x19   : > { %p5935_p5 = por %p586_p2, %p585_p0  ;;  %p5939_p6 = por %p592_p4, %p591_p3 }
  0x1a   : > { %7046 = sst [smem:[#allocation11_spill]] %s5933_s27  ;;  %p4477_p7 = scmp.ge.s32.totalorder %s5760_s30, 1 }
  0x1b   : > { %s7047_s4 = scalar_select %p5935_p5, 1, 0 }
  0x1c   : > { %s7049_s28 = scalar_select %p5939_p6, 1, 0 }
  0x1d   : > { %7048 = sst [smem:[#allocation12_spill]] %s7047_s4  ;;  %p690_p8 = scmp.lt.s32.totalorder %s5760_s30, 3 }
  0x1e   : > { %7050 = sst [smem:[#allocation13_spill]] %s7049_s28 }
  0x1f   : > { %p691_p9 = pnand %p4477_p7, %p690_p8 }
  0x20   : > { %s7051_s0 = sld [smem:[#allocation15_spill]] (!%p691_p9)  ;;  %p757_p10 = scmp.lt.s32.totalorder (!%p691_p9), %s5918_s7, 1 }
  0x21   : > { %694 = sbr.rel (%p691_p9) target bundleno = 4931 (0x1343), region = 120  ;;  %s7052_s3 = sld [smem:[#allocation14_spill]] (!%p691_p9) }
  0x22   : > { %s7056_s26 = sld [smem:[#allocation22_spill]] (!%p691_p9) }
  0x23   : > { %s7057_s29 = sld [smem:[#allocation17_spill]] (!%p691_p9) }
  0x24   : > { %s7059_s30 = sld [smem:[#allocation18_spill]] (!%p691_p9) }
  0x25   : > { %s7064_s6 = sld [smem:[#allocation24_spill]] (!%p691_p9) }
  0x26   : > { %v5460_v0 = vld [vmem:[%s7051_s0 + $0x18] sm:$0xff]   ;;  %v5762_v1 = vmov 0.0   ;;  %v5461_v2 = vld [vmem:[%s7051_s0 + $0x10] sm:$0xff]   ;;  %vm5763_vm0 = vmmov 0   ;;  %s758_s8 = scalar_select %p757_p10, %s5918_s7, 1  ;;  %v5462_v3 = vld [vmem:[%s7051_s0 + $0x8] sm:$0xff]  }
  0x27   : > { %5027 = vmatprep.subr.bf16.mxu0 %v5762_v1  ;;  %5035 = vmatprep.mubr.msk.bf16.mxu0 %vm5763_vm0, %v5762_v1  ;;  %v5463_v4 = vld [vmem:[%s7051_s0] sm:$0xff]   ;;  %vm805_vm1 = vcmask 523264   ;;  %vm938_vm2 = vcmask 130048   ;;  %v5764_v23 = vmov 0   ;;  %v1174_v26 = vld [vmem:[%s6988_s10 + $0x8] sm:$0xff]  ;;  %v1175_v31 = vld [vmem:[%s6988_s10 + $0x10] sm:$0xff] }
  0x28   : > { %5028 = vmatpush3.bf16.msra.mxu0 %v5460_v0  ;;  %s4861_s27 = sshll.u32 %s758_s8, 4  ;;  %s7054_s8 = sld [smem:[#allocation19_spill]]  ;;  %5459 = vset.pattern.permute.xlu1 %v5764_v23  ;;  %v1426_v28 = vld [vmem:[%s6990_s12 + $0x8] sm:$0xff]  ;;  %v1106_v29 = vld [vmem:[%s7056_s26] sm:$0xff]  ;;  %v1176_v32 = vld [vmem:[%s6988_s10 + $0x18] sm:$0xff]  ;;  %vm1123_vm7 = vcmask 261120  }
  0x29   : > { %5029 = vmatprep.subr.bf16.mxu0 %v5762_v1  ;;  %s761_s1 = scalar_lea.vmem %s7052_s3, %s4861_s27  ;;  %s7053_s27 = sld [smem:[#allocation16_spill]]  ;;  %5458 = vset.pattern.permute.xlu0 %v5764_v23  ;;  %v1107_v30 = vld [vmem:[%s7056_s26 + $0x8] sm:$0xff]  ;;  %v1173_v33 = vld [vmem:[%s6988_s10] sm:$0xff] }
  0x2a   : > { %v763_v5 = vld [vmem:[%s761_s1] sm:$0xff]  ;;  %v764_v6 = vld [vmem:[%s761_s1 + $0x8] sm:$0xff]  ;;  %s7055_s3 = sld [smem:[#allocation20_spill]]  ;;  %s7058_s28 = smov %s7057_s29 }
  0x2b   : > { %v765_v7 = vpack.c.bf16 %v764_v6, %v763_v5  ;;  %v1425_v34 = vld [vmem:[%s6990_s12] sm:$0xff]  ;;  %s7060_s0 = smov %s7059_s30  ;;  %s7063_s1 = sld [smem:[#allocation23_spill]] }
  0x2c   : > { %5030 = vmatpush3.bf16.msra.mxu0 %v5461_v2  ;;  %v4486_v52 = vld [vmem:[%s7057_s29] ss:$0 sm:$0xff]  ;;  %s7061_s29 = sld [smem:[#allocation21_spill]] }
  0x2d   : > { %5031 = vmatprep.subr.bf16.mxu0 %v5762_v1  ;;  %v4487_v57 = vld [vmem:[%s7059_s30] ss:$0 sm:$0xff]  ;;  %s7065_s25 = sld [smem:[#allocation6_spill]] }
  0x2e   : > { %v5464_v21 = vld [vmem:[%s7054_s8] sm:$0xff]   ;;  %v5465_v62 = vld [vmem:[%s7054_s8 + $0x8] sm:$0xff]  }
  0x2f   : > { %v4480_v8 = vld [vmem:[%s7053_s27] ss:$0 sm:$0xff]  ;;  %5041 = vmatprep.mubr.msk.bf16.mxu1 %vm938_vm2, %v5464_v21  ;;  %s7066_s27 = sld [smem:[#allocation9_spill]] }
  0x30   : > { %5032 = vmatpush3.bf16.msra.mxu0 %v5462_v3  ;;  %v907_v22 = vld [vmem:[%s7055_s3 + $0x18] sm:$0xff]  ;;  %v906_v24 = vld [vmem:[%s7055_s3 + $0x10] sm:$0xff]  ;;  %v904_v25 = vld [vmem:[%s7055_s3] sm:$0xff] }
  0x31   : > { %5033 = vmatprep.subr.bf16.mxu0 %v5762_v1  ;;  %v905_v27 = vld [vmem:[%s7055_s3 + $0x8] sm:$0xff] }
  0x32   : > { %s7062_s9 = smov %s7061_s29 }
  0x34   : > { %5034 = vmatpush3.bf16.msra.mxu0 %v5463_v4 }
  0x35   : > { %5059 = vmatprep.subr.bf16.mxu0 %v5762_v1  ;;  %s4858_s4 = sshll.u32 %s7066_s27, 4 }
  0x37   : > { %5036 = vmatmul.mubr.msk.bf16.vlgmr.msra.gmra.mxu0 %vm805_vm1, %v765_v7 }
  0x38   : > { %5063 = vmatprep.mubr.msk.bf16.mxu0 %vm5763_vm0, %v5762_v1 }
  0xf7   : > { %v843_v9 = vpop.f32.mrf.mxu0 }
  0xf8   : > { %v5975_v10 = vadd.f32 %v4480_v8, %v843_v9 }
  0xf9   : > { %v5037_v11 = vpop.f32.mrf.mxu0 }
  0xfa   : > { %v852_v12 = vsel %vm805_vm1, %v5975_v10, 0.0  ;;  %v861_v13 = vmul.f32 %v5975_v10, %v5975_v10 }
  0xfb   : > { %853 = vadd.xlane.f32.xlu0 %v852_v12  ;;  %v846_v14 = vpop.f32.mrf.mxu0 }
  0xfc   : > { %v5981_v15 = vadd.f32 %v4480_v8, %v846_v14  ;;  %v863_v16 = vsel %vm805_vm1, %v861_v13, 0.0 }
  0xfd   : > { %864 = vadd.xlane.f32.xlu1 %v863_v16  ;;  %v5038_v17 = vpop.f32.mrf.mxu0 }
  0xfe   : > { %v855_v18 = vsel %vm805_vm1, %v5981_v15, 0.0  ;;  %v862_v19 = vmul.f32 %v5981_v15, %v5981_v15 }
  0xff   : > { %856 = vadd.xlane.f32.xlu0 %v855_v18 }
 0x100   : > { %v866_v20 = vsel %vm805_vm1, %v862_v19, 0.0 }
 0x101   : > { %867 = vadd.xlane.f32.xlu1 %v866_v20 }
 0x112   : > { %925 = vperm.xlu1 %5459, %v907_v22  }
 0x115   : > { %920 = vperm.xlu0 %5458, %v906_v24  }
 0x116   : > { %910 = vperm.xlu1 %5459, %v904_v25  }
 0x119   : > { %1184 = vperm.xlu0 %5458, %v1174_v26  }
 0x11a   : > { %915 = vperm.xlu1 %5459, %v905_v27  }
 0x11d   : > { %1434 = vperm.xlu0 %5458, %v1426_v28  }
 0x11e   : > { %1110 = vperm.xlu1 %5459, %v1106_v29  }
 0x122   : > { %1115 = vperm.xlu1 %5459, %v1107_v30  }
 0x126   : > { %1189 = vperm.xlu1 %5459, %v1175_v31  }
 0x12a   : > { %1194 = vperm.xlu1 %5459, %v1176_v32  }
 0x12e   : > { %1179 = vperm.xlu1 %5459, %v1173_v33  }
 0x132   : > { %1429 = vperm.xlu1 %5459, %v1425_v34  }
 0x184   : > { %v854_v35 = vpop.xlane.xlu0 %853 }
 0x185   : > { %v859_v36 = vmul.f32 0.015625, %v854_v35 }
 0x186   : > { %v865_v37 = vpop.xlane.xlu1 %864 }
 0x187   : > { %v871_v38 = vmul.f32 %v859_v36, %v859_v36  ;;  %v869_v39 = vmul.f32 0.015625, %v865_v37  ;;  %v875_v49 = vsub.f32 %v5975_v10, %v859_v36 }
 0x188   : > { %v857_v40 = vpop.xlane.xlu0 %856 }
 0x189   : > { %v873_v41 = vsub.f32 %v869_v39, %v871_v38  ;;  %v860_v42 = vmul.f32 0.015625, %v857_v40 }
 0x18a   : > { %v868_v43 = vpop.xlane.xlu1 %867 }
 0x18b   : > { %v877_v44 = vadd.f32 1e-05, %v873_v41  ;;  %v872_v45 = vmul.f32 %v860_v42, %v860_v42  ;;  %v870_v46 = vmul.f32 0.015625, %v868_v43  ;;  %v876_v53 = vsub.f32 %v5981_v15, %v860_v42 }
 0x18d   : > { %5588 = vrsqrt.f32 %v877_v44  ;;  %v874_v47 = vsub.f32 %v870_v46, %v872_v45 }
 0x18e   : > { %v926_v63 = vpop.permute.xlu1 %925 }
 0x18f   : > { %v878_v48 = vadd.f32 1e-05, %v874_v47 }
 0x190   : > { %v921_v0 = vpop.permute.xlu0 %920 }
 0x191   : > { %5590 = vrsqrt.f32 %v878_v48 }
 0x192   : > { %v911_v3 = vpop.permute.xlu1 %910 }
 0x196   : > { %v916_v14 = vpop.permute.xlu1 %915 }
 0x19a   : > { %v5589_v50 = vpop.eup %5588 }
 0x19b   : > { %v881_v51 = vmul.f32 %v5589_v50, %v875_v49 }
 0x19d   : > { %v889_v56 = vmul.f32 %v4486_v52, %v881_v51 }
 0x19e   : > { %v5591_v54 = vpop.eup %5590 }
 0x19f   : > { %v882_v55 = vmul.f32 %v5591_v54, %v876_v53  ;;  %v897_v59 = vadd.f32 %v4487_v57, %v889_v56 }
 0x1a1   : > { %v890_v58 = vmul.f32 %v4486_v52, %v882_v55 }
 0x1a3   : > { %v898_v60 = vadd.f32 %v4487_v57, %v890_v58 }
 0x1a5   : > { %v903_v61 = vpack.c.bf16 %v898_v60, %v897_v59 }
 0x1a7   : > { %5039 = vmatprep.subr.bf16.mxu1 %v903_v61 }
 0x1a8   : > { %5040 = vmatpush3.bf16.msra.mxu1 %v903_v61 }
 0x1a9   : > { %5045 = vmatprep.subr.bf16.mxu1 %v5762_v1 }
 0x1ab   : > { %5042 = vmatmul.mubr.msk.bf16.vlgmr.msra.gmra.mxu1 %vm938_vm2, %v5465_v62 }
 0x1ac   : > { %5049 = vmatprep.mubr.msk.bf16.mxu1 %vm5763_vm0, %v5762_v1 }
 0x26b   : > { %v5043_v2 = vpop.f32.mrf.mxu1 }
 0x26c   : > { %v6044_v4 = vadd.f32 %v5043_v2, %v921_v0 }
 0x26d   : > { %v979_v5 = vpop.f32.mrf.mxu1 }
 0x26e   : > { %v6047_v6 = vmul.f32 0.70710677, %v6044_v4  ;;  %v6049_v7 = vadd.f32 %v979_v5, %v911_v3 }
 0x26f   : > { %v5044_v8 = vpop.f32.mrf.mxu1 }
 0x270   : > { %v1012_v9 = vand.u32 2147483647, %v6047_v6  ;;  %v6053_v11 = vmul.f32 0.70710677, %v6049_v7  ;;  %v6055_v12 = vadd.f32 %v5044_v8, %v926_v63  ;;  %vm1004_vm3 = vcmp.ge.f32.partialorder %v6047_v6, 0.0 }
 0x271   : > { %v982_v13 = vpop.f32.mrf.mxu1 }
 0x272   : > { %v1016_v16 = vmul.f32 0.3275911, %v1012_v9  ;;  %v1010_v17 = vand.u32 2147483647, %v6053_v11  ;;  %v6059_v18 = vmul.f32 0.70710677, %v6055_v12  ;;  %v6061_v19 = vadd.f32 %v982_v13, %v916_v14 }
 0x273   : > { %v1068_v29 = vsub.f32 0.0, %v1012_v9  ;;  %vm1002_vm4 = vcmp.ge.f32.partialorder %v6053_v11, 0.0 }
 0x274   : > { %v1020_v20 = vadd.f32 1.0, %v1016_v16  ;;  %v1014_v21 = vmul.f32 0.3275911, %v1010_v17  ;;  %v1013_v22 = vand.u32 2147483647, %v6059_v18  ;;  %v1066_v31 = vsub.f32 0.0, %v1010_v17 }
 0x275   : > { %v6065_v23 = vmul.f32 0.70710677, %v6061_v19  ;;  %v1072_v32 = vmul.f32 %v1068_v29, %v1012_v9  ;;  %vm1005_vm5 = vcmp.ge.f32.partialorder %v6059_v18, 0.0 }
 0x276   : > { %5592 = vrcp.f32 %v1020_v20  ;;  %v1018_v24 = vadd.f32 1.0, %v1014_v21  ;;  %v1017_v25 = vmul.f32 0.3275911, %v1013_v22  ;;  %v1069_v33 = vsub.f32 0.0, %v1013_v22 }
 0x277   : > { %v1011_v26 = vand.u32 2147483647, %v6065_v23  ;;  %v1070_v35 = vmul.f32 %v1066_v31, %v1010_v17  ;;  %v1078_v37 = vmul.f32 1.442695, %v1072_v32  ;;  %vm1003_vm6 = vcmp.ge.f32.partialorder %v6065_v23, 0.0 }
 0x278   : > { %5594 = vrcp.f32 %v1018_v24  ;;  %v1021_v27 = vadd.f32 1.0, %v1017_v25  ;;  %v1073_v39 = vmul.f32 %v1069_v33, %v1013_v22  ;;  %v5765_v33 = vmov -1.0  }
 0x279   : > { %v1015_v28 = vmul.f32 0.3275911, %v1011_v26  ;;  %v1067_v38 = vsub.f32 0.0, %v1011_v26  ;;  %v1074_v43 = vmul.f32 1.442695, %v1070_v35  ;;  %v1008_v35 = vsel %vm1004_vm3, 1.0, %v5765_v33 }
 0x27a   : > { %5596 = vrcp.f32 %v1021_v27  ;;  %v1080_v49 = vmul.f32 1.442695, %v1073_v39  ;;  %v994_v23 = vmul.f32 0.5, %v6049_v7  ;;  %v1111_v7 = vpop.permute.xlu1 %1110 }
 0x27b   : > { %v1019_v30 = vadd.f32 1.0, %v1015_v28  ;;  %v1071_v46 = vmul.f32 %v1067_v38, %v1011_v26 }
 0x27d   : > { %5598 = vrcp.f32 %v1019_v30  ;;  %v1076_v56 = vmul.f32 1.442695, %v1071_v46 }
 0x27e   : > { %5600 = vpow2.f32 %v1078_v37 }
 0x27f   : > { %5602 = vpow2.f32 %v1074_v43 }
 0x280   : > { %5604 = vpow2.f32 %v1080_v49  ;;  %v1007_v49 = vsel %vm1003_vm6, 1.0, %v5765_v33 }
 0x281   : > { %5606 = vpow2.f32 %v1076_v56 }
 0x283   : > { %v5593_v34 = vpop.eup %5592 }
 0x284   : > { %v1032_v36 = vmul.f32 1.0614054, %v5593_v34 }
 0x285   : > { %v5595_v40 = vpop.eup %5594 }
 0x286   : > { %v1036_v41 = vadd.f32 -1.4531521, %v1032_v36  ;;  %v1030_v42 = vmul.f32 1.0614054, %v5595_v40 }
 0x287   : > { %v5597_v44 = vpop.eup %5596 }
 0x288   : > { %v1040_v45 = vmul.f32 %v5593_v34, %v1036_v41  ;;  %v1034_v47 = vadd.f32 -1.4531521, %v1030_v42  ;;  %v1033_v48 = vmul.f32 1.0614054, %v5597_v44  ;;  %v1006_v41 = vsel %vm1002_vm4, 1.0, %v5765_v33 }
 0x289   : > { %v1009_v42 = vsel %vm1005_vm5, 1.0, %v5765_v33 }
 0x28a   : > { %v1044_v50 = vadd.f32 1.4214138, %v1040_v45  ;;  %v5599_v51 = vpop.eup %5598  ;;  %v1038_v52 = vmul.f32 %v5595_v40, %v1034_v47  ;;  %v1037_v53 = vadd.f32 -1.4531521, %v1033_v48  ;;  %v996_v47 = vmul.f32 0.5, %v6044_v4 }
 0x28b   : > { %v1031_v55 = vmul.f32 1.0614054, %v5599_v51  ;;  %v5601_v17 = vpop.eup %5600  ;;  %v997_v48 = vmul.f32 0.5, %v6055_v12  ;;  %v5466_v12 = vld [vmem:[%s7061_s29] sm:$0xff]   ;;  %s755_s29 = sand.u32 1, %s7065_s25  }
 0x28c   : > { %v1048_v54 = vmul.f32 %v5593_v34, %v1044_v50  ;;  %v1042_v57 = vadd.f32 1.4214138, %v1038_v52  ;;  %v1041_v58 = vmul.f32 %v5597_v44, %v1037_v53  ;;  %v5603_v27 = vpop.eup %5602  ;;  %s756_s5 = scalar_lea.vmem [#allocation2], %s755_s29  ;;  %s4407_s25 = scalar_lea.sflag [#allocation3], %s755_s29 }
 0x28d   : > { %v1035_v60 = vadd.f32 -1.4531521, %v1031_v55  ;;  %v5605_v32 = vpop.eup %5604  ;;  %s4419_s30 = sshll.u32 %s756_s5, 4  ;;  %s6939_s30 = int_to_ptr.vmem [resolvable:$true] %s4419_s30 }
 0x28e   : > { %v1052_v59 = vadd.f32 -0.28449672, %v1048_v54  ;;  %v1046_v61 = vmul.f32 %v5595_v40, %v1042_v57  ;;  %v1045_v62 = vadd.f32 1.4214138, %v1041_v58  ;;  %v5607_v39 = vpop.eup %5606  ;;  %v995_v54 = vmul.f32 0.5, %v6061_v19  ;;  %v5467_v19 = vld [vmem:[%s7063_s1] sm:$0xff]  }
 0x28f   : > { %v1039_v0 = vmul.f32 %v5599_v51, %v1035_v60  ;;  %s5700_s27 = scalar_lea.vmem %s6939_s30, 16 }
 0x290   : > { %v1056_v63 = vmul.f32 %v5593_v34, %v1052_v59  ;;  %v1050_v2 = vadd.f32 -0.28449672, %v1046_v61  ;;  %v1049_v3 = vmul.f32 %v5597_v44, %v1045_v62  ;;  %v1116_v61 = vpop.permute.xlu1 %1115  ;;  %p5701_p11 = scmp.ne.s32.totalorder %s6939_s30, %s5700_s27 }
 0x291   : > { %v1043_v8 = vadd.f32 1.4214138, %v1039_v0 }
 0x292   : > { %v1060_v5 = vadd.f32 0.2548296, %v1056_v63  ;;  %v1054_v9 = vmul.f32 %v5595_v40, %v1050_v2  ;;  %v1053_v13 = vadd.f32 -0.28449672, %v1049_v3  ;;  %p5702_p12 = pnand %p5701_p11, %p5935_p5 }
 0x293   : > { %v1047_v16 = vmul.f32 %v5599_v51, %v1043_v8 }
 0x294   : > { %v1064_v14 = vmul.f32 %v5593_v34, %v1060_v5  ;;  %v1058_v20 = vadd.f32 0.2548296, %v1054_v9  ;;  %v1057_v21 = vmul.f32 %v5597_v44, %v1053_v13  ;;  %v5468_v5 = vld [vmem:[%s7063_s1 + $0x8] sm:$0xff]   ;;  %v1190_v8 = vpop.permute.xlu1 %1189  ;;  %p5703_p13 = pneg %p5702_p12 }
 0x295   : > { %v1051_v24 = vadd.f32 -0.28449672, %v1047_v16 }
 0x296   : > { %v1084_v22 = vmul.f32 %v5601_v17, %v1064_v14  ;;  %v1062_v25 = vmul.f32 %v5595_v40, %v1058_v20  ;;  %v1061_v26 = vadd.f32 0.2548296, %v1057_v21 }
 0x297   : > { %v1055_v29 = vmul.f32 %v5599_v51, %v1051_v24 }
 0x298   : > { %v1088_v28 = vsub.f32 1.0, %v1084_v22  ;;  %v1082_v30 = vmul.f32 %v5603_v27, %v1062_v25  ;;  %v1065_v31 = vmul.f32 %v5597_v44, %v1061_v26  ;;  %v1195_v9 = vpop.permute.xlu1 %1194 }
 0x299   : > { %v1059_v34 = vadd.f32 0.2548296, %v1055_v29 }
 0x29a   : > { %v1092_v36 = vmul.f32 %v1088_v28, %v1008_v35  ;;  %v1086_v37 = vsub.f32 1.0, %v1082_v30  ;;  %v1085_v38 = vmul.f32 %v5605_v32, %v1065_v31  ;;  %v1185_v28 = vpop.permute.xlu0 %1184 }
 0x29b   : > { %v1063_v6 = vmul.f32 %v5599_v51, %v1059_v34 }
 0x29c   : > { %v1089_v40 = vsub.f32 1.0, %v1085_v38  ;;  %v1096_v44 = vadd.f32 1.0, %v1092_v36  ;;  %v1090_v45 = vmul.f32 %v1086_v37, %v1006_v41  ;;  %v1180_v16 = vpop.permute.xlu1 %1179 }
 0x29d   : > { %v1083_v43 = vmul.f32 %v5607_v39, %v1063_v6 }
 0x29e   : > { %v1093_v46 = vmul.f32 %v1089_v40, %v1009_v42  ;;  %v1100_v51 = vmul.f32 %v1096_v44, %v996_v47  ;;  %v1094_v52 = vadd.f32 1.0, %v1090_v45 }
 0x29f   : > { %v1087_v11 = vsub.f32 1.0, %v1083_v43 }
 0x2a0   : > { %v1097_v18 = vadd.f32 1.0, %v1093_v46  ;;  %v1098_v58 = vmul.f32 %v1094_v52, %v994_v23 }
 0x2a1   : > { %v1091_v50 = vmul.f32 %v1087_v11, %v1007_v49 }
 0x2a2   : > { %v1101_v53 = vmul.f32 %v1097_v18, %v997_v48 }
 0x2a3   : > { %v1095_v55 = vadd.f32 1.0, %v1091_v50 }
 0x2a4   : > { %v1105_v56 = vpack.c.bf16 %v1101_v53, %v1100_v51 }
 0x2a5   : > { %v1099_v57 = vmul.f32 %v1095_v55, %v995_v54 }
 0x2a6   : > { %5046 = vmatpush3.bf16.msra.mxu1 %v1105_v56 }
 0x2a7   : > { %5047 = vmatprep.subr.bf16.mxu1 %v5762_v1  ;;  %v1104_v4 = vpack.c.bf16 %v1099_v57, %v1098_v58 }
 0x2aa   : > { %5048 = vmatpush3.bf16.msra.mxu1 %v1104_v4 }
 0x2ad   : > { %5050 = vmatmul.mubr.msk.bf16.vlgmr.msra.gmra.mxu1 %vm1123_vm7, %v5466_v12 }
 0x2ae   : > { %5055 = vmatprep.mubr.msk.bf16.mxu1 %vm938_vm2, %v5467_v19 }
 0x36d   : > { %v1161_v59 = vpop.f32.mrf.mxu1 }
 0x36e   : > { %v1162_v63 = vadd.f32 %v1161_v59, %v1111_v7 }
 0x36f   : > { %v5051_v60 = vpop.f32.mrf.mxu1 }
 0x371   : > { %v1164_v62 = vpop.f32.mrf.mxu1 }
 0x372   : > { %v1165_v0 = vadd.f32 %v1164_v62, %v1116_v61 }
 0x373   : > { %v5052_v2 = vpop.f32.mrf.mxu1 }
 0x374   : > { %v1172_v3 = vpack.c.bf16 %v1165_v0, %v1162_v63 }
 0x376   : > { %5053 = vmatprep.subr.bf16.mxu1 %v1172_v3 }
 0x377   : > { %5054 = vmatpush3.bf16.msra.mxu1 %v1172_v3 }
 0x378   : > { %5067 = vmatprep.subr.bf16.mxu1 %v5762_v1 }
 0x37a   : > { %5056 = vmatmul.mubr.msk.bf16.vlgmr.msra.gmra.mxu1 %vm938_vm2, %v5468_v5 }
 0x37b   : > { %5075 = vmatprep.mubr.msk.bf16.mxu1 %vm5763_vm0, %v5762_v1 }
 0x43a   : > { %v5057_v13 = vpop.f32.mrf.mxu1 }
 0x43b   : > { %v6096_v14 = vadd.f32 %v5057_v13, %v1190_v8 }
 0x43c   : > { %v1247_v17 = vpop.f32.mrf.mxu1 }
 0x43d   : > { %v6099_v20 = vmul.f32 0.70710677, %v6096_v14  ;;  %v6101_v21 = vadd.f32 %v1247_v17, %v1180_v16 }
 0x43e   : > { %v5058_v22 = vpop.f32.mrf.mxu1 }
 0x43f   : > { %v1280_v24 = vand.u32 2147483647, %v6099_v20  ;;  %v6105_v25 = vmul.f32 0.70710677, %v6101_v21  ;;  %v6107_v26 = vadd.f32 %v5058_v22, %v1195_v9  ;;  %vm1272_vm8 = vcmp.ge.f32.partialorder %v6099_v20, 0.0 }
 0x440   : > { %v1250_v27 = vpop.f32.mrf.mxu1 }
 0x441   : > { %v1284_v29 = vmul.f32 0.3275911, %v1280_v24  ;;  %v1278_v30 = vand.u32 2147483647, %v6105_v25  ;;  %v6111_v31 = vmul.f32 0.70710677, %v6107_v26  ;;  %v6113_v32 = vadd.f32 %v1250_v27, %v1185_v28 }
 0x442   : > { %v1336_v42 = vsub.f32 0.0, %v1280_v24  ;;  %vm1270_vm9 = vcmp.ge.f32.partialorder %v6105_v25, 0.0 }
 0x443   : > { %v1288_v35 = vadd.f32 1.0, %v1284_v29  ;;  %v1282_v34 = vmul.f32 0.3275911, %v1278_v30  ;;  %v1281_v36 = vand.u32 2147483647, %v6111_v31  ;;  %v1334_v44 = vsub.f32 0.0, %v1278_v30 }
 0x444   : > { %v6117_v37 = vmul.f32 0.70710677, %v6113_v32  ;;  %v1340_v45 = vmul.f32 %v1336_v42, %v1280_v24  ;;  %vm1273_vm10 = vcmp.ge.f32.partialorder %v6111_v31, 0.0 }
 0x445   : > { %5608 = vrcp.f32 %v1288_v35  ;;  %v1286_v38 = vadd.f32 1.0, %v1282_v34  ;;  %v1285_v6 = vmul.f32 0.3275911, %v1281_v36  ;;  %v1337_v46 = vsub.f32 0.0, %v1281_v36 }
 0x446   : > { %v1279_v39 = vand.u32 2147483647, %v6117_v37  ;;  %v1338_v47 = vmul.f32 %v1334_v44, %v1278_v30  ;;  %v1346_v18 = vmul.f32 1.442695, %v1340_v45  ;;  %vm1271_vm11 = vcmp.ge.f32.partialorder %v6117_v37, 0.0 }
 0x447   : > { %5610 = vrcp.f32 %v1286_v38  ;;  %v1289_v40 = vadd.f32 1.0, %v1285_v6  ;;  %v1341_v50 = vmul.f32 %v1337_v46, %v1281_v36  ;;  %v1262_v37 = vmul.f32 0.5, %v6101_v21 }
 0x448   : > { %v1283_v41 = vmul.f32 0.3275911, %v1279_v39  ;;  %v1335_v49 = vsub.f32 0.0, %v1279_v39  ;;  %v1342_v54 = vmul.f32 1.442695, %v1338_v47  ;;  %v1276_v47 = vsel %vm1272_vm8, 1.0, %v5765_v33 }
 0x449   : > { %5612 = vrcp.f32 %v1289_v40  ;;  %v1348_v4 = vmul.f32 1.442695, %v1341_v50 }
 0x44a   : > { %v1287_v43 = vadd.f32 1.0, %v1283_v41  ;;  %v1339_v56 = vmul.f32 %v1335_v49, %v1279_v39 }
 0x44c   : > { %5614 = vrcp.f32 %v1287_v43  ;;  %v1344_v62 = vmul.f32 1.442695, %v1339_v56 }
 0x44d   : > { %5616 = vpow2.f32 %v1346_v18 }
 0x44e   : > { %5618 = vpow2.f32 %v1342_v54 }
 0x44f   : > { %5620 = vpow2.f32 %v1348_v4  ;;  %v1275_v4 = vsel %vm1271_vm11, 1.0, %v5765_v33 }
 0x450   : > { %5622 = vpow2.f32 %v1344_v62 }
 0x452   : > { %v5609_v11 = vpop.eup %5608 }
 0x453   : > { %v1300_v48 = vmul.f32 1.0614054, %v5609_v11 }
 0x454   : > { %v5611_v51 = vpop.eup %5610 }
 0x455   : > { %v1304_v52 = vadd.f32 -1.4531521, %v1300_v48  ;;  %v1298_v53 = vmul.f32 1.0614054, %v5611_v51 }
 0x456   : > { %v5613_v55 = vpop.eup %5612 }
 0x457   : > { %v1308_v23 = vmul.f32 %v5609_v11, %v1304_v52  ;;  %v1302_v57 = vadd.f32 -1.4531521, %v1298_v53  ;;  %v1301_v58 = vmul.f32 1.0614054, %v5613_v55  ;;  %v1274_v52 = vsel %vm1270_vm9, 1.0, %v5765_v33 }
 0x458   : > { %v1277_v53 = vsel %vm1273_vm10, 1.0, %v5765_v33 }
 0x459   : > { %v1312_v12 = vadd.f32 1.4214138, %v1308_v23  ;;  %v5615_v19 = vpop.eup %5614  ;;  %v1306_v7 = vmul.f32 %v5611_v51, %v1302_v57  ;;  %v1305_v59 = vadd.f32 -1.4531521, %v1301_v58  ;;  %v1264_v57 = vmul.f32 0.5, %v6096_v14 }
 0x45a   : > { %v1299_v61 = vmul.f32 1.0614054, %v5615_v19  ;;  %v5617_v35 = vpop.eup %5616  ;;  %v1265_v58 = vmul.f32 0.5, %v6107_v26  ;;  %v5469_v26 = vld [vmem:[%s6989_s11] sm:$0xff]  }
 0x45b   : > { %v1316_v60 = vmul.f32 %v5609_v11, %v1312_v12  ;;  %v1310_v63 = vadd.f32 1.4214138, %v1306_v7  ;;  %v1309_v0 = vmul.f32 %v5613_v55, %v1305_v59  ;;  %v5619_v41 = vpop.eup %5618 }
 0x45c   : > { %v1303_v3 = vadd.f32 -1.4531521, %v1299_v61  ;;  %v5621_v46 = vpop.eup %5620 }
 0x45d   : > { %v1320_v2 = vadd.f32 -0.28449672, %v1316_v60  ;;  %v1314_v5 = vmul.f32 %v5611_v51, %v1310_v63  ;;  %v1313_v8 = vadd.f32 1.4214138, %v1309_v0  ;;  %v5623_v20 = vpop.eup %5622  ;;  %v1263_v60 = vmul.f32 0.5, %v6113_v32 }
 0x45e   : > { %v1307_v13 = vmul.f32 %v5615_v19, %v1303_v3 }
 0x45f   : > { %v1324_v9 = vmul.f32 %v5609_v11, %v1320_v2  ;;  %v1318_v16 = vadd.f32 -0.28449672, %v1314_v5  ;;  %v1317_v17 = vmul.f32 %v5613_v55, %v1313_v8  ;;  %v1430_v2 = vpop.permute.xlu1 %1429 }
 0x460   : > { %v1311_v24 = vadd.f32 1.4214138, %v1307_v13 }
 0x461   : > { %v1328_v22 = vadd.f32 0.2548296, %v1324_v9  ;;  %v1322_v27 = vmul.f32 %v5611_v51, %v1318_v16  ;;  %v1321_v28 = vadd.f32 -0.28449672, %v1317_v17  ;;  %v1435_v16 = vpop.permute.xlu0 %1434 }
 0x462   : > { %v1315_v30 = vmul.f32 %v5615_v19, %v1311_v24 }
 0x463   : > { %v1332_v29 = vmul.f32 %v5609_v11, %v1328_v22  ;;  %v1326_v34 = vadd.f32 0.2548296, %v1322_v27  ;;  %v1325_v36 = vmul.f32 %v5613_v55, %v1321_v28 }
 0x464   : > { %v1319_v6 = vadd.f32 -0.28449672, %v1315_v30  ;;  %v5471_v30 = vld [vmem:[%s6993_s15 + $0x10] sm:$0xff]  }
 0x465   : > { %v1352_v38 = vmul.f32 %v5617_v35, %v1332_v29  ;;  %v1330_v39 = vmul.f32 %v5611_v51, %v1326_v34  ;;  %v1329_v40 = vadd.f32 0.2548296, %v1325_v36  ;;  %v5470_v29 = vld [vmem:[%s6993_s15 + $0x18] sm:$0xff]   ;;  %v5472_v35 = vld [vmem:[%s6993_s15 + $0x8] sm:$0xff]   ;;  %v5473_v34 = vld [vmem:[%s6993_s15] sm:$0xff]  }
 0x466   : > { %v1323_v43 = vmul.f32 %v5615_v19, %v1319_v6  ;;  %5068 = vmatpush3.bf16.msra.mxu1 %v5470_v29 }
 0x467   : > { %v1356_v42 = vsub.f32 1.0, %v1352_v38  ;;  %v1350_v44 = vmul.f32 %v5619_v41, %v1330_v39  ;;  %v1333_v45 = vmul.f32 %v5613_v55, %v1329_v40  ;;  %5069 = vmatprep.subr.bf16.mxu1 %v5762_v1 }
 0x468   : > { %v1327_v11 = vadd.f32 0.2548296, %v1323_v43 }
 0x469   : > { %v1360_v48 = vmul.f32 %v1356_v42, %v1276_v47  ;;  %v1354_v18 = vsub.f32 1.0, %v1350_v44  ;;  %v1353_v49 = vmul.f32 %v5621_v46, %v1333_v45 }
 0x46a   : > { %v1331_v50 = vmul.f32 %v5615_v19, %v1327_v11  ;;  %5070 = vmatpush3.bf16.msra.mxu1 %v5471_v30 }
 0x46b   : > { %v1357_v51 = vsub.f32 1.0, %v1353_v49  ;;  %v1364_v55 = vadd.f32 1.0, %v1360_v48  ;;  %v1358_v23 = vmul.f32 %v1354_v18, %v1274_v52  ;;  %5071 = vmatprep.subr.bf16.mxu1 %v5762_v1 }
 0x46c   : > { %v1351_v54 = vmul.f32 %v5623_v20, %v1331_v50  ;;  %v4500_v50 = vld [vmem:[%s6991_s13] ss:$0 sm:$0xff] }
 0x46d   : > { %v1361_v56 = vmul.f32 %v1357_v51, %v1277_v53  ;;  %v1368_v19 = vmul.f32 %v1364_v55, %v1264_v57  ;;  %v1362_v7 = vadd.f32 1.0, %v1358_v23  ;;  %v4501_v55 = vld [vmem:[%s6992_s14] ss:$0 sm:$0xff] }
 0x46e   : > { %v1355_v25 = vsub.f32 1.0, %v1351_v54  ;;  %5072 = vmatpush3.bf16.msra.mxu1 %v5472_v35 }
 0x46f   : > { %v1365_v31 = vadd.f32 1.0, %v1361_v56  ;;  %v1366_v0 = vmul.f32 %v1362_v7, %v1262_v37  ;;  %5073 = vmatprep.subr.bf16.mxu1 %v5762_v1  ;;  %v5479_v7 = vld [vmem:[%s6995_s17 + $0x10] sm:$0xff]  }
 0x470   : > { %v1359_v12 = vmul.f32 %v1355_v25, %v1275_v4  ;;  %v5476_v4 = vld [vmem:[%s6995_s17 + $0x28] sm:$0xff]   ;;  %v5483_v37 = vld [vmem:[%s6997_s19 + $0x10] sm:$0xff]  }
 0x471   : > { %v1369_v59 = vmul.f32 %v1365_v31, %v1265_v58  ;;  %v5474_v58 = vld [vmem:[%s6995_s17 + $0x38] sm:$0xff]   ;;  %v5475_v31 = vld [vmem:[%s6995_s17 + $0x30] sm:$0xff]  }
 0x472   : > { %v1363_v61 = vadd.f32 1.0, %v1359_v12  ;;  %5074 = vmatpush3.bf16.msra.mxu1 %v5473_v34  ;;  %v5477_v12 = vld [vmem:[%s6995_s17 + $0x20] sm:$0xff]  }
 0x473   : > { %v1373_v62 = vpack.c.bf16 %v1369_v59, %v1368_v19  ;;  %5099 = vmatprep.subr.bf16.mxu1 %v5762_v1  ;;  %v5478_v19 = vld [vmem:[%s6995_s17 + $0x18] sm:$0xff]   ;;  %v5480_v59 = vld [vmem:[%s6995_s17 + $0x8] sm:$0xff]  }
 0x474   : > { %v1367_v63 = vmul.f32 %v1363_v61, %v1263_v60  ;;  %v5481_v60 = vld [vmem:[%s6995_s17] sm:$0xff]   ;;  %v5482_v61 = vld [vmem:[%s6997_s19 + $0x18] sm:$0xff]  }
 0x475   : > { %5060 = vmatpush3.bf16.msra.mxu0 %v1373_v62  ;;  %v4502_v62 = vld [vmem:[%s6994_s16] ss:$0 sm:$0xff] }
 0x476   : > { %5061 = vmatprep.subr.bf16.mxu0 %v5762_v1  ;;  %v1372_v14 = vpack.c.bf16 %v1367_v63, %v1366_v0 }
 0x479   : > { %5062 = vmatpush3.bf16.msra.mxu0 %v1372_v14 }
 0x47a   : > { %5079 = vmatprep.subr.bf16.mxu0 %v5762_v1 }
 0x47c   : > { %5064 = vmatmul.mubr.msk.bf16.vlgmr.msra.gmra.mxu0 %vm1123_vm7, %v5469_v26 }
 0x47d   : > { %5095 = vmatprep.mubr.msk.bf16.mxu0 %vm5763_vm0, %v5762_v1  ;;  %5080 = vmatpush3.bf16.msra.mxu0 %v5474_v58 }
 0x47e   : > { %5081 = vmatprep.subr.bf16.mxu0 %v5762_v1 }
 0x481   : > { %5082 = vmatpush3.bf16.msra.mxu0 %v5475_v31 }
 0x482   : > { %5083 = vmatprep.subr.bf16.mxu0 %v5762_v1 }
 0x485   : > { %5084 = vmatpush3.bf16.msra.mxu0 %v5476_v4 }
 0x486   : > { %5085 = vmatprep.subr.bf16.mxu0 %v5762_v1 }
 0x489   : > { %5086 = vmatpush3.bf16.msra.mxu0 %v5477_v12 }
 0x48a   : > { %5087 = vmatprep.subr.bf16.mxu0 %v5762_v1 }
 0x48d   : > { %5088 = vmatpush3.bf16.msra.mxu0 %v5478_v19 }
 0x48e   : > { %5089 = vmatprep.subr.bf16.mxu0 %v5762_v1 }
 0x491   : > { %5090 = vmatpush3.bf16.msra.mxu0 %v5479_v7 }
 0x492   : > { %5091 = vmatprep.subr.bf16.mxu0 %v5762_v1 }
 0x495   : > { %5092 = vmatpush3.bf16.msra.mxu0 %v5480_v59 }
 0x496   : > { %5093 = vmatprep.subr.bf16.mxu0 %v5762_v1 }
 0x499   : > { %5094 = vmatpush3.bf16.msra.mxu0 %v5481_v60 }
 0x53c   : > { %v1416_v21 = vpop.f32.mrf.mxu0 }
 0x53d   : > { %v1423_v32 = vadd.f32 %v1416_v21, %v5975_v10 }
 0x53e   : > { %v5065_v3 = vpop.f32.mrf.mxu0 }
 0x53f   : > { %v6141_v5 = vadd.f32 %v1430_v2, %v1423_v32 }
 0x540   : > { %v1419_v8 = vpop.f32.mrf.mxu0 }
 0x541   : > { %v1424_v9 = vadd.f32 %v1419_v8, %v5981_v15  ;;  %v1441_v13 = vsel %vm805_vm1, %v6141_v5, 0.0  ;;  %v1449_v27 = vmul.f32 %v6141_v5, %v6141_v5 }
 0x542   : > { %1442 = vadd.xlane.f32.xlu1 %v1441_v13  ;;  %v5066_v17 = vpop.f32.mrf.mxu0 }
 0x543   : > { %v6146_v22 = vadd.f32 %v1435_v16, %v1424_v9  ;;  %v1451_v28 = vsel %vm805_vm1, %v1449_v27, 0.0 }
 0x545   : > { %v1444_v24 = vsel %vm805_vm1, %v6146_v22, 0.0  ;;  %v1450_v10 = vmul.f32 %v6146_v22, %v6146_v22 }
 0x546   : > { %1445 = vadd.xlane.f32.xlu0 %v1444_v24 }
 0x547   : > { %v1454_v15 = vsel %vm805_vm1, %v1450_v10, 0.0 }
 0x548   : > { %1455 = vadd.xlane.f32.xlu1 %v1454_v15 }
 0x54a   : > { %1452 = vadd.xlane.f32.xlu0 %v1451_v28 }
 0x5cb   : > { %v1443_v36 = vpop.xlane.xlu1 %1442 }
 0x5cc   : > { %v1447_v6 = vmul.f32 0.015625, %v1443_v36 }
 0x5ce   : > { %v1459_v44 = vmul.f32 %v1447_v6, %v1447_v6  ;;  %v1463_v20 = vsub.f32 %v6141_v5, %v1447_v6 }
 0x5cf   : > { %v1446_v38 = vpop.xlane.xlu0 %1445 }
 0x5d0   : > { %v1448_v39 = vmul.f32 0.015625, %v1446_v38 }
 0x5d1   : > { %v1456_v40 = vpop.xlane.xlu1 %1455 }
 0x5d2   : > { %v1460_v41 = vmul.f32 %v1448_v39, %v1448_v39  ;;  %v1458_v42 = vmul.f32 0.015625, %v1456_v40  ;;  %v1464_v18 = vsub.f32 %v6146_v22, %v1448_v39 }
 0x5d3   : > { %v1453_v43 = vpop.xlane.xlu0 %1452 }
 0x5d4   : > { %v1462_v45 = vsub.f32 %v1458_v42, %v1460_v41  ;;  %v1457_v46 = vmul.f32 0.015625, %v1453_v43 }
 0x5d6   : > { %v1466_v47 = vadd.f32 1e-05, %v1462_v45  ;;  %v1461_v11 = vsub.f32 %v1457_v46, %v1459_v44 }
 0x5d8   : > { %5624 = vrsqrt.f32 %v1466_v47  ;;  %v1465_v48 = vadd.f32 1e-05, %v1461_v11 }
 0x5da   : > { %5626 = vrsqrt.f32 %v1465_v48 }
 0x5e5   : > { %v5625_v49 = vpop.eup %5624 }
 0x5e6   : > { %v1470_v51 = vmul.f32 %v5625_v49, %v1464_v18 }
 0x5e7   : > { %v5627_v52 = vpop.eup %5626 }
 0x5e8   : > { %v1469_v53 = vmul.f32 %v5627_v52, %v1463_v20  ;;  %v1478_v54 = vmul.f32 %v4500_v50, %v1470_v51 }
 0x5ea   : > { %v1477_v23 = vmul.f32 %v4500_v50, %v1469_v53  ;;  %v1486_v25 = vadd.f32 %v4501_v55, %v1478_v54 }
 0x5ec   : > { %v1485_v56 = vadd.f32 %v4501_v55, %v1477_v23 }
 0x5ee   : > { %v1487_v57 = vpack.c.bf16 %v1486_v25, %v1485_v56 }
 0x5f0   : > { %5076 = vmatmul.mubr.msk.bf16.vlgmr.msra.gmra.mxu1 %vm805_vm1, %v1487_v57 }
 0x5f1   : > { %5107 = vmatprep.mubr.msk.bf16.mxu1 %vm5763_vm0, %v5762_v1  ;;  %5100 = vmatpush3.bf16.msra.mxu1 %v5482_v61  ;;  %v5484_v61 = vld [vmem:[%s6997_s19 + $0x8] sm:$0xff]  }
 0x5f2   : > { %5101 = vmatprep.subr.bf16.mxu1 %v5762_v1 }
 0x5f5   : > { %5102 = vmatpush3.bf16.msra.mxu1 %v5483_v37  ;;  %v5485_v37 = vld [vmem:[%s6997_s19] sm:$0xff]  }
 0x5f6   : > { %5103 = vmatprep.subr.bf16.mxu1 %v5762_v1 }
 0x5f9   : > { %5104 = vmatpush3.bf16.msra.mxu1 %v5484_v61 }
 0x5fa   : > { %5105 = vmatprep.subr.bf16.mxu1 %v5762_v1 }
 0x5fd   : > { %5106 = vmatpush3.bf16.msra.mxu1 %v5485_v37 }
 0x5fe   : > { %5111 = vmatprep.subr.bf16.mxu1 %v5762_v1 }
 0x6b0   : > { %v1564_v63 = vpop.f32.mrf.mxu1 }
 0x6b1   : > { %v1565_v0 = vadd.f32 %v4502_v62, %v1564_v63  ;;  %v4508_v63 = vld [vmem:[%s6996_s18] ss:$0 sm:$0xff] }
 0x6b2   : > { %v5077_v14 = vpop.f32.mrf.mxu1 }
 0x6b3   : > { %v1573_v26 = vmul.f32 0.70710677, %v1565_v0  ;;  %v1571_v4 = vmul.f32 0.5, %v1565_v0 }
 0x6b4   : > { %v1567_v21 = vpop.f32.mrf.mxu1 }
 0x6b5   : > { %v1579_v32 = vand.u32 2147483647, %v1573_v26  ;;  %v1568_v2 = vadd.f32 %v4502_v62, %v1567_v21  ;;  %vm1575_vm12 = vcmp.ge.f32.partialorder %v1573_v26, 0.0 }
 0x6b6   : > { %v5078_v3 = vpop.f32.mrf.mxu1  ;;  %v1577_v55 = vsel %vm1575_vm12, 1.0, %v5765_v33 }
 0x6b7   : > { %v1581_v8 = vmul.f32 0.3275911, %v1579_v32  ;;  %v1574_v9 = vmul.f32 0.70710677, %v1568_v2  ;;  %v1607_v10 = vsub.f32 0.0, %v1579_v32  ;;  %v1572_v12 = vmul.f32 0.5, %v1568_v2 }
 0x6b8   : > { %v5486_v3 = vld [vmem:[%s6999_s21 + $0x38] sm:$0xff]  }
 0x6b9   : > { %v1583_v13 = vadd.f32 1.0, %v1581_v8  ;;  %v1580_v16 = vand.u32 2147483647, %v1574_v9  ;;  %v1609_v27 = vmul.f32 %v1607_v10, %v1579_v32  ;;  %vm1576_vm13 = vcmp.ge.f32.partialorder %v1574_v9, 0.0  ;;  %v5487_v8 = vld [vmem:[%s6999_s21 + $0x30] sm:$0xff]   ;;  %v5488_v9 = vld [vmem:[%s6999_s21 + $0x28] sm:$0xff]  }
 0x6ba   : > { %v1578_v57 = vsel %vm1576_vm13, 1.0, %v5765_v33  ;;  %v5493_v10 = vld [vmem:[%s6999_s21] sm:$0xff]  }
 0x6bb   : > { %5628 = vrcp.f32 %v1583_v13  ;;  %v1582_v17 = vmul.f32 0.3275911, %v1580_v16  ;;  %v1608_v15 = vsub.f32 0.0, %v1580_v16  ;;  %v1611_v30 = vmul.f32 1.442695, %v1609_v27  ;;  %v5489_v13 = vld [vmem:[%s6999_s21 + $0x20] sm:$0xff]  }
 0x6bc   : > { %v4517_v27 = vld [vmem:[%s6998_s20] ss:$0 sm:$0xff] }
 0x6bd   : > { %v1584_v24 = vadd.f32 1.0, %v1582_v17  ;;  %v1610_v35 = vmul.f32 %v1608_v15, %v1580_v16  ;;  %v5490_v16 = vld [vmem:[%s6999_s21 + $0x18] sm:$0xff]   ;;  %v5491_v17 = vld [vmem:[%s6999_s21 + $0x10] sm:$0xff]  }
 0x6bf   : > { %5630 = vrcp.f32 %v1584_v24  ;;  %v1613_v39 = vmul.f32 1.442695, %v1610_v35  ;;  %v5492_v24 = vld [vmem:[%s6999_s21 + $0x8] sm:$0xff]  }
 0x6c0   : > { %5632 = vpow2.f32 %v1611_v30 }
 0x6c1   : > { %5634 = vpow2.f32 %v1613_v39 }
 0x6c8   : > { %v5629_v28 = vpop.eup %5628 }
 0x6c9   : > { %v1589_v29 = vmul.f32 1.0614054, %v5629_v28 }
 0x6cb   : > { %v1591_v34 = vadd.f32 -1.4531521, %v1589_v29 }
 0x6cc   : > { %v5631_v36 = vpop.eup %5630 }
 0x6cd   : > { %v1593_v38 = vmul.f32 %v5629_v28, %v1591_v34  ;;  %v1590_v6 = vmul.f32 1.0614054, %v5631_v36  ;;  %v5633_v50 = vpop.eup %5632 }
 0x6ce   : > { %v5635_v54 = vpop.eup %5634 }
 0x6cf   : > { %v1595_v40 = vadd.f32 1.4214138, %v1593_v38  ;;  %v1592_v41 = vadd.f32 -1.4531521, %v1590_v6 }
 0x6d1   : > { %v1597_v42 = vmul.f32 %v5629_v28, %v1595_v40  ;;  %v1594_v43 = vmul.f32 %v5631_v36, %v1592_v41 }
 0x6d3   : > { %v1599_v44 = vadd.f32 -0.28449672, %v1597_v42  ;;  %v1596_v45 = vadd.f32 1.4214138, %v1594_v43 }
 0x6d5   : > { %v1601_v46 = vmul.f32 %v5629_v28, %v1599_v44  ;;  %v1598_v47 = vmul.f32 %v5631_v36, %v1596_v45 }
 0x6d7   : > { %v1603_v11 = vadd.f32 0.2548296, %v1601_v46  ;;  %v1600_v48 = vadd.f32 -0.28449672, %v1598_v47 }
 0x6d9   : > { %v1605_v18 = vmul.f32 %v5629_v28, %v1603_v11  ;;  %v1602_v49 = vmul.f32 %v5631_v36, %v1600_v48 }
 0x6db   : > { %v1615_v20 = vmul.f32 %v5633_v50, %v1605_v18  ;;  %v1604_v51 = vadd.f32 0.2548296, %v1602_v49 }
 0x6dd   : > { %v1617_v52 = vsub.f32 1.0, %v1615_v20  ;;  %v1606_v53 = vmul.f32 %v5631_v36, %v1604_v51 }
 0x6df   : > { %v1619_v23 = vmul.f32 %v1617_v52, %v1577_v55  ;;  %v1616_v56 = vmul.f32 %v5635_v54, %v1606_v53 }
 0x6e1   : > { %v1618_v25 = vsub.f32 1.0, %v1616_v56  ;;  %v1621_v58 = vadd.f32 1.0, %v1619_v23 }
 0x6e3   : > { %v1620_v31 = vmul.f32 %v1618_v25, %v1578_v57  ;;  %v1623_v7 = vmul.f32 %v1621_v58, %v1571_v4 }
 0x6e5   : > { %v1622_v19 = vadd.f32 1.0, %v1620_v31 }
 0x6e7   : > { %v1624_v59 = vmul.f32 %v1622_v19, %v1572_v12 }
 0x6e9   : > { %v1625_v60 = vpack.c.bf16 %v1624_v59, %v1623_v7 }
 0x6eb   : > { %5096 = vmatmul.mubr.bf16.vlgmr.msra.gmra.mxu0 %v1625_v60 }
 0x7ab   : > { %v1731_v62 = vpop.f32.mrf.mxu0 }
 0x7ac   : > { %v1732_v26 = vadd.f32 %v4508_v63, %v1731_v62 }
 0x7ad   : > { %v5097_v0 = vpop.f32.mrf.mxu0 }
 0x7af   : > { %v1734_v14 = vpop.f32.mrf.mxu0 }
 0x7b0   : > { %v1735_v21 = vadd.f32 %v4508_v63, %v1734_v14 }
 0x7b1   : > { %v5098_v32 = vpop.f32.mrf.mxu0 }
 0x7b2   : > { %v1738_v2 = vpack.c.bf16 %v1735_v21, %v1732_v26 }
 0x7b4   : > { %5108 = vmatmul.mubr.msk.bf16.vlgmr.msra.gmra.mxu1 %vm805_vm1, %v1738_v2 }
 0x7b5   : > { %5127 = vmatprep.mubr.msk.bf16.mxu1 %vm5763_vm0, %v5762_v1  ;;  %5112 = vmatpush3.bf16.msra.mxu1 %v5486_v3 }
 0x7b6   : > { %5113 = vmatprep.subr.bf16.mxu1 %v5762_v1 }
 0x7b9   : > { %5114 = vmatpush3.bf16.msra.mxu1 %v5487_v8 }
 0x7ba   : > { %5115 = vmatprep.subr.bf16.mxu1 %v5762_v1 }
 0x7bd   : > { %5116 = vmatpush3.bf16.msra.mxu1 %v5488_v9 }
 0x7be   : > { %5117 = vmatprep.subr.bf16.mxu1 %v5762_v1 }
 0x7c1   : > { %5118 = vmatpush3.bf16.msra.mxu1 %v5489_v13 }
 0x7c2   : > { %5119 = vmatprep.subr.bf16.mxu1 %v5762_v1 }
 0x7c5   : > { %5120 = vmatpush3.bf16.msra.mxu1 %v5490_v16 }
 0x7c6   : > { %5121 = vmatprep.subr.bf16.mxu1 %v5762_v1 }
 0x7c9   : > { %5122 = vmatpush3.bf16.msra.mxu1 %v5491_v17 }
 0x7ca   : > { %5123 = vmatprep.subr.bf16.mxu1 %v5762_v1 }
 0x7cd   : > { %5124 = vmatpush3.bf16.msra.mxu1 %v5492_v24 }
 0x7ce   : > { %5125 = vmatprep.subr.bf16.mxu1 %v5762_v1 }
 0x7d1   : > { %5126 = vmatpush3.bf16.msra.mxu1 %v5493_v10  ;;  %v4531_v10 = vld [vmem:[%s7000_s22] ss:$0 sm:$0xff] }
 0x7d2   : > { %5159 = vmatprep.subr.bf16.mxu1 %v5762_v1 }
 0x874   : > { %v1815_v15 = vpop.f32.mrf.mxu1 }
 0x875   : > { %v1816_v28 = vadd.f32 %v4517_v27, %v1815_v15 }
 0x876   : > { %v5109_v29 = vpop.f32.mrf.mxu1 }
 0x877   : > { %v1824_v30 = vmul.f32 0.70710677, %v1816_v28  ;;  %v1822_v3 = vmul.f32 0.5, %v1816_v28 }
 0x878   : > { %v1818_v35 = vpop.f32.mrf.mxu1 }
 0x879   : > { %v1830_v34 = vand.u32 2147483647, %v1824_v30  ;;  %v1819_v36 = vadd.f32 %v4517_v27, %v1818_v35  ;;  %vm1826_vm14 = vcmp.ge.f32.partialorder %v1824_v30, 0.0 }
 0x87a   : > { %v5110_v38 = vpop.f32.mrf.mxu1  ;;  %v1828_v63 = vsel %vm1826_vm14, 1.0, %v5765_v33 }
 0x87b   : > { %v1832_v6 = vmul.f32 0.3275911, %v1830_v34  ;;  %v1825_v39 = vmul.f32 0.70710677, %v1819_v36  ;;  %v1858_v44 = vsub.f32 0.0, %v1830_v34  ;;  %v1823_v8 = vmul.f32 0.5, %v1819_v36 }
 0x87d   : > { %v1834_v40 = vadd.f32 1.0, %v1832_v6  ;;  %v1831_v41 = vand.u32 2147483647, %v1825_v39  ;;  %v1860_v45 = vmul.f32 %v1858_v44, %v1830_v34  ;;  %vm1827_vm15 = vcmp.ge.f32.partialorder %v1825_v39, 0.0  ;;  %v4550_v44 = vld [vmem:[%s7056_s26 + $0x10] sm:$0xff] }
 0x87e   : > { %v1829_v21 = vsel %vm1827_vm15, 1.0, %v5765_v33 }
 0x87f   : > { %5636 = vrcp.f32 %v1834_v40  ;;  %v1833_v42 = vmul.f32 0.3275911, %v1831_v41  ;;  %v1859_v46 = vsub.f32 0.0, %v1831_v41  ;;  %v1862_v48 = vmul.f32 1.442695, %v1860_v45  ;;  %v4543_v40 = vld [vmem:[%s7055_s3 + $0x38] sm:$0xff] }
 0x880   : > { %v4551_v45 = vld [vmem:[%s7056_s26 + $0x18] sm:$0xff] }
 0x881   : > { %v1835_v43 = vadd.f32 1.0, %v1833_v42  ;;  %v1861_v18 = vmul.f32 %v1859_v46, %v1831_v41  ;;  %v4542_v41 = vld [vmem:[%s7055_s3 + $0x30] sm:$0xff]  ;;  %v4540_v42 = vld [vmem:[%s7055_s3 + $0x20] sm:$0xff] }
 0x882   : > { %v4560_v46 = vld [vmem:[%s6988_s10 + $0x30] sm:$0xff] }
 0x883   : > { %5638 = vrcp.f32 %v1835_v43  ;;  %v1864_v52 = vmul.f32 1.442695, %v1861_v18  ;;  %v4541_v43 = vld [vmem:[%s7055_s3 + $0x28] sm:$0xff]  ;;  %v4570_v18 = vld [vmem:[%s6990_s12 + $0x10] sm:$0xff]  ;;  %s5766_s3 = smov [#allocation2]  }
 0x884   : > { %5640 = vpow2.f32 %v1862_v48  ;;  %v4559_v48 = vld [vmem:[%s6988_s10 + $0x28] sm:$0xff] }
 0x885   : > { %5642 = vpow2.f32 %v1864_v52 }
 0x88c   : > { %v5637_v47 = vpop.eup %5636 }
 0x88d   : > { %v1840_v11 = vmul.f32 1.0614054, %v5637_v47 }
 0x88f   : > { %v1842_v49 = vadd.f32 -1.4531521, %v1840_v11  ;;  %v4558_v11 = vld [vmem:[%s6988_s10 + $0x20] sm:$0xff] }
 0x890   : > { %v5639_v50 = vpop.eup %5638 }
 0x891   : > { %v1844_v20 = vmul.f32 %v5637_v47, %v1842_v49  ;;  %v1841_v51 = vmul.f32 1.0614054, %v5639_v50  ;;  %v5641_v7 = vpop.eup %5640  ;;  %v4571_v49 = vld [vmem:[%s6990_s12 + $0x18] sm:$0xff] }
 0x892   : > { %v5643_v62 = vpop.eup %5642 }
 0x893   : > { %v1846_v53 = vadd.f32 1.4214138, %v1844_v20  ;;  %v1843_v54 = vadd.f32 -1.4531521, %v1841_v51 }
 0x895   : > { %v1848_v55 = vmul.f32 %v5637_v47, %v1846_v53  ;;  %v1845_v23 = vmul.f32 %v5639_v50, %v1843_v54 }
 0x897   : > { %v1850_v56 = vadd.f32 -0.28449672, %v1848_v55  ;;  %v1847_v25 = vadd.f32 1.4214138, %v1845_v23 }
 0x899   : > { %v1852_v57 = vmul.f32 %v5637_v47, %v1850_v56  ;;  %v1849_v58 = vmul.f32 %v5639_v50, %v1847_v25 }
 0x89b   : > { %v1854_v31 = vadd.f32 0.2548296, %v1852_v57  ;;  %v1851_v4 = vadd.f32 -0.28449672, %v1849_v58 }
 0x89d   : > { %v1856_v12 = vmul.f32 %v5637_v47, %v1854_v31  ;;  %v1853_v19 = vmul.f32 %v5639_v50, %v1851_v4  ;;  %v4561_v47 = vld [vmem:[%s6988_s10 + $0x38] sm:$0xff] }
 0x89f   : > { %v1866_v59 = vmul.f32 %v5641_v7, %v1856_v12  ;;  %v1855_v60 = vadd.f32 0.2548296, %v1853_v19 }
 0x8a1   : > { %v1868_v61 = vsub.f32 1.0, %v1866_v59  ;;  %v1857_v37 = vmul.f32 %v5639_v50, %v1855_v60  ;;  %v5494_v50 = vld [vmem:[%s7054_s8 + $0x10] sm:$0xff]   ;;  %v4534_v60 = vld [vmem:[%s7058_s28 + $0x1] ss:$0 sm:$0xff] }
 0x8a2   : > { %5133 = vmatprep.mubr.msk.bf16.mxu0 %vm938_vm2, %v5494_v50 }
 0x8a3   : > { %v1870_v0 = vmul.f32 %v1868_v61, %v1828_v63  ;;  %v1867_v14 = vmul.f32 %v5643_v62, %v1857_v37 }
 0x8a5   : > { %v1869_v26 = vsub.f32 1.0, %v1867_v14  ;;  %v1872_v32 = vadd.f32 1.0, %v1870_v0  ;;  %v4535_v0 = vld [vmem:[%s7060_s0 + $0x1] ss:$0 sm:$0xff] }
 0x8a7   : > { %v1871_v2 = vmul.f32 %v1869_v26, %v1829_v21  ;;  %v1874_v13 = vmul.f32 %v1872_v32, %v1822_v3 }
 0x8a9   : > { %v1873_v9 = vadd.f32 1.0, %v1871_v2  ;;  %v5495_v2 = vld [vmem:[%s7054_s8 + $0x18] sm:$0xff]   ;;  %s5704_s8 = sshll.u32 %s5766_s3, 4  ;;  %s5705_s8 = int_to_ptr.vmem [resolvable:$false] %s5704_s8 }
 0x8aa   : > { %s5706_s24 = scalar_lea.vmem %s5705_s8, 32  ;;  %p5707_p0 = scmp.lt.s32.totalorder %s6939_s30, %s5705_s8 }
 0x8ab   : > { %v1875_v16 = vmul.f32 %v1873_v9, %v1823_v8  ;;  %p5708_p1 = scmp.lt.s32.totalorder %s5706_s24, %s5700_s27 }
 0x8ad   : > { %v1876_v17 = vpack.c.bf16 %v1875_v16, %v1874_v13  ;;  %p5709_p2 = por %p5708_p1, %p5707_p0 }
 0x8af   : > { %5128 = vmatmul.mubr.bf16.vlgmr.msra.gmra.mxu1 %v1876_v17  ;;  %p5710_p3 = pnand %p5709_p2, %p5703_p13 }
 0x8b0   : > { %5167 = vmatprep.mubr.msk.bf16.mxu1 %vm5763_vm0, %v5762_v1 }
 0x96f   : > { %v1975_v24 = vpop.f32.mrf.mxu1 }
 0x970   : > { %v1982_v27 = vadd.f32 %v1975_v24, %v6141_v5 }
 0x971   : > { %v5129_v15 = vpop.f32.mrf.mxu1 }
 0x972   : > { %v6284_v29 = vadd.f32 %v4531_v10, %v1982_v27 }
 0x973   : > { %v1978_v28 = vpop.f32.mrf.mxu1 }
 0x974   : > { %v1983_v30 = vadd.f32 %v1978_v28, %v6146_v22  ;;  %v1997_v35 = vsel %vm805_vm1, %v6284_v29, 0.0  ;;  %v2005_v34 = vmul.f32 %v6284_v29, %v6284_v29 }
 0x975   : > { %1998 = vadd.xlane.f32.xlu0 %v1997_v35  ;;  %v5130_v36 = vpop.f32.mrf.mxu1 }
 0x976   : > { %v6291_v38 = vadd.f32 %v4531_v10, %v1983_v30  ;;  %v2007_v6 = vsel %vm805_vm1, %v2005_v34, 0.0 }
 0x978   : > { %v2000_v5 = vsel %vm805_vm1, %v6291_v38, 0.0  ;;  %v2006_v39 = vmul.f32 %v6291_v38, %v6291_v38 }
 0x979   : > { %2008 = vadd.xlane.f32.xlu0 %v2007_v6  ;;  %2001 = vadd.xlane.f32.xlu1 %v2000_v5 }
 0x97a   : > { %v2010_v22 = vsel %vm805_vm1, %v2006_v39, 0.0 }
 0x97d   : > { %2011 = vadd.xlane.f32.xlu1 %v2010_v22 }
 0x98e   : > { %2071 = vperm.xlu1 %5459, %v4543_v40  }
 0x98f   : > { %2066 = vperm.xlu0 %5458, %v4542_v41  }
 0x992   : > { %2056 = vperm.xlu1 %5459, %v4540_v42  }
 0x993   : > { %2061 = vperm.xlu0 %5458, %v4541_v43  }
 0x996   : > { %2257 = vperm.xlu1 %5459, %v4550_v44  }
 0x997   : > { %2262 = vperm.xlu0 %5458, %v4551_v45  }
 0x99a   : > { %2337 = vperm.xlu1 %5459, %v4560_v46  }
 0x99b   : > { %2342 = vperm.xlu0 %5458, %v4561_v47  }
 0x99e   : > { %2327 = vperm.xlu1 %5459, %v4558_v11  }
 0x99f   : > { %2332 = vperm.xlu0 %5458, %v4559_v48  }
 0x9a2   : > { %2579 = vperm.xlu1 %5459, %v4570_v18  }
 0x9a3   : > { %2584 = vperm.xlu0 %5458, %v4571_v49  }
 0x9fe   : > { %v1999_v20 = vpop.xlane.xlu0 %1998 }
 0x9ff   : > { %v2003_v51 = vmul.f32 0.015625, %v1999_v20 }
 0xa01   : > { %v2015_v54 = vmul.f32 %v2003_v51, %v2003_v51  ;;  %v2019_v19 = vsub.f32 %v6284_v29, %v2003_v51 }
 0xa02   : > { %v2009_v52 = vpop.xlane.xlu0 %2008  ;;  %v2002_v53 = vpop.xlane.xlu1 %2001 }
 0xa03   : > { %v2013_v55 = vmul.f32 0.015625, %v2009_v52  ;;  %v2004_v23 = vmul.f32 0.015625, %v2002_v53 }
 0xa05   : > { %v2017_v56 = vsub.f32 %v2013_v55, %v2015_v54  ;;  %v2016_v58 = vmul.f32 %v2004_v23, %v2004_v23  ;;  %v2020_v61 = vsub.f32 %v6291_v38, %v2004_v23 }
 0xa06   : > { %v2012_v25 = vpop.xlane.xlu1 %2011 }
 0xa07   : > { %v2021_v57 = vadd.f32 1e-05, %v2017_v56  ;;  %v2014_v31 = vmul.f32 0.015625, %v2012_v25 }
 0xa09   : > { %5644 = vrsqrt.f32 %v2021_v57  ;;  %v2018_v4 = vsub.f32 %v2014_v31, %v2016_v58 }
 0xa0a   : > { %v2072_v3 = vpop.permute.xlu1 %2071  ;;  %v2067_v8 = vpop.permute.xlu0 %2066 }
 0xa0b   : > { %v2022_v12 = vadd.f32 1e-05, %v2018_v4 }
 0xa0d   : > { %5646 = vrsqrt.f32 %v2022_v12 }
 0xa0e   : > { %v2057_v16 = vpop.permute.xlu1 %2056  ;;  %v2062_v34 = vpop.permute.xlu0 %2061 }
 0xa16   : > { %v5645_v7 = vpop.eup %5644 }
 0xa17   : > { %v2025_v59 = vmul.f32 %v5645_v7, %v2019_v19 }
 0xa19   : > { %v2033_v63 = vmul.f32 %v4534_v60, %v2025_v59 }
 0xa1a   : > { %v5647_v37 = vpop.eup %5646 }
 0xa1b   : > { %v2026_v62 = vmul.f32 %v5647_v37, %v2020_v61  ;;  %v2041_v26 = vadd.f32 %v4535_v0, %v2033_v63 }
 0xa1d   : > { %v2034_v14 = vmul.f32 %v4534_v60, %v2026_v62 }
 0xa1f   : > { %v2042_v21 = vadd.f32 %v4535_v0, %v2034_v14 }
 0xa21   : > { %v2048_v32 = vpack.c.bf16 %v2042_v21, %v2041_v26 }
 0xa23   : > { %5131 = vmatprep.subr.bf16.mxu0 %v2048_v32 }
 0xa24   : > { %5132 = vmatpush3.bf16.msra.mxu0 %v2048_v32 }
 0xa25   : > { %5137 = vmatprep.subr.bf16.mxu0 %v5762_v1 }
 0xa27   : > { %5134 = vmatmul.mubr.msk.bf16.vlgmr.msra.gmra.mxu0 %vm938_vm2, %v5495_v2 }
 0xa28   : > { %5141 = vmatprep.mubr.msk.bf16.mxu0 %vm5763_vm0, %v5762_v1 }
 0xae7   : > { %v5135_v9 = vpop.f32.mrf.mxu0 }
 0xae8   : > { %v6354_v13 = vadd.f32 %v5135_v9, %v2067_v8 }
 0xae9   : > { %v2124_v17 = vpop.f32.mrf.mxu0 }
 0xaea   : > { %v6357_v24 = vmul.f32 0.70710677, %v6354_v13  ;;  %v6359_v10 = vadd.f32 %v2124_v17, %v2057_v16 }
 0xaeb   : > { %v5136_v27 = vpop.f32.mrf.mxu0 }
 0xaec   : > { %v2157_v15 = vand.u32 2147483647, %v6357_v24  ;;  %v6363_v28 = vmul.f32 0.70710677, %v6359_v10  ;;  %v6365_v30 = vadd.f32 %v5136_v27, %v2072_v3  ;;  %vm2149_vm3 = vcmp.ge.f32.partialorder %v6357_v24, 0.0 }
 0xaed   : > { %v2127_v35 = vpop.f32.mrf.mxu0 }
 0xaee   : > { %v2161_v36 = vmul.f32 0.3275911, %v2157_v15  ;;  %v2155_v6 = vand.u32 2147483647, %v6363_v28  ;;  %v6369_v5 = vmul.f32 0.70710677, %v6365_v30  ;;  %v6371_v39 = vadd.f32 %v2127_v35, %v2062_v34 }
 0xaef   : > { %v2213_v11 = vsub.f32 0.0, %v2157_v15  ;;  %vm2147_vm4 = vcmp.ge.f32.partialorder %v6363_v28, 0.0 }
 0xaf0   : > { %v2165_v22 = vadd.f32 1.0, %v2161_v36  ;;  %v2159_v40 = vmul.f32 0.3275911, %v2155_v6  ;;  %v2158_v41 = vand.u32 2147483647, %v6369_v5  ;;  %v2211_v18 = vsub.f32 0.0, %v2155_v6 }
 0xaf1   : > { %v6375_v42 = vmul.f32 0.70710677, %v6371_v39  ;;  %v2217_v49 = vmul.f32 %v2213_v11, %v2157_v15  ;;  %vm2150_vm5 = vcmp.ge.f32.partialorder %v6369_v5, 0.0 }
 0xaf2   : > { %5648 = vrcp.f32 %v2165_v22  ;;  %v2163_v43 = vadd.f32 1.0, %v2159_v40  ;;  %v2162_v44 = vmul.f32 0.3275911, %v2158_v41  ;;  %v2214_v50 = vsub.f32 0.0, %v2158_v41 }
 0xaf3   : > { %v2156_v45 = vand.u32 2147483647, %v6375_v42  ;;  %v2215_v51 = vmul.f32 %v2211_v18, %v2155_v6  ;;  %v2223_v53 = vmul.f32 1.442695, %v2217_v49  ;;  %vm2148_vm6 = vcmp.ge.f32.partialorder %v6375_v42, 0.0 }
 0xaf4   : > { %5650 = vrcp.f32 %v2163_v43  ;;  %v2166_v46 = vadd.f32 1.0, %v2162_v44  ;;  %v2218_v55 = vmul.f32 %v2214_v50, %v2158_v41  ;;  %v2139_v42 = vmul.f32 0.5, %v6359_v10 }
 0xaf5   : > { %v2160_v47 = vmul.f32 0.3275911, %v2156_v45  ;;  %v2212_v54 = vsub.f32 0.0, %v2156_v45  ;;  %v2219_v57 = vmul.f32 1.442695, %v2215_v51  ;;  %v2153_v51 = vsel %vm2149_vm3, 1.0, %v5765_v33 }
 0xaf6   : > { %5652 = vrcp.f32 %v2166_v46  ;;  %v2225_v7 = vmul.f32 1.442695, %v2218_v55 }
 0xaf7   : > { %v2164_v48 = vadd.f32 1.0, %v2160_v47  ;;  %v2216_v4 = vmul.f32 %v2212_v54, %v2156_v45 }
 0xaf9   : > { %5654 = vrcp.f32 %v2164_v48  ;;  %v2221_v0 = vmul.f32 1.442695, %v2216_v4 }
 0xafa   : > { %5656 = vpow2.f32 %v2223_v53 }
 0xafb   : > { %5658 = vpow2.f32 %v2219_v57 }
 0xafc   : > { %5660 = vpow2.f32 %v2225_v7  ;;  %v2152_v7 = vsel %vm2148_vm6, 1.0, %v5765_v33 }
 0xafd   : > { %5662 = vpow2.f32 %v2221_v0 }
 0xaff   : > { %v5649_v20 = vpop.eup %5648 }
 0xb00   : > { %v2177_v52 = vmul.f32 1.0614054, %v5649_v20 }
 0xb01   : > { %v5651_v23 = vpop.eup %5650 }
 0xb02   : > { %v2181_v56 = vadd.f32 -1.4531521, %v2177_v52  ;;  %v2175_v25 = vmul.f32 1.0614054, %v5651_v23 }
 0xb03   : > { %v5653_v58 = vpop.eup %5652 }
 0xb04   : > { %v2185_v31 = vmul.f32 %v5649_v20, %v2181_v56  ;;  %v2179_v12 = vadd.f32 -1.4531521, %v2175_v25  ;;  %v2178_v19 = vmul.f32 1.0614054, %v5653_v58  ;;  %v2151_v56 = vsel %vm2147_vm4, 1.0, %v5765_v33 }
 0xb05   : > { %v2154_v25 = vsel %vm2150_vm5, 1.0, %v5765_v33 }
 0xb06   : > { %v2189_v59 = vadd.f32 1.4214138, %v2185_v31  ;;  %v5655_v60 = vpop.eup %5654  ;;  %v2183_v61 = vmul.f32 %v5651_v23, %v2179_v12  ;;  %v2182_v37 = vadd.f32 -1.4531521, %v2178_v19  ;;  %v2141_v12 = vmul.f32 0.5, %v6354_v13 }
 0xb07   : > { %v2176_v63 = vmul.f32 1.0614054, %v5655_v60  ;;  %v5657_v22 = vpop.eup %5656  ;;  %v2142_v19 = vmul.f32 0.5, %v6365_v30  ;;  %v5496_v30 = vld [vmem:[%s7062_s9 + $0x8] sm:$0xff]  }
 0xb08   : > { %v2193_v62 = vmul.f32 %v5649_v20, %v2189_v59  ;;  %v2187_v14 = vadd.f32 1.4214138, %v2183_v61  ;;  %v2186_v26 = vmul.f32 %v5653_v58, %v2182_v37  ;;  %v5659_v47 = vpop.eup %5658 }
 0xb09   : > { %v2180_v32 = vadd.f32 -1.4531521, %v2176_v63  ;;  %v5661_v50 = vpop.eup %5660 }
 0xb0a   : > { %v2197_v21 = vadd.f32 -0.28449672, %v2193_v62  ;;  %v2191_v2 = vmul.f32 %v5651_v23, %v2187_v14  ;;  %v2190_v3 = vadd.f32 1.4214138, %v2186_v26  ;;  %v5663_v24 = vpop.eup %5662  ;;  %v2140_v62 = vmul.f32 0.5, %v6371_v39  ;;  %v5497_v39 = vld [vmem:[%s7063_s1 + $0x10] sm:$0xff]  }
 0xb0b   : > { %v2184_v9 = vmul.f32 %v5655_v60, %v2180_v32  ;;  %v2263_v32 = vpop.permute.xlu0 %2262 }
 0xb0c   : > { %v2201_v8 = vmul.f32 %v5649_v20, %v2197_v21  ;;  %v2195_v16 = vadd.f32 -0.28449672, %v2191_v2  ;;  %v2194_v17 = vmul.f32 %v5653_v58, %v2190_v3  ;;  %v2258_v2 = vpop.permute.xlu1 %2257 }
 0xb0d   : > { %v2188_v15 = vadd.f32 1.4214138, %v2184_v9 }
 0xb0e   : > { %v2205_v27 = vadd.f32 0.2548296, %v2201_v8  ;;  %v2199_v35 = vmul.f32 %v5651_v23, %v2195_v16  ;;  %v2198_v34 = vadd.f32 -0.28449672, %v2194_v17 }
 0xb0f   : > { %v2192_v6 = vmul.f32 %v5655_v60, %v2188_v15 }
 0xb10   : > { %v2209_v36 = vmul.f32 %v5649_v20, %v2205_v27  ;;  %v2203_v40 = vadd.f32 0.2548296, %v2199_v35  ;;  %v2202_v41 = vmul.f32 %v5653_v58, %v2198_v34  ;;  %v5498_v27 = vld [vmem:[%s7063_s1 + $0x18] sm:$0xff]   ;;  %v2338_v15 = vpop.permute.xlu1 %2337  ;;  %v2343_v34 = vpop.permute.xlu0 %2342 }
 0xb11   : > { %v2196_v44 = vadd.f32 -0.28449672, %v2192_v6 }
 0xb12   : > { %v2229_v43 = vmul.f32 %v5657_v22, %v2209_v36  ;;  %v2207_v45 = vmul.f32 %v5651_v23, %v2203_v40  ;;  %v2206_v46 = vadd.f32 0.2548296, %v2202_v41 }
 0xb13   : > { %v2200_v48 = vmul.f32 %v5655_v60, %v2196_v44 }
 0xb14   : > { %v2233_v11 = vsub.f32 1.0, %v2229_v43  ;;  %v2227_v18 = vmul.f32 %v5659_v47, %v2207_v45  ;;  %v2210_v49 = vmul.f32 %v5653_v58, %v2206_v46  ;;  %v2328_v6 = vpop.permute.xlu1 %2327 }
 0xb15   : > { %v2204_v20 = vadd.f32 0.2548296, %v2200_v48 }
 0xb16   : > { %v2237_v52 = vmul.f32 %v2233_v11, %v2153_v51  ;;  %v2231_v53 = vsub.f32 1.0, %v2227_v18  ;;  %v2230_v54 = vmul.f32 %v5661_v50, %v2210_v49  ;;  %v2333_v11 = vpop.permute.xlu0 %2332 }
 0xb17   : > { %v2208_v55 = vmul.f32 %v5655_v60, %v2204_v20 }
 0xb18   : > { %v2234_v23 = vsub.f32 1.0, %v2230_v54  ;;  %v2241_v58 = vadd.f32 1.0, %v2237_v52  ;;  %v2235_v31 = vmul.f32 %v2231_v53, %v2151_v56 }
 0xb19   : > { %v2228_v57 = vmul.f32 %v5663_v24, %v2208_v55 }
 0xb1a   : > { %v2238_v4 = vmul.f32 %v2234_v23, %v2154_v25  ;;  %v2245_v60 = vmul.f32 %v2241_v58, %v2141_v12  ;;  %v2239_v61 = vadd.f32 1.0, %v2235_v31 }
 0xb1b   : > { %v2232_v28 = vsub.f32 1.0, %v2228_v57 }
 0xb1c   : > { %v2242_v5 = vadd.f32 1.0, %v2238_v4  ;;  %v2243_v26 = vmul.f32 %v2239_v61, %v2139_v42 }
 0xb1d   : > { %v2236_v59 = vmul.f32 %v2232_v28, %v2152_v7 }
 0xb1e   : > { %v2246_v37 = vmul.f32 %v2242_v5, %v2142_v19 }
 0xb1f   : > { %v2240_v63 = vadd.f32 1.0, %v2236_v59 }
 0xb20   : > { %v2251_v0 = vpack.c.bf16 %v2246_v37, %v2245_v60 }
 0xb21   : > { %v2244_v14 = vmul.f32 %v2240_v63, %v2140_v62 }
 0xb22   : > { %5138 = vmatpush3.bf16.msra.mxu0 %v2251_v0 }
 0xb23   : > { %5139 = vmatprep.subr.bf16.mxu0 %v5762_v1  ;;  %v2250_v13 = vpack.c.bf16 %v2244_v14, %v2243_v26 }
 0xb26   : > { %5140 = vmatpush3.bf16.msra.mxu0 %v2250_v13 }
 0xb29   : > { %5142 = vmatmul.mubr.msk.bf16.vlgmr.msra.gmra.mxu0 %vm1123_vm7, %v5496_v30 }
 0xb2a   : > { %5147 = vmatprep.mubr.msk.bf16.mxu0 %vm938_vm2, %v5497_v39 }
 0xbe9   : > { %v2307_v10 = vpop.f32.mrf.mxu0 }
 0xbea   : > { %v2308_v8 = vadd.f32 %v2307_v10, %v2258_v2 }
 0xbeb   : > { %v5143_v21 = vpop.f32.mrf.mxu0 }
 0xbed   : > { %v2310_v3 = vpop.f32.mrf.mxu0 }
 0xbee   : > { %v2311_v9 = vadd.f32 %v2310_v3, %v2263_v32 }
 0xbef   : > { %v5144_v16 = vpop.f32.mrf.mxu0 }
 0xbf0   : > { %v2319_v17 = vpack.c.bf16 %v2311_v9, %v2308_v8 }
 0xbf2   : > { %5145 = vmatprep.subr.bf16.mxu0 %v2319_v17 }
 0xbf3   : > { %5146 = vmatpush3.bf16.msra.mxu0 %v2319_v17 }
 0xbf4   : > { %5151 = vmatprep.subr.bf16.mxu0 %v5762_v1 }
 0xbf6   : > { %5148 = vmatmul.mubr.msk.bf16.vlgmr.msra.gmra.mxu0 %vm938_vm2, %v5498_v27 }
 0xbf7   : > { %5155 = vmatprep.mubr.msk.bf16.mxu0 %vm5763_vm0, %v5762_v1 }
 0xcb6   : > { %v5149_v35 = vpop.f32.mrf.mxu0 }
 0xcb7   : > { %v6406_v36 = vadd.f32 %v5149_v35, %v2338_v15 }
 0xcb8   : > { %v2395_v22 = vpop.f32.mrf.mxu0 }
 0xcb9   : > { %v6409_v40 = vmul.f32 0.70710677, %v6406_v36  ;;  %v6411_v41 = vadd.f32 %v2395_v22, %v2328_v6 }
 0xcba   : > { %v5150_v43 = vpop.f32.mrf.mxu0 }
 0xcbb   : > { %v2428_v44 = vand.u32 2147483647, %v6409_v40  ;;  %v6415_v45 = vmul.f32 0.70710677, %v6411_v41  ;;  %v6417_v46 = vadd.f32 %v5150_v43, %v2343_v34  ;;  %vm2420_vm2 = vcmp.ge.f32.partialorder %v6409_v40, 0.0 }
 0xcbc   : > { %v2398_v47 = vpop.f32.mrf.mxu0 }
 0xcbd   : > { %v2432_v48 = vmul.f32 0.3275911, %v2428_v44  ;;  %v2426_v18 = vand.u32 2147483647, %v6415_v45  ;;  %v6421_v49 = vmul.f32 0.70710677, %v6417_v46  ;;  %v6423_v50 = vadd.f32 %v2398_v47, %v2333_v11 }
 0xcbe   : > { %v2484_v25 = vsub.f32 0.0, %v2428_v44  ;;  %vm2418_vm8 = vcmp.ge.f32.partialorder %v6415_v45, 0.0 }
 0xcbf   : > { %v2436_v51 = vadd.f32 1.0, %v2432_v48  ;;  %v2430_v20 = vmul.f32 0.3275911, %v2426_v18  ;;  %v2429_v52 = vand.u32 2147483647, %v6421_v49  ;;  %v2482_v58 = vsub.f32 0.0, %v2426_v18 }
 0xcc0   : > { %v6427_v53 = vmul.f32 0.70710677, %v6423_v50  ;;  %v2488_v31 = vmul.f32 %v2484_v25, %v2428_v44  ;;  %vm2421_vm9 = vcmp.ge.f32.partialorder %v6421_v49, 0.0 }
 0xcc1   : > { %5664 = vrcp.f32 %v2436_v51  ;;  %v2434_v54 = vadd.f32 1.0, %v2430_v20  ;;  %v2433_v55 = vmul.f32 0.3275911, %v2429_v52  ;;  %v2485_v4 = vsub.f32 0.0, %v2429_v52 }
 0xcc2   : > { %v2427_v24 = vand.u32 2147483647, %v6427_v53  ;;  %v2486_v12 = vmul.f32 %v2482_v58, %v2426_v18  ;;  %v2494_v5 = vmul.f32 1.442695, %v2488_v31  ;;  %vm2419_vm10 = vcmp.ge.f32.partialorder %v6427_v53, 0.0 }
 0xcc3   : > { %5666 = vrcp.f32 %v2434_v54  ;;  %v2437_v23 = vadd.f32 1.0, %v2433_v55  ;;  %v2489_v59 = vmul.f32 %v2485_v4, %v2429_v52  ;;  %v2410_v53 = vmul.f32 0.5, %v6411_v41 }
 0xcc4   : > { %v2431_v56 = vmul.f32 0.3275911, %v2427_v24  ;;  %v2483_v7 = vsub.f32 0.0, %v2427_v24  ;;  %v2490_v62 = vmul.f32 1.442695, %v2486_v12  ;;  %v2424_v12 = vsel %vm2420_vm2, 1.0, %v5765_v33 }
 0xcc5   : > { %5668 = vrcp.f32 %v2437_v23  ;;  %v2496_v13 = vmul.f32 1.442695, %v2489_v59 }
 0xcc6   : > { %v2435_v57 = vadd.f32 1.0, %v2431_v56  ;;  %v2487_v0 = vmul.f32 %v2483_v7, %v2427_v24 }
 0xcc8   : > { %5670 = vrcp.f32 %v2435_v57  ;;  %v2492_v3 = vmul.f32 1.442695, %v2487_v0 }
 0xcc9   : > { %5672 = vpow2.f32 %v2494_v5 }
 0xcca   : > { %5674 = vpow2.f32 %v2490_v62 }
 0xccb   : > { %5676 = vpow2.f32 %v2496_v13  ;;  %v2423_v13 = vsel %vm2419_vm10, 1.0, %v5765_v33 }
 0xccc   : > { %5678 = vpow2.f32 %v2492_v3 }
 0xcce   : > { %v5665_v28 = vpop.eup %5664 }
 0xccf   : > { %v2448_v19 = vmul.f32 1.0614054, %v5665_v28 }
 0xcd0   : > { %v5667_v60 = vpop.eup %5666 }
 0xcd1   : > { %v2452_v61 = vadd.f32 -1.4531521, %v2448_v19  ;;  %v2446_v37 = vmul.f32 1.0614054, %v5667_v60 }
 0xcd2   : > { %v5669_v63 = vpop.eup %5668 }
 0xcd3   : > { %v2456_v42 = vmul.f32 %v5665_v28, %v2452_v61  ;;  %v2450_v14 = vadd.f32 -1.4531521, %v2446_v37  ;;  %v2449_v26 = vmul.f32 1.0614054, %v5669_v63  ;;  %v2422_v61 = vsel %vm2418_vm8, 1.0, %v5765_v33 }
 0xcd4   : > { %v2425_v37 = vsel %vm2421_vm9, 1.0, %v5765_v33 }
 0xcd5   : > { %v2460_v30 = vadd.f32 1.4214138, %v2456_v42  ;;  %v5671_v39 = vpop.eup %5670  ;;  %v2454_v10 = vmul.f32 %v5667_v60, %v2450_v14  ;;  %v2453_v21 = vadd.f32 -1.4531521, %v2449_v26  ;;  %v2412_v14 = vmul.f32 0.5, %v6406_v36 }
 0xcd6   : > { %v2447_v2 = vmul.f32 1.0614054, %v5671_v39  ;;  %v5673_v51 = vpop.eup %5672  ;;  %v2413_v26 = vmul.f32 0.5, %v6417_v46  ;;  %v5499_v46 = vld [vmem:[%s6989_s11 + $0x8] sm:$0xff]  }
 0xcd7   : > { %v2464_v32 = vmul.f32 %v5665_v28, %v2460_v30  ;;  %v2458_v8 = vadd.f32 1.4214138, %v2454_v10  ;;  %v2457_v9 = vmul.f32 %v5669_v63, %v2453_v21  ;;  %v5675_v56 = vpop.eup %5674 }
 0xcd8   : > { %v2451_v17 = vadd.f32 -1.4531521, %v2447_v2  ;;  %v5677_v4 = vpop.eup %5676 }
 0xcd9   : > { %v2468_v16 = vadd.f32 -0.28449672, %v2464_v32  ;;  %v2462_v27 = vmul.f32 %v5667_v60, %v2458_v8  ;;  %v2461_v15 = vadd.f32 1.4214138, %v2457_v9  ;;  %v5679_v40 = vpop.eup %5678  ;;  %v2411_v32 = vmul.f32 0.5, %v6423_v50 }
 0xcda   : > { %v2455_v34 = vmul.f32 %v5671_v39, %v2451_v17 }
 0xcdb   : > { %v2472_v35 = vmul.f32 %v5665_v28, %v2468_v16  ;;  %v2466_v6 = vadd.f32 -0.28449672, %v2462_v27  ;;  %v2465_v22 = vmul.f32 %v5669_v63, %v2461_v15  ;;  %v2580_v16 = vpop.permute.xlu1 %2579 }
 0xcdc   : > { %v2459_v44 = vadd.f32 1.4214138, %v2455_v34 }
 0xcdd   : > { %v2476_v43 = vadd.f32 0.2548296, %v2472_v35  ;;  %v2470_v47 = vmul.f32 %v5667_v60, %v2466_v6  ;;  %v2469_v11 = vadd.f32 -0.28449672, %v2465_v22  ;;  %v2585_v6 = vpop.permute.xlu0 %2584 }
 0xcde   : > { %v2463_v18 = vmul.f32 %v5671_v39, %v2459_v44 }
 0xcdf   : > { %v2480_v48 = vmul.f32 %v5665_v28, %v2476_v43  ;;  %v2474_v20 = vadd.f32 0.2548296, %v2470_v47  ;;  %v2473_v52 = vmul.f32 %v5669_v63, %v2469_v11 }
 0xce0   : > { %v2467_v55 = vadd.f32 -0.28449672, %v2463_v18  ;;  %v5501_v18 = vld [vmem:[%s6993_s15 + $0x30] sm:$0xff]  }
 0xce1   : > { %v2500_v54 = vmul.f32 %v5673_v51, %v2480_v48  ;;  %v2478_v24 = vmul.f32 %v5667_v60, %v2474_v20  ;;  %v2477_v23 = vadd.f32 0.2548296, %v2473_v52  ;;  %v5500_v48 = vld [vmem:[%s6993_s15 + $0x38] sm:$0xff]   ;;  %v5502_v51 = vld [vmem:[%s6993_s15 + $0x28] sm:$0xff]   ;;  %v5503_v20 = vld [vmem:[%s6993_s15 + $0x20] sm:$0xff]  }
 0xce2   : > { %v2471_v57 = vmul.f32 %v5671_v39, %v2467_v55  ;;  %5160 = vmatpush3.bf16.msra.mxu1 %v5500_v48 }
 0xce3   : > { %v2504_v25 = vsub.f32 1.0, %v2500_v54  ;;  %v2498_v58 = vmul.f32 %v5675_v56, %v2478_v24  ;;  %v2481_v31 = vmul.f32 %v5669_v63, %v2477_v23  ;;  %5161 = vmatprep.subr.bf16.mxu1 %v5762_v1 }
 0xce4   : > { %v2475_v28 = vadd.f32 0.2548296, %v2471_v57 }
 0xce5   : > { %v2508_v19 = vmul.f32 %v2504_v25, %v2424_v12  ;;  %v2502_v5 = vsub.f32 1.0, %v2498_v58  ;;  %v2501_v7 = vmul.f32 %v5677_v4, %v2481_v31 }
 0xce6   : > { %v2479_v59 = vmul.f32 %v5671_v39, %v2475_v28  ;;  %5162 = vmatpush3.bf16.msra.mxu1 %v5501_v18 }
 0xce7   : > { %v2505_v60 = vsub.f32 1.0, %v2501_v7  ;;  %v2512_v63 = vadd.f32 1.0, %v2508_v19  ;;  %v2506_v42 = vmul.f32 %v2502_v5, %v2422_v61  ;;  %5163 = vmatprep.subr.bf16.mxu1 %v5762_v1 }
 0xce8   : > { %v2499_v62 = vmul.f32 %v5679_v40, %v2479_v59  ;;  %v4574_v59 = vld [vmem:[%s6991_s13 + $0x1] ss:$0 sm:$0xff] }
 0xce9   : > { %v2509_v0 = vmul.f32 %v2505_v60, %v2425_v37  ;;  %v2516_v39 = vmul.f32 %v2512_v63, %v2412_v14  ;;  %v2510_v10 = vadd.f32 1.0, %v2506_v42  ;;  %v4575_v63 = vld [vmem:[%s6992_s14 + $0x1] ss:$0 sm:$0xff] }
 0xcea   : > { %v2503_v45 = vsub.f32 1.0, %v2499_v62  ;;  %5164 = vmatpush3.bf16.msra.mxu1 %v5502_v51 }
 0xceb   : > { %v2513_v49 = vadd.f32 1.0, %v2509_v0  ;;  %v2514_v9 = vmul.f32 %v2510_v10, %v2410_v53  ;;  %5165 = vmatprep.subr.bf16.mxu1 %v5762_v1  ;;  %v5509_v10 = vld [vmem:[%s6995_s17 + $0x50] sm:$0xff]  }
 0xcec   : > { %v2507_v30 = vmul.f32 %v2503_v45, %v2423_v13  ;;  %v5506_v13 = vld [vmem:[%s6995_s17 + $0x68] sm:$0xff]   ;;  %v5513_v53 = vld [vmem:[%s6997_s19 + $0x30] sm:$0xff]  }
 0xced   : > { %v2517_v21 = vmul.f32 %v2513_v49, %v2413_v26  ;;  %v5504_v26 = vld [vmem:[%s6995_s17 + $0x78] sm:$0xff]   ;;  %v5505_v49 = vld [vmem:[%s6995_s17 + $0x70] sm:$0xff]  }
 0xcee   : > { %v2511_v2 = vadd.f32 1.0, %v2507_v30  ;;  %5166 = vmatpush3.bf16.msra.mxu1 %v5503_v20  ;;  %v5507_v30 = vld [vmem:[%s6995_s17 + $0x60] sm:$0xff]  }
 0xcef   : > { %v2522_v3 = vpack.c.bf16 %v2517_v21, %v2516_v39  ;;  %5191 = vmatprep.subr.bf16.mxu1 %v5762_v1  ;;  %v5508_v39 = vld [vmem:[%s6995_s17 + $0x58] sm:$0xff]   ;;  %v5510_v21 = vld [vmem:[%s6995_s17 + $0x48] sm:$0xff]  }
 0xcf0   : > { %v2515_v8 = vmul.f32 %v2511_v2, %v2411_v32  ;;  %v5511_v32 = vld [vmem:[%s6995_s17 + $0x40] sm:$0xff]   ;;  %v5512_v2 = vld [vmem:[%s6997_s19 + $0x38] sm:$0xff]  }
 0xcf1   : > { %5152 = vmatpush3.bf16.msra.mxu0 %v2522_v3  ;;  %v4585_v3 = vld [vmem:[%s6994_s16 + $0x1] ss:$0 sm:$0xff] }
 0xcf2   : > { %5153 = vmatprep.subr.bf16.mxu0 %v5762_v1  ;;  %v2521_v36 = vpack.c.bf16 %v2515_v8, %v2514_v9 }
 0xcf5   : > { %5154 = vmatpush3.bf16.msra.mxu0 %v2521_v36 }
 0xcf6   : > { %5171 = vmatprep.subr.bf16.mxu0 %v5762_v1 }
 0xcf8   : > { %5156 = vmatmul.mubr.msk.bf16.vlgmr.msra.gmra.mxu0 %vm1123_vm7, %v5499_v46 }
 0xcf9   : > { %5187 = vmatprep.mubr.msk.bf16.mxu0 %vm5763_vm0, %v5762_v1  ;;  %5172 = vmatpush3.bf16.msra.mxu0 %v5504_v26 }
 0xcfa   : > { %5173 = vmatprep.subr.bf16.mxu0 %v5762_v1 }
 0xcfd   : > { %5174 = vmatpush3.bf16.msra.mxu0 %v5505_v49 }
 0xcfe   : > { %5175 = vmatprep.subr.bf16.mxu0 %v5762_v1 }
 0xd01   : > { %5176 = vmatpush3.bf16.msra.mxu0 %v5506_v13 }
 0xd02   : > { %5177 = vmatprep.subr.bf16.mxu0 %v5762_v1 }
 0xd05   : > { %5178 = vmatpush3.bf16.msra.mxu0 %v5507_v30 }
 0xd06   : > { %5179 = vmatprep.subr.bf16.mxu0 %v5762_v1 }
 0xd09   : > { %5180 = vmatpush3.bf16.msra.mxu0 %v5508_v39 }
 0xd0a   : > { %5181 = vmatprep.subr.bf16.mxu0 %v5762_v1 }
 0xd0d   : > { %5182 = vmatpush3.bf16.msra.mxu0 %v5509_v10 }
 0xd0e   : > { %5183 = vmatprep.subr.bf16.mxu0 %v5762_v1 }
 0xd11   : > { %5184 = vmatpush3.bf16.msra.mxu0 %v5510_v21 }
 0xd12   : > { %5185 = vmatprep.subr.bf16.mxu0 %v5762_v1 }
 0xd15   : > { %5186 = vmatpush3.bf16.msra.mxu0 %v5511_v32 }
 0xd16   : > { %5223 = vmatprep.subr.bf16.mxu0 %v5762_v1 }
 0xdb8   : > { %v2565_v41 = vpop.f32.mrf.mxu0 }
 0xdb9   : > { %v2572_v50 = vadd.f32 %v2565_v41, %v6284_v29 }
 0xdba   : > { %v5157_v17 = vpop.f32.mrf.mxu0 }
 0xdbb   : > { %v6451_v27 = vadd.f32 %v2580_v16, %v2572_v50 }
 0xdbc   : > { %v2568_v15 = vpop.f32.mrf.mxu0 }
 0xdbd   : > { %v2573_v35 = vadd.f32 %v2568_v15, %v6291_v38  ;;  %v2593_v34 = vsel %vm805_vm1, %v6451_v27, 0.0  ;;  %v2601_v47 = vmul.f32 %v6451_v27, %v6451_v27 }
 0xdbe   : > { %2594 = vadd.xlane.f32.xlu1 %v2593_v34  ;;  %v5158_v22 = vpop.f32.mrf.mxu0 }
 0xdbf   : > { %v6456_v43 = vadd.f32 %v2585_v6, %v2573_v35  ;;  %v2603_v11 = vsel %vm805_vm1, %v2601_v47, 0.0 }
 0xdc1   : > { %v2596_v44 = vsel %vm805_vm1, %v6456_v43, 0.0  ;;  %v2602_v29 = vmul.f32 %v6456_v43, %v6456_v43 }
 0xdc2   : > { %2597 = vadd.xlane.f32.xlu0 %v2596_v44 }
 0xdc3   : > { %v2606_v38 = vsel %vm805_vm1, %v2602_v29, 0.0 }
 0xdc4   : > { %2607 = vadd.xlane.f32.xlu1 %v2606_v38 }
 0xdc6   : > { %2604 = vadd.xlane.f32.xlu0 %v2603_v11 }
 0xe47   : > { %v2595_v52 = vpop.xlane.xlu1 %2594 }
 0xe48   : > { %v2599_v55 = vmul.f32 0.015625, %v2595_v52 }
 0xe4a   : > { %v2611_v58 = vmul.f32 %v2599_v55, %v2599_v55  ;;  %v2615_v40 = vsub.f32 %v6451_v27, %v2599_v55 }
 0xe4b   : > { %v2598_v54 = vpop.xlane.xlu0 %2597 }
 0xe4c   : > { %v2600_v24 = vmul.f32 0.015625, %v2598_v54 }
 0xe4d   : > { %v2608_v23 = vpop.xlane.xlu1 %2607 }
 0xe4e   : > { %v2612_v56 = vmul.f32 %v2600_v24, %v2600_v24  ;;  %v2610_v25 = vmul.f32 0.015625, %v2608_v23  ;;  %v2616_v5 = vsub.f32 %v6456_v43, %v2600_v24 }
 0xe4f   : > { %v2605_v57 = vpop.xlane.xlu0 %2604 }
 0xe50   : > { %v2614_v31 = vsub.f32 %v2610_v25, %v2612_v56  ;;  %v2609_v4 = vmul.f32 0.015625, %v2605_v57 }
 0xe52   : > { %v2618_v12 = vadd.f32 1e-05, %v2614_v31  ;;  %v2613_v28 = vsub.f32 %v2609_v4, %v2611_v58 }
 0xe54   : > { %5680 = vrsqrt.f32 %v2618_v12  ;;  %v2617_v19 = vadd.f32 1e-05, %v2613_v28 }
 0xe56   : > { %5682 = vrsqrt.f32 %v2617_v19 }
 0xe61   : > { %v5681_v7 = vpop.eup %5680 }
 0xe62   : > { %v2622_v60 = vmul.f32 %v5681_v7, %v2616_v5 }
 0xe63   : > { %v5683_v61 = vpop.eup %5682 }
 0xe64   : > { %v2621_v37 = vmul.f32 %v5683_v61, %v2615_v40  ;;  %v2630_v62 = vmul.f32 %v4574_v59, %v2622_v60 }
 0xe66   : > { %v2629_v42 = vmul.f32 %v4574_v59, %v2621_v37  ;;  %v2638_v45 = vadd.f32 %v4575_v63, %v2630_v62 }
 0xe68   : > { %v2637_v0 = vadd.f32 %v4575_v63, %v2629_v42 }
 0xe6a   : > { %v2639_v14 = vpack.c.bf16 %v2638_v45, %v2637_v0 }
 0xe6c   : > { %5168 = vmatmul.mubr.msk.bf16.vlgmr.msra.gmra.mxu1 %vm805_vm1, %v2639_v14 }
 0xe6d   : > { %5199 = vmatprep.mubr.msk.bf16.mxu1 %vm5763_vm0, %v5762_v1  ;;  %5192 = vmatpush3.bf16.msra.mxu1 %v5512_v2  ;;  %v5514_v2 = vld [vmem:[%s6997_s19 + $0x28] sm:$0xff]  }
 0xe6e   : > { %5193 = vmatprep.subr.bf16.mxu1 %v5762_v1 }
 0xe71   : > { %5194 = vmatpush3.bf16.msra.mxu1 %v5513_v53  ;;  %v5515_v53 = vld [vmem:[%s6997_s19 + $0x20] sm:$0xff]  }
 0xe72   : > { %5195 = vmatprep.subr.bf16.mxu1 %v5762_v1 }
 0xe75   : > { %5196 = vmatpush3.bf16.msra.mxu1 %v5514_v2 }
 0xe76   : > { %5197 = vmatprep.subr.bf16.mxu1 %v5762_v1 }
 0xe79   : > { %5198 = vmatpush3.bf16.msra.mxu1 %v5515_v53 }
 0xe7a   : > { %5203 = vmatprep.subr.bf16.mxu1 %v5762_v1 }
 0xf2c   : > { %v2718_v8 = vpop.f32.mrf.mxu1 }
 0xf2d   : > { %v2719_v9 = vadd.f32 %v4585_v3, %v2718_v8  ;;  %v4608_v8 = vld [vmem:[%s6996_s18 + $0x1] ss:$0 sm:$0xff] }
 0xf2e   : > { %v5169_v36 = vpop.f32.mrf.mxu1 }
 0xf2f   : > { %v2727_v46 = vmul.f32 0.70710677, %v2719_v9  ;;  %v2725_v13 = vmul.f32 0.5, %v2719_v9 }
 0xf30   : > { %v2721_v41 = vpop.f32.mrf.mxu1 }
 0xf31   : > { %v2733_v50 = vand.u32 2147483647, %v2727_v46  ;;  %v2722_v16 = vadd.f32 %v4585_v3, %v2721_v41  ;;  %vm2729_vm7 = vcmp.ge.f32.partialorder %v2727_v46, 0.0 }
 0xf32   : > { %v5170_v17 = vpop.f32.mrf.mxu1  ;;  %v2731_v63 = vsel %vm2729_vm7, 1.0, %v5765_v33 }
 0xf33   : > { %v2735_v15 = vmul.f32 0.3275911, %v2733_v50  ;;  %v2728_v35 = vmul.f32 0.70710677, %v2722_v16  ;;  %v2761_v29 = vsub.f32 0.0, %v2733_v50  ;;  %v2726_v30 = vmul.f32 0.5, %v2722_v16 }
 0xf34   : > { %v5516_v17 = vld [vmem:[%s6999_s21 + $0x78] sm:$0xff]  }
 0xf35   : > { %v2737_v34 = vadd.f32 1.0, %v2735_v15  ;;  %v2734_v6 = vand.u32 2147483647, %v2728_v35  ;;  %v2763_v47 = vmul.f32 %v2761_v29, %v2733_v50  ;;  %vm2730_vm11 = vcmp.ge.f32.partialorder %v2728_v35, 0.0  ;;  %v5517_v15 = vld [vmem:[%s6999_s21 + $0x70] sm:$0xff]   ;;  %v5518_v35 = vld [vmem:[%s6999_s21 + $0x68] sm:$0xff]  }
 0xf36   : > { %v2732_v14 = vsel %vm2730_vm11, 1.0, %v5765_v33  ;;  %v5523_v29 = vld [vmem:[%s6999_s21 + $0x40] sm:$0xff]  }
 0xf37   : > { %5684 = vrcp.f32 %v2737_v34  ;;  %v2736_v22 = vmul.f32 0.3275911, %v2734_v6  ;;  %v2762_v38 = vsub.f32 0.0, %v2734_v6  ;;  %v2765_v18 = vmul.f32 1.442695, %v2763_v47  ;;  %v5519_v34 = vld [vmem:[%s6999_s21 + $0x60] sm:$0xff]  }
 0xf38   : > { %v5524_v47 = vld [vmem:[%s7001_s23 + $0x18] sm:$0xff]  }
 0xf39   : > { %v2738_v44 = vadd.f32 1.0, %v2736_v22  ;;  %v2764_v51 = vmul.f32 %v2762_v38, %v2734_v6  ;;  %v5520_v6 = vld [vmem:[%s6999_s21 + $0x58] sm:$0xff]   ;;  %v5521_v22 = vld [vmem:[%s6999_s21 + $0x50] sm:$0xff]  }
 0xf3a   : > { %v5526_v38 = vld [vmem:[%s7001_s23 + $0x10] sm:$0xff]  }
 0xf3b   : > { %5686 = vrcp.f32 %v2738_v44  ;;  %v2767_v24 = vmul.f32 1.442695, %v2764_v51  ;;  %v5522_v44 = vld [vmem:[%s6999_s21 + $0x48] sm:$0xff]  }
 0xf3c   : > { %5688 = vpow2.f32 %v2765_v18 }
 0xf3d   : > { %5690 = vpow2.f32 %v2767_v24 }
 0xf44   : > { %v5685_v11 = vpop.eup %5684 }
 0xf45   : > { %v2743_v48 = vmul.f32 1.0614054, %v5685_v11 }
 0xf47   : > { %v2745_v20 = vadd.f32 -1.4531521, %v2743_v48  ;;  %v4626_v48 = vld [vmem:[%s6998_s20 + $0x1] ss:$0 sm:$0xff] }
 0xf48   : > { %v5687_v52 = vpop.eup %5686 }
 0xf49   : > { %v2747_v54 = vmul.f32 %v5685_v11, %v2745_v20  ;;  %v2744_v55 = vmul.f32 1.0614054, %v5687_v52  ;;  %v5689_v59 = vpop.eup %5688 }
 0xf4a   : > { %v5691_v62 = vpop.eup %5690 }
 0xf4b   : > { %v2749_v23 = vadd.f32 1.4214138, %v2747_v54  ;;  %v2746_v56 = vadd.f32 -1.4531521, %v2744_v55 }
 0xf4d   : > { %v2751_v25 = vmul.f32 %v5685_v11, %v2749_v23  ;;  %v2748_v57 = vmul.f32 %v5687_v52, %v2746_v56 }
 0xf4f   : > { %v2753_v58 = vadd.f32 -0.28449672, %v2751_v25  ;;  %v2750_v31 = vadd.f32 1.4214138, %v2748_v57 }
 0xf51   : > { %v2755_v4 = vmul.f32 %v5685_v11, %v2753_v58  ;;  %v2752_v12 = vmul.f32 %v5687_v52, %v2750_v31 }
 0xf53   : > { %v2757_v28 = vadd.f32 0.2548296, %v2755_v4  ;;  %v2754_v19 = vadd.f32 -0.28449672, %v2752_v12 }
 0xf55   : > { %v2759_v5 = vmul.f32 %v5685_v11, %v2757_v28  ;;  %v2756_v7 = vmul.f32 %v5687_v52, %v2754_v19  ;;  %v5528_v11 = vld [vmem:[%s7001_s23 + $0x8] sm:$0xff]  }
 0xf57   : > { %v2769_v40 = vmul.f32 %v5689_v59, %v2759_v5  ;;  %v2758_v60 = vadd.f32 0.2548296, %v2756_v7 }
 0xf59   : > { %v2771_v61 = vsub.f32 1.0, %v2769_v40  ;;  %v2760_v37 = vmul.f32 %v5687_v52, %v2758_v60 }
 0xf5b   : > { %v2773_v42 = vmul.f32 %v2771_v61, %v2731_v63  ;;  %v2770_v0 = vmul.f32 %v5691_v62, %v2760_v37 }
 0xf5d   : > { %v2772_v45 = vsub.f32 1.0, %v2770_v0  ;;  %v2775_v26 = vadd.f32 1.0, %v2773_v42 }
 0xf5f   : > { %v2774_v49 = vmul.f32 %v2772_v45, %v2732_v14  ;;  %v2777_v10 = vmul.f32 %v2775_v26, %v2725_v13 }
 0xf61   : > { %v2776_v39 = vadd.f32 1.0, %v2774_v49 }
 0xf63   : > { %v2778_v21 = vmul.f32 %v2776_v39, %v2726_v30 }
 0xf65   : > { %v2779_v32 = vpack.c.bf16 %v2778_v21, %v2777_v10 }
 0xf67   : > { %5188 = vmatmul.mubr.bf16.vlgmr.msra.gmra.mxu0 %v2779_v32 }
 0xf68   : > { %5231 = vmatprep.mubr.msk.bf16.mxu0 %vm5763_vm0, %v5762_v1  ;;  %5224 = vmatpush3.bf16.msra.mxu0 %v5524_v47  ;;  %v5525_v47 = vld [vmem:[%s7001_s23 + $0x58] sm:$0xff]  }
 0xf69   : > { %5225 = vmatprep.subr.bf16.mxu0 %v5762_v1 }
 0xf6c   : > { %5226 = vmatpush3.bf16.msra.mxu0 %v5526_v38 }
 0xf6d   : > { %5227 = vmatprep.subr.bf16.mxu0 %v5762_v1 }
 0xf70   : > { %5228 = vmatpush3.bf16.msra.mxu0 %v5528_v11  ;;  %v5527_v11 = vld [vmem:[%s7001_s23 + $0x50] sm:$0xff]  }
 0xf71   : > { %5229 = vmatprep.subr.bf16.mxu0 %v5762_v1 }
0x1027   : > { %v2887_v3 = vpop.f32.mrf.mxu0 }
0x1028   : > { %v2888_v46 = vadd.f32 %v4608_v8, %v2887_v3 }
0x1029   : > { %v5189_v9 = vpop.f32.mrf.mxu0 }
0x102b   : > { %v2890_v36 = vpop.f32.mrf.mxu0 }
0x102c   : > { %v2891_v41 = vadd.f32 %v4608_v8, %v2890_v36 }
0x102d   : > { %v5190_v50 = vpop.f32.mrf.mxu0 }
0x102e   : > { %v2894_v16 = vpack.c.bf16 %v2891_v41, %v2888_v46 }
0x1030   : > { %5200 = vmatmul.mubr.msk.bf16.vlgmr.msra.gmra.mxu1 %vm805_vm1, %v2894_v16 }
0x1031   : > { %5219 = vmatprep.mubr.msk.bf16.mxu1 %vm5763_vm0, %v5762_v1  ;;  %5204 = vmatpush3.bf16.msra.mxu1 %v5516_v17 }
0x1032   : > { %5205 = vmatprep.subr.bf16.mxu1 %v5762_v1 }
0x1035   : > { %5206 = vmatpush3.bf16.msra.mxu1 %v5517_v15 }
0x1036   : > { %5207 = vmatprep.subr.bf16.mxu1 %v5762_v1 }
0x1039   : > { %5208 = vmatpush3.bf16.msra.mxu1 %v5518_v35 }
0x103a   : > { %5209 = vmatprep.subr.bf16.mxu1 %v5762_v1 }
0x103d   : > { %5210 = vmatpush3.bf16.msra.mxu1 %v5519_v34 }
0x103e   : > { %5211 = vmatprep.subr.bf16.mxu1 %v5762_v1 }
0x1041   : > { %5212 = vmatpush3.bf16.msra.mxu1 %v5520_v6 }
0x1042   : > { %5213 = vmatprep.subr.bf16.mxu1 %v5762_v1 }
0x1045   : > { %5214 = vmatpush3.bf16.msra.mxu1 %v5521_v22 }
0x1046   : > { %5215 = vmatprep.subr.bf16.mxu1 %v5762_v1 }
0x1049   : > { %5216 = vmatpush3.bf16.msra.mxu1 %v5522_v44 }
0x104a   : > { %5217 = vmatprep.subr.bf16.mxu1 %v5762_v1 }
0x104d   : > { %5218 = vmatpush3.bf16.msra.mxu1 %v5523_v29 }
0x104e   : > { %5247 = vmatprep.subr.bf16.mxu1 %v5762_v1 }
0x10f0   : > { %v2973_v18 = vpop.f32.mrf.mxu1 }
0x10f1   : > { %v2974_v51 = vadd.f32 %v4626_v48, %v2973_v18  ;;  %v5531_v18 = vld [vmem:[%s7001_s23 + $0x40] sm:$0xff]  }
0x10f2   : > { %v5201_v20 = vpop.f32.mrf.mxu1 }
0x10f3   : > { %v2982_v52 = vmul.f32 0.70710677, %v2974_v51  ;;  %v2980_v34 = vmul.f32 0.5, %v2974_v51  ;;  %v6628_v20 = vld [vmem:[%s7000_s22 + $0x1] ss:$0 sm:$0xff] }
0x10f4   : > { %v2976_v54 = vpop.f32.mrf.mxu1 }
0x10f5   : > { %v2988_v55 = vand.u32 2147483647, %v2982_v52  ;;  %v2977_v24 = vadd.f32 %v4626_v48, %v2976_v54  ;;  %vm2984_vm12 = vcmp.ge.f32.partialorder %v2982_v52, 0.0  ;;  %v5530_v48 = vld [vmem:[%s7001_s23] sm:$0xff]  }
0x10f6   : > { %v5202_v23 = vpop.f32.mrf.mxu1  ;;  %v2986_v46 = vsel %vm2984_vm12, 1.0, %v5765_v33  ;;  %5230 = vmatpush3.bf16.msra.mxu0 %v5530_v48  ;;  %v5573_v48 = vld [vmem:[%s7001_s23 + $0x1d8] sm:$0xff]  }
0x10f7   : > { %v2990_v56 = vmul.f32 0.3275911, %v2988_v55  ;;  %v2983_v25 = vmul.f32 0.70710677, %v2977_v24  ;;  %v3016_v12 = vsub.f32 0.0, %v2988_v55  ;;  %v2981_v6 = vmul.f32 0.5, %v2977_v24  ;;  %5235 = vmatprep.subr.bf16.mxu0 %v5762_v1 }
0x10f8   : > { %v5532_v23 = vld [vmem:[%s7001_s23 + $0x38] sm:$0xff]  }
0x10f9   : > { %v2992_v57 = vadd.f32 1.0, %v2990_v56  ;;  %v2989_v58 = vand.u32 2147483647, %v2983_v25  ;;  %v3018_v28 = vmul.f32 %v3016_v12, %v2988_v55  ;;  %vm2985_vm13 = vcmp.ge.f32.partialorder %v2983_v25, 0.0  ;;  %v5537_v12 = vld [vmem:[%s7001_s23 + $0x88] sm:$0xff]  }
0x10fa   : > { %v2987_v17 = vsel %vm2985_vm13, 1.0, %v5765_v33  ;;  %v5529_v33 = vld [vmem:[%s7001_s23 + $0x48] sm:$0xff]  }
0x10fb   : > { %5692 = vrcp.f32 %v2992_v57  ;;  %v2991_v31 = vmul.f32 0.3275911, %v2989_v58  ;;  %v3017_v19 = vsub.f32 0.0, %v2989_v58  ;;  %v3020_v59 = vmul.f32 1.442695, %v3018_v28  ;;  %v5533_v57 = vld [vmem:[%s7001_s23 + $0x98] sm:$0xff]  }
0x10fc   : > { %v5538_v28 = vld [vmem:[%s7001_s23 + $0x20] sm:$0xff]  }
0x10fd   : > { %v2993_v4 = vadd.f32 1.0, %v2991_v31  ;;  %v3019_v40 = vmul.f32 %v3017_v19, %v2989_v58  ;;  %v5534_v58 = vld [vmem:[%s7001_s23 + $0x30] sm:$0xff]   ;;  %v5539_v19 = vld [vmem:[%s7001_s23 + $0x80] sm:$0xff]  }
0x10fe   : > { %v5535_v31 = vld [vmem:[%s7001_s23 + $0x90] sm:$0xff]  }
0x10ff   : > { %5694 = vrcp.f32 %v2993_v4  ;;  %v3022_v63 = vmul.f32 1.442695, %v3019_v40  ;;  %v5536_v4 = vld [vmem:[%s7001_s23 + $0x28] sm:$0xff]  }
0x1100   : > { %5696 = vpow2.f32 %v3020_v59  ;;  %v5541_v59 = vld [vmem:[%s7001_s23 + $0xd8] sm:$0xff]  }
0x1101   : > { %5698 = vpow2.f32 %v3022_v63  ;;  %v5546_v63 = vld [vmem:[%s7001_s23 + $0x60] sm:$0xff]  }
0x1108   : > { %v5693_v5 = vpop.eup %5692 }
0x1109   : > { %v2998_v7 = vmul.f32 1.0614054, %v5693_v5 }
0x110b   : > { %v3000_v60 = vadd.f32 -1.4531521, %v2998_v7 }
0x110c   : > { %v5695_v61 = vpop.eup %5694 }
0x110d   : > { %v3002_v37 = vmul.f32 %v5693_v5, %v3000_v60  ;;  %v2999_v62 = vmul.f32 1.0614054, %v5695_v61  ;;  %v5697_v2 = vpop.eup %5696  ;;  %v5542_v60 = vld [vmem:[%s7001_s23 + $0x70] sm:$0xff]  }
0x110e   : > { %v5699_v36 = vpop.eup %5698 }
0x110f   : > { %v3004_v42 = vadd.f32 1.4214138, %v3002_v37  ;;  %v3001_v0 = vadd.f32 -1.4531521, %v2999_v62  ;;  %v5544_v37 = vld [vmem:[%s7001_s23 + $0x68] sm:$0xff]  }
0x1110   : > { %v5545_v62 = vld [vmem:[%s7001_s23 + $0xc8] sm:$0xff]  }
0x1111   : > { %v3006_v45 = vmul.f32 %v5693_v5, %v3004_v42  ;;  %v3003_v14 = vmul.f32 %v5695_v61, %v3001_v0  ;;  %v5547_v42 = vld [vmem:[%s7001_s23 + $0xc0] sm:$0xff]   ;;  %v5548_v0 = vld [vmem:[%s7001_s23 + $0xb8] sm:$0xff]  }
0x1113   : > { %v3008_v26 = vadd.f32 -0.28449672, %v3006_v45  ;;  %v3005_v49 = vadd.f32 1.4214138, %v3003_v14  ;;  %v5549_v14 = vld [vmem:[%s7001_s23 + $0x118] sm:$0xff]  }
0x1115   : > { %v3010_v13 = vmul.f32 %v5693_v5, %v3008_v26  ;;  %v3007_v30 = vmul.f32 %v5695_v61, %v3005_v49  ;;  %v5550_v49 = vld [vmem:[%s7001_s23 + $0xb0] sm:$0xff]  }
0x1117   : > { %v3012_v39 = vadd.f32 0.2548296, %v3010_v13  ;;  %v3009_v10 = vadd.f32 -0.28449672, %v3007_v30  ;;  %v5551_v13 = vld [vmem:[%s7001_s23 + $0x110] sm:$0xff]   ;;  %v5552_v30 = vld [vmem:[%s7001_s23 + $0xa8] sm:$0xff]  }
0x1119   : > { %v3014_v21 = vmul.f32 %v5693_v5, %v3012_v39  ;;  %v3011_v32 = vmul.f32 %v5695_v61, %v3009_v10  ;;  %v5540_v5 = vld [vmem:[%s7001_s23 + $0x78] sm:$0xff]   ;;  %v5553_v39 = vld [vmem:[%s7001_s23 + $0x108] sm:$0xff]  }
0x111b   : > { %v3024_v53 = vmul.f32 %v5697_v2, %v3014_v21  ;;  %v3013_v3 = vadd.f32 0.2548296, %v3011_v32  ;;  %v5554_v21 = vld [vmem:[%s7001_s23 + $0xa0] sm:$0xff]  }
0x111c   : > { %v5555_v32 = vld [vmem:[%s7001_s23 + $0x100] sm:$0xff]  }
0x111d   : > { %v3026_v8 = vsub.f32 1.0, %v3024_v53  ;;  %v3015_v9 = vmul.f32 %v5695_v61, %v3013_v3  ;;  %v5543_v61 = vld [vmem:[%s7001_s23 + $0xd0] sm:$0xff]   ;;  %v5557_v3 = vld [vmem:[%s7001_s23 + $0x158] sm:$0xff]  }
0x111f   : > { %v3028_v41 = vmul.f32 %v3026_v8, %v2986_v46  ;;  %v3025_v50 = vmul.f32 %v5699_v36, %v3015_v9  ;;  %v5558_v9 = vld [vmem:[%s7001_s23 + $0xf0] sm:$0xff]   ;;  %v5560_v46 = vld [vmem:[%s7001_s23 + $0xe8] sm:$0xff]  }
0x1120   : > { %v5559_v36 = vld [vmem:[%s7001_s23 + $0x150] sm:$0xff]  }
0x1121   : > { %v3027_v16 = vsub.f32 1.0, %v3025_v50  ;;  %v3030_v15 = vadd.f32 1.0, %v3028_v41  ;;  %v5561_v41 = vld [vmem:[%s7001_s23 + $0x148] sm:$0xff]   ;;  %v5562_v50 = vld [vmem:[%s7001_s23 + $0xe0] sm:$0xff]  }
0x1123   : > { %v3029_v35 = vmul.f32 %v3027_v16, %v2987_v17  ;;  %v3032_v44 = vmul.f32 %v3030_v15, %v2980_v34  ;;  %v5563_v16 = vld [vmem:[%s7001_s23 + $0x140] sm:$0xff]   ;;  %v5564_v17 = vld [vmem:[%s7001_s23 + $0x138] sm:$0xff]  }
0x1125   : > { %v3031_v22 = vadd.f32 1.0, %v3029_v35  ;;  %v5565_v35 = vld [vmem:[%s7001_s23 + $0x198] sm:$0xff]  }
0x1127   : > { %v3033_v29 = vmul.f32 %v3031_v22, %v2981_v6  ;;  %v5566_v6 = vld [vmem:[%s7001_s23 + $0x130] sm:$0xff]  }
0x1128   : > { %v5567_v22 = vld [vmem:[%s7001_s23 + $0x190] sm:$0xff]  }
0x1129   : > { %v3034_v38 = vpack.c.bf16 %v3033_v29, %v3032_v44  ;;  %v5568_v44 = vld [vmem:[%s7001_s23 + $0x128] sm:$0xff]  }
0x112a   : > { %v5569_v29 = vld [vmem:[%s7001_s23 + $0x188] sm:$0xff]  }
0x112b   : > { %5220 = vmatmul.mubr.bf16.vlgmr.msra.gmra.mxu1 %v3034_v38  ;;  %v5571_v38 = vld [vmem:[%s7001_s23 + $0x180] sm:$0xff]  }
0x112c   : > { %5248 = vmatpush3.bf16.msra.mxu1 %v5525_v47  ;;  %5255 = vmatprep.mubr.msk.bf16.mxu1 %vm5763_vm0, %v5762_v1  ;;  %v5570_v47 = vld [vmem:[%s7001_s23 + $0x120] sm:$0xff]  }
0x112d   : > { %5249 = vmatprep.subr.bf16.mxu1 %v5762_v1 }
0x1130   : > { %5250 = vmatpush3.bf16.msra.mxu1 %v5527_v11  ;;  %v5572_v11 = vld [vmem:[%s7001_s23 + $0x178] sm:$0xff]  }
0x1131   : > { %5251 = vmatprep.subr.bf16.mxu1 %v5762_v1 }
0x1134   : > { %5252 = vmatpush3.bf16.msra.mxu1 %v5529_v33 }
0x1135   : > { %5253 = vmatprep.subr.bf16.mxu1 %v5762_v1 }
0x1138   : > { %5254 = vmatpush3.bf16.msra.mxu1 %v5531_v18 }
0x1139   : > { %5271 = vmatprep.subr.bf16.mxu1 %v5762_v1 }
0x11eb   : > { %v3134_v51 = vpop.f32.mrf.mxu1 }
0x11ec   : > { %v3141_v52 = vadd.f32 %v3134_v51, %v6451_v27  ;;  %v5574_v51 = vld [vmem:[%s7001_s23 + $0x170] sm:$0xff]  }
0x11ed   : > { %v5221_v54 = vpop.f32.mrf.mxu1 }
0x11ee   : > { %v3151_v55 = vadd.f32 %v6628_v20, %v3141_v52  ;;  %v5576_v52 = vld [vmem:[%s7001_s23 + $0x168] sm:$0xff]  }
0x11ef   : > { %v6632_v24 = vpop.f32.mrf.mxu1  ;;  %v5577_v54 = vld [vmem:[%s7001_s23 + $0x1c8] sm:$0xff]  }
0x11f0   : > { %v6637_v56 = vpack.c.bf16 %v3151_v55, %v3151_v55  ;;  %v3142_v10 = vadd.f32 %v6632_v24, %v6456_v43  ;;  %v5556_v43 = vld [vmem:[%s7001_s23 + $0xf8] sm:$0xff]   ;;  %v5578_v55 = vld [vmem:[%s7001_s23 + $0x160] sm:$0xff]  }
0x11f1   : > { %v5222_v25 = vpop.f32.mrf.mxu1  ;;  %v5579_v24 = vld [vmem:[%s7001_s23 + $0x1c0] sm:$0xff]  }
0x11f2   : > { %5232 = vmatmul.mubr.msk.bf16.vlgmr.msra.gmra.mxu0 %vm805_vm1, %v6637_v56  ;;  %v3320_v27 = vrot.slane %v6637_v56, 1  ;;  %v6678_v7 = vshrl.u32 %v6637_v56, 16  ;;  %v3476_v40 = vrot.slane %v6637_v56, 2  ;;  %v3632_v26 = vrot.slane %v6637_v56, 3 }
0x11f3   : > { %5236 = vmatpush3.bf16.msra.mxu0 %v5532_v23  ;;  %5243 = vmatprep.mubr.msk.bf16.mxu0 %vm5763_vm0, %v5762_v1  ;;  %v3152_v2 = vadd.f32 %v6628_v20, %v3142_v10  ;;  %v5575_v20 = vld [vmem:[%s7001_s23 + $0x1d0] sm:$0xff]   ;;  %v5580_v23 = vld [vmem:[%s7001_s23 + $0x1b8] sm:$0xff]  }
0x11f4   : > { %5256 = vmatmul.mubr.msk.bf16.vlgmr.msra.gmra.mxu1 %vm805_vm1, %v3320_v27  ;;  %5237 = vmatprep.subr.bf16.mxu0 %v5762_v1  ;;  %v3398_v45 = vrot.slane %v6678_v7, 1  ;;  %v3554_v53 = vrot.slane %v6678_v7, 2  ;;  %v3710_v15 = vrot.slane %v6678_v7, 3  ;;  %v5582_v27 = vld [vmem:[%s7001_s23 + $0x1a8] sm:$0xff]  }
0x11f5   : > { %5272 = vmatpush3.bf16.msra.mxu1 %v5533_v57  ;;  %5279 = vmatprep.mubr.msk.bf16.mxu1 %vm5763_vm0, %v5762_v1  ;;  %v6768_v8 = vpack.c.bf16 %v3152_v2, %v3152_v2  ;;  %v5581_v57 = vld [vmem:[%s7001_s23 + $0x1b0] sm:$0xff]  }
0x11f6   : > { %5273 = vmatprep.subr.bf16.mxu1 %v5762_v1 }
0x11f7   : > { %5238 = vmatpush3.bf16.msra.mxu0 %v5534_v58  ;;  %v3946_v34 = vrot.slane %v6768_v8, 1  ;;  %v6846_v33 = vshrl.u32 %v6768_v8, 16  ;;  %v4102_v18 = vrot.slane %v6768_v8, 2  ;;  %v4258_v25 = vrot.slane %v6768_v8, 3  ;;  %v5583_v58 = vld [vmem:[%s7001_s23 + $0x1a0] sm:$0xff]  }
0x11f8   : > { %5239 = vmatprep.subr.bf16.mxu0 %v5762_v1 }
0x11f9   : > { %5274 = vmatpush3.bf16.msra.mxu1 %v5535_v31  ;;  %v4024_v56 = vrot.slane %v6846_v33, 1  ;;  %v5584_v31 = vld [vmem:[%s7001_s23 + $0x1f8] sm:$0xff]  }
0x11fa   : > { %5275 = vmatprep.subr.bf16.mxu1 %v5762_v1 }
0x11fb   : > { %5240 = vmatpush3.bf16.msra.mxu0 %v5536_v4  ;;  %v4180_v4 = vrot.slane %v6846_v33, 2 }
0x11fc   : > { %5241 = vmatprep.subr.bf16.mxu0 %v5762_v1 }
0x11fd   : > { %5276 = vmatpush3.bf16.msra.mxu1 %v5537_v12  ;;  %v5585_v12 = vld [vmem:[%s7001_s23 + $0x1f0] sm:$0xff]  }
0x11fe   : > { %5277 = vmatprep.subr.bf16.mxu1 %v5762_v1 }
0x11ff   : > { %5242 = vmatpush3.bf16.msra.mxu0 %v5538_v28  ;;  %v5586_v28 = vld [vmem:[%s7001_s23 + $0x1e8] sm:$0xff]  }
0x1200   : > { %5259 = vmatprep.subr.bf16.mxu0 %v5762_v1 }
0x1201   : > { %5278 = vmatpush3.bf16.msra.mxu1 %v5539_v19  ;;  %v5587_v19 = vld [vmem:[%s7001_s23 + $0x1e0] sm:$0xff]  }
0x1202   : > { %5244 = vmatmul.mubr.msk.bf16.vlgmr.msra.gmra.mxu0 %vm805_vm1, %v6678_v7  ;;  %5295 = vmatprep.subr.bf16.mxu1 %v5762_v1 }
0x1203   : > { %5260 = vmatpush3.bf16.msra.mxu0 %v5540_v5  ;;  %5267 = vmatprep.mubr.msk.bf16.mxu0 %vm5763_vm0, %v5762_v1  ;;  %v4336_v5 = vrot.slane %v6846_v33, 3 }
0x1204   : > { %5280 = vmatmul.mubr.msk.bf16.vlgmr.msra.gmra.mxu1 %vm805_vm1, %v3476_v40  ;;  %5261 = vmatprep.subr.bf16.mxu0 %v5762_v1 }
0x1205   : > { %5296 = vmatpush3.bf16.msra.mxu1 %v5541_v59  ;;  %5303 = vmatprep.mubr.msk.bf16.mxu1 %vm5763_vm0, %v5762_v1 }
0x1206   : > { %5297 = vmatprep.subr.bf16.mxu1 %v5762_v1 }
0x1207   : > { %5262 = vmatpush3.bf16.msra.mxu0 %v5542_v60 }
0x1208   : > { %5263 = vmatprep.subr.bf16.mxu0 %v5762_v1 }
0x1209   : > { %5298 = vmatpush3.bf16.msra.mxu1 %v5543_v61 }
0x120a   : > { %5299 = vmatprep.subr.bf16.mxu1 %v5762_v1 }
0x120b   : > { %5264 = vmatpush3.bf16.msra.mxu0 %v5544_v37 }
0x120c   : > { %5265 = vmatprep.subr.bf16.mxu0 %v5762_v1 }
0x120d   : > { %5300 = vmatpush3.bf16.msra.mxu1 %v5545_v62 }
0x120e   : > { %5301 = vmatprep.subr.bf16.mxu1 %v5762_v1 }
0x120f   : > { %5266 = vmatpush3.bf16.msra.mxu0 %v5546_v63 }
0x1210   : > { %5283 = vmatprep.subr.bf16.mxu0 %v5762_v1 }
0x1211   : > { %5302 = vmatpush3.bf16.msra.mxu1 %v5547_v42  ;;  %v3153_v42 = vld [vmem:[%s7064_s6] sm:$0x1]  ;;  %s7068_s6 = sld [smem:[#allocation25_spill]] }
0x1212   : > { %5268 = vmatmul.mubr.msk.bf16.vlgmr.msra.gmra.mxu0 %vm805_vm1, %v3398_v45  ;;  %5319 = vmatprep.subr.bf16.mxu1 %v5762_v1 }
0x1213   : > { %5284 = vmatpush3.bf16.msra.mxu0 %v5548_v0  ;;  %5291 = vmatprep.mubr.msk.bf16.mxu0 %vm5763_vm0, %v5762_v1 }
0x1214   : > { %5304 = vmatmul.mubr.msk.bf16.vlgmr.msra.gmra.mxu1 %vm805_vm1, %v3632_v26  ;;  %5285 = vmatprep.subr.bf16.mxu0 %v5762_v1 }
0x1215   : > { %5320 = vmatpush3.bf16.msra.mxu1 %v5549_v14  ;;  %5327 = vmatprep.mubr.msk.bf16.mxu1 %vm5763_vm0, %v5762_v1 }
0x1216   : > { %5321 = vmatprep.subr.bf16.mxu1 %v5762_v1 }
0x1217   : > { %5286 = vmatpush3.bf16.msra.mxu0 %v5550_v49  ;;  %s7069_s0 = smov %s7068_s6  ;;  %s6937_s1 = scalar_lea.hbm %s7068_s6, %s4858_s4 }
0x1218   : > { %5287 = vmatprep.subr.bf16.mxu0 %v5762_v1 }
0x1219   : > { %5322 = vmatpush3.bf16.msra.mxu1 %v5551_v13 }
0x121a   : > { %5323 = vmatprep.subr.bf16.mxu1 %v5762_v1 }
0x121b   : > { %5288 = vmatpush3.bf16.msra.mxu0 %v5552_v30 }
0x121c   : > { %5289 = vmatprep.subr.bf16.mxu0 %v5762_v1 }
0x121d   : > { %5324 = vmatpush3.bf16.msra.mxu1 %v5553_v39 }
0x121e   : > { %5325 = vmatprep.subr.bf16.mxu1 %v5762_v1 }
0x121f   : > { %5290 = vmatpush3.bf16.msra.mxu0 %v5554_v21 }
0x1220   : > { %5307 = vmatprep.subr.bf16.mxu0 %v5762_v1 }
0x1221   : > { %5326 = vmatpush3.bf16.msra.mxu1 %v5555_v32 }
0x1222   : > { %5292 = vmatmul.mubr.msk.bf16.vlgmr.msra.gmra.mxu0 %vm805_vm1, %v3554_v53  ;;  %5343 = vmatprep.subr.bf16.mxu1 %v5762_v1 }
0x1223   : > { %5308 = vmatpush3.bf16.msra.mxu0 %v5556_v43  ;;  %5315 = vmatprep.mubr.msk.bf16.mxu0 %vm5763_vm0, %v5762_v1 }
0x1224   : > { %5328 = vmatmul.mubr.msk.bf16.vlgmr.msra.gmra.mxu1 %vm805_vm1, %v6768_v8  ;;  %5309 = vmatprep.subr.bf16.mxu0 %v5762_v1 }
0x1225   : > { %5344 = vmatpush3.bf16.msra.mxu1 %v5557_v3  ;;  %5351 = vmatprep.mubr.msk.bf16.mxu1 %vm5763_vm0, %v5762_v1 }
0x1226   : > { %5345 = vmatprep.subr.bf16.mxu1 %v5762_v1 }
0x1227   : > { %5310 = vmatpush3.bf16.msra.mxu0 %v5558_v9 }
0x1228   : > { %5311 = vmatprep.subr.bf16.mxu0 %v5762_v1 }
0x1229   : > { %5346 = vmatpush3.bf16.msra.mxu1 %v5559_v36 }
0x122a   : > { %5347 = vmatprep.subr.bf16.mxu1 %v5762_v1 }
0x122b   : > { %5312 = vmatpush3.bf16.msra.mxu0 %v5560_v46 }
0x122c   : > { %5313 = vmatprep.subr.bf16.mxu0 %v5762_v1 }
0x122d   : > { %5348 = vmatpush3.bf16.msra.mxu1 %v5561_v41 }
0x122e   : > { %5349 = vmatprep.subr.bf16.mxu1 %v5762_v1 }
0x122f   : > { %5314 = vmatpush3.bf16.msra.mxu0 %v5562_v50 }
0x1230   : > { %5331 = vmatprep.subr.bf16.mxu0 %v5762_v1 }
0x1231   : > { %5350 = vmatpush3.bf16.msra.mxu1 %v5563_v16 }
0x1232   : > { %5316 = vmatmul.mubr.msk.bf16.vlgmr.msra.gmra.mxu0 %vm805_vm1, %v3710_v15  ;;  %5367 = vmatprep.subr.bf16.mxu1 %v5762_v1 }
0x1233   : > { %5332 = vmatpush3.bf16.msra.mxu0 %v5564_v17  ;;  %5339 = vmatprep.mubr.msk.bf16.mxu0 %vm5763_vm0, %v5762_v1 }
0x1234   : > { %5352 = vmatmul.mubr.msk.bf16.vlgmr.msra.gmra.mxu1 %vm805_vm1, %v3946_v34  ;;  %5333 = vmatprep.subr.bf16.mxu0 %v5762_v1 }
0x1235   : > { %5368 = vmatpush3.bf16.msra.mxu1 %v5565_v35  ;;  %5375 = vmatprep.mubr.msk.bf16.mxu1 %vm5763_vm0, %v5762_v1 }
0x1236   : > { %5369 = vmatprep.subr.bf16.mxu1 %v5762_v1 }
0x1237   : > { %5334 = vmatpush3.bf16.msra.mxu0 %v5566_v6 }
0x1238   : > { %5335 = vmatprep.subr.bf16.mxu0 %v5762_v1 }
0x1239   : > { %5370 = vmatpush3.bf16.msra.mxu1 %v5567_v22 }
0x123a   : > { %5371 = vmatprep.subr.bf16.mxu1 %v5762_v1 }
0x123b   : > { %5336 = vmatpush3.bf16.msra.mxu0 %v5568_v44 }
0x123c   : > { %5337 = vmatprep.subr.bf16.mxu0 %v5762_v1 }
0x123d   : > { %5372 = vmatpush3.bf16.msra.mxu1 %v5569_v29 }
0x123e   : > { %5373 = vmatprep.subr.bf16.mxu1 %v5762_v1 }
0x123f   : > { %5338 = vmatpush3.bf16.msra.mxu0 %v5570_v47 }
0x1240   : > { %5355 = vmatprep.subr.bf16.mxu0 %v5762_v1 }
0x1241   : > { %5374 = vmatpush3.bf16.msra.mxu1 %v5571_v38 }
0x1242   : > { %5340 = vmatmul.mubr.msk.bf16.vlgmr.msra.gmra.mxu0 %vm805_vm1, %v6846_v33  ;;  %5391 = vmatprep.subr.bf16.mxu1 %v5762_v1 }
0x1243   : > { %5356 = vmatpush3.bf16.msra.mxu0 %v5572_v11  ;;  %5363 = vmatprep.mubr.msk.bf16.mxu0 %vm5763_vm0, %v5762_v1 }
0x1244   : > { %5376 = vmatmul.mubr.msk.bf16.vlgmr.msra.gmra.mxu1 %vm805_vm1, %v4102_v18  ;;  %5357 = vmatprep.subr.bf16.mxu0 %v5762_v1 }
0x1245   : > { %5392 = vmatpush3.bf16.msra.mxu1 %v5573_v48  ;;  %5399 = vmatprep.mubr.msk.bf16.mxu1 %vm5763_vm0, %v5762_v1 }
0x1246   : > { %5393 = vmatprep.subr.bf16.mxu1 %v5762_v1 }
0x1247   : > { %5358 = vmatpush3.bf16.msra.mxu0 %v5574_v51 }
0x1248   : > { %5359 = vmatprep.subr.bf16.mxu0 %v5762_v1 }
0x1249   : > { %5394 = vmatpush3.bf16.msra.mxu1 %v5575_v20 }
0x124a   : > { %5395 = vmatprep.subr.bf16.mxu1 %v5762_v1 }
0x124b   : > { %5360 = vmatpush3.bf16.msra.mxu0 %v5576_v52 }
0x124c   : > { %5361 = vmatprep.subr.bf16.mxu0 %v5762_v1 }
0x124d   : > { %5396 = vmatpush3.bf16.msra.mxu1 %v5577_v54 }
0x124e   : > { %5397 = vmatprep.subr.bf16.mxu1 %v5762_v1 }
0x124f   : > { %5362 = vmatpush3.bf16.msra.mxu0 %v5578_v55 }
0x1250   : > { %5379 = vmatprep.subr.bf16.mxu0 %v5762_v1 }
0x1251   : > { %5398 = vmatpush3.bf16.msra.mxu1 %v5579_v24 }
0x1252   : > { %5364 = vmatmul.mubr.msk.bf16.vlgmr.msra.gmra.mxu0 %vm805_vm1, %v4024_v56 }
0x1253   : > { %5380 = vmatpush3.bf16.msra.mxu0 %v5580_v23  ;;  %5387 = vmatprep.mubr.msk.bf16.mxu0 %vm5763_vm0, %v5762_v1 }
0x1254   : > { %5400 = vmatmul.mubr.msk.bf16.vlgmr.msra.gmra.mxu1 %vm805_vm1, %v4258_v25  ;;  %5381 = vmatprep.subr.bf16.mxu0 %v5762_v1 }
0x1257   : > { %5382 = vmatpush3.bf16.msra.mxu0 %v5581_v57 }
0x1258   : > { %5383 = vmatprep.subr.bf16.mxu0 %v5762_v1 }
0x125b   : > { %5384 = vmatpush3.bf16.msra.mxu0 %v5582_v27 }
0x125c   : > { %5385 = vmatprep.subr.bf16.mxu0 %v5762_v1 }
0x125f   : > { %5386 = vmatpush3.bf16.msra.mxu0 %v5583_v58 }
0x1260   : > { %5403 = vmatprep.subr.bf16.mxu0 %v5762_v1 }
0x1262   : > { %5388 = vmatmul.mubr.msk.bf16.vlgmr.msra.gmra.mxu0 %vm805_vm1, %v4180_v4 }
0x1263   : > { %5404 = vmatpush3.bf16.msra.mxu0 %v5584_v31  ;;  %5411 = vmatprep.mubr.msk.bf16.mxu0 %vm5763_vm0, %v5762_v1 }
0x1264   : > { %5405 = vmatprep.subr.bf16.mxu0 %v5762_v1 }
0x1267   : > { %5406 = vmatpush3.bf16.msra.mxu0 %v5585_v12 }
0x1268   : > { %5407 = vmatprep.subr.bf16.mxu0 %v5762_v1 }
0x126b   : > { %5408 = vmatpush3.bf16.msra.mxu0 %v5586_v28 }
0x126c   : > { %5409 = vmatprep.subr.bf16.mxu0 %v5762_v1 }
0x126f   : > { %5410 = vmatpush3.bf16.msra.mxu0 %v5587_v19 }
0x1272   : > { %5412 = vmatmul.mubr.msk.bf16.vlgmr.msra.gmra.mxu0 %vm805_vm1, %v4336_v5 }
0x12b2   : > { %v3224_v7 = vpop.f32.mrf.mxu0 }
0x12b3   : > { %v3230_v0 = vadd.f32 %v3224_v7, %v3153_v42 }
0x12b4   : > { %v5233_v59 = vpop.f32.mrf.mxu0  ;;  %v3382_v40 = vpop.f32.mrf.mxu1 }
0x12b6   : > { %v3227_v60 = vpop.f32.mrf.mxu0  ;;  %v5257_v61 = vpop.f32.mrf.mxu1 }
0x12b8   : > { %v5234_v37 = vpop.f32.mrf.mxu0  ;;  %v3385_v62 = vpop.f32.mrf.mxu1 }
0x12ba   : > { %v5258_v63 = vpop.f32.mrf.mxu1 }
0x12c2   : > { %v3303_v45 = vpop.f32.mrf.mxu0 }
0x12c3   : > { %v3309_v1 = vadd.f32 %v3303_v45, %v3230_v0 }
0x12c4   : > { %v5245_v14 = vpop.f32.mrf.mxu0  ;;  %v3538_v26 = vpop.f32.mrf.mxu1 }
0x12c5   : > { %v3388_v49 = vadd.f32 %v3382_v40, %v3309_v1 }
0x12c6   : > { %v3306_v13 = vpop.f32.mrf.mxu0  ;;  %v5281_v30 = vpop.f32.mrf.mxu1 }
0x12c8   : > { %v5246_v39 = vpop.f32.mrf.mxu0  ;;  %v3541_v10 = vpop.f32.mrf.mxu1 }
0x12ca   : > { %v5282_v21 = vpop.f32.mrf.mxu1 }
0x12d2   : > { %v3460_v32 = vpop.f32.mrf.mxu0 }
0x12d3   : > { %v3466_v2 = vadd.f32 %v3460_v32, %v3388_v49 }
0x12d4   : > { %v5269_v43 = vpop.f32.mrf.mxu0  ;;  %v3694_v53 = vpop.f32.mrf.mxu1 }
0x12d5   : > { %v3544_v3 = vadd.f32 %v3538_v26, %v3466_v2 }
0x12d6   : > { %v3463_v8 = vpop.f32.mrf.mxu0  ;;  %v5305_v9 = vpop.f32.mrf.mxu1 }
0x12d8   : > { %v5270_v36 = vpop.f32.mrf.mxu0  ;;  %v3697_v46 = vpop.f32.mrf.mxu1 }
0x12da   : > { %v5306_v41 = vpop.f32.mrf.mxu1 }
0x12e2   : > { %v3616_v50 = vpop.f32.mrf.mxu0 }
0x12e3   : > { %v3622_v16 = vadd.f32 %v3616_v50, %v3544_v3 }
0x12e4   : > { %v5293_v17 = vpop.f32.mrf.mxu0  ;;  %v3850_v15 = vpop.f32.mrf.mxu1 }
0x12e5   : > { %v3700_v35 = vadd.f32 %v3694_v53, %v3622_v16 }
0x12e6   : > { %v3619_v34 = vpop.f32.mrf.mxu0  ;;  %v5329_v6 = vpop.f32.mrf.mxu1 }
0x12e8   : > { %v5294_v22 = vpop.f32.mrf.mxu0  ;;  %v3853_v44 = vpop.f32.mrf.mxu1 }
0x12ea   : > { %v5330_v29 = vpop.f32.mrf.mxu1 }
0x12f2   : > { %v3772_v47 = vpop.f32.mrf.mxu0 }
0x12f3   : > { %v3778_v38 = vadd.f32 %v3772_v47, %v3700_v35 }
0x12f4   : > { %v5317_v11 = vpop.f32.mrf.mxu0  ;;  %v4008_v33 = vpop.f32.mrf.mxu1 }
0x12f5   : > { %v3856_v48 = vadd.f32 %v3850_v15, %v3778_v38 }
0x12f6   : > { %v3775_v18 = vpop.f32.mrf.mxu0  ;;  %v5353_v51 = vpop.f32.mrf.mxu1 }
0x12f8   : > { %v5318_v20 = vpop.f32.mrf.mxu0  ;;  %v4011_v52 = vpop.f32.mrf.mxu1 }
0x12fa   : > { %v5354_v54 = vpop.f32.mrf.mxu1 }
0x1302   : > { %v3929_v55 = vpop.f32.mrf.mxu0 }
0x1303   : > { %v3935_v40 = vadd.f32 %v3929_v55, %v3856_v48 }
0x1304   : > { %v5341_v24 = vpop.f32.mrf.mxu0  ;;  %v4164_v23 = vpop.f32.mrf.mxu1 }
0x1305   : > { %v4014_v37 = vadd.f32 %v4008_v33, %v3935_v40 }
0x1306   : > { %v3932_v56 = vpop.f32.mrf.mxu0  ;;  %v5377_v25 = vpop.f32.mrf.mxu1 }
0x1308   : > { %v5342_v57 = vpop.f32.mrf.mxu0  ;;  %v4167_v27 = vpop.f32.mrf.mxu1 }
0x130a   : > { %v5378_v58 = vpop.f32.mrf.mxu1 }
0x1312   : > { %v4086_v31 = vpop.f32.mrf.mxu0 }
0x1313   : > { %v4092_v63 = vadd.f32 %v4086_v31, %v4014_v37 }
0x1314   : > { %v5365_v4 = vpop.f32.mrf.mxu0  ;;  %v4320_v12 = vpop.f32.mrf.mxu1 }
0x1315   : > { %v4170_v0 = vadd.f32 %v4164_v23, %v4092_v63 }
0x1316   : > { %v4089_v28 = vpop.f32.mrf.mxu0  ;;  %v5401_v19 = vpop.f32.mrf.mxu1 }
0x1318   : > { %v5366_v5 = vpop.f32.mrf.mxu0  ;;  %v4323_v7 = vpop.f32.mrf.mxu1 }
0x131a   : > { %v5402_v59 = vpop.f32.mrf.mxu1 }
0x1322   : > { %v4242_v60 = vpop.f32.mrf.mxu0 }
0x1323   : > { %v4248_v45 = vadd.f32 %v4242_v60, %v4170_v0 }
0x1324   : > { %v5389_v61 = vpop.f32.mrf.mxu0 }
0x1325   : > { %v4326_v1 = vadd.f32 %v4320_v12, %v4248_v45 }
0x1326   : > { %v4245_v62 = vpop.f32.mrf.mxu0 }
0x1328   : > { %v5390_v42 = vpop.f32.mrf.mxu0 }
0x1332   : > { %v4398_v14 = vpop.f32.mrf.mxu0 }
0x1333   : > { %v4404_v26 = vadd.f32 %v4398_v14, %v4326_v1 }
0x1334   : > { %v5413_v49 = vpop.f32.mrf.mxu0 }
0x1335   : > { %4405 = vst [vmem:[%s756_s5] sm:$0x1] %v4404_v26 }
0x1336   : > { %v4401_v13 = vpop.f32.mrf.mxu0 }
0x1337   : > { %5713 = shalt.err (!%p5710_p3)
}
0x1338   : > { %s5714_s4 = scalar_lea.hbm %s6937_s1, 16  ;;  %s5718_s3 = scalar_lea.hbm %s7069_s0, 32 }
0x1339   : > { %p5715_p4 = scmp.ne.s32.totalorder %s6937_s1, %s5714_s4  ;;  %p5719_p9 = scmp.lt.s32.totalorder %s6937_s1, %s7069_s0 }
0x133a   : > { %p5720_p10 = scmp.lt.s32.totalorder %s5718_s3, %s5714_s4 }
0x133b   : > { %p5716_p7 = pnand %p5715_p4, %p5935_p5 }
0x133c   : > { %p5721_p11 = por %p5720_p10, %p5719_p9 }
0x133d   : > { %p5717_p8 = pneg %p5716_p7 }
0x133f   : > { %p5722_p12 = pnand %p5721_p11, %p5717_p8 }
0x1341   : > { %5725 = shalt.err (!%p5722_p12)
}
0x1342   : > { %5415 = dma.vmem_to_hbm [thread:$0]  (%p5935_p5), %s6939_s30, 16, %s6937_s1, %s4407_s25   ;;  %v5414_v30 = vpop.f32.mrf.mxu0 }
0x1343 PF: > { %s7070_s8 = sld [smem:[#allocation8_spill]] }
0x1344   : > { %s7071_s27 = sld [smem:[#allocation5_spill]] }
0x1349   : > { %p5421_p13 = scmp.ge.s32.totalorder %s7070_s8, 2 }
0x134a   : > { %s4431_s29 = sand.u32 1, %s7071_s27  }
0x134b   : > { %p5418_p0 = pnand %p5421_p13, %p5939_p6  ;;  %s4432_s5 = scalar_lea.sflag [#allocation3], %s4431_s29 }
0x134d   : > { %p5419_p1 = pneg %p5418_p0 }
0x134f   : > { %5743 = dma.done.wait (%p5419_p1), %s4432_s5, 16  }
0x1350   : > { %5745 = vsyncadd (%p5419_p1), %s4432_s5, 4294967280  ;;  %s7073_s30 = sld [smem:[#allocation10_spill]] }
0x1351   : > { %s7074_s29 = sld [smem:[#allocation6_spill]] }
0x1352   : > { %s7075_s2 = sld [smem:[#allocation7_spill]] }
0x1353   : > { %s7076_s6 = sld [smem:[#allocation11_spill]] }
0x1356   : > { %p35_p2 = scmp.ge.s32.totalorder %s7073_s30, 4  }
0x1358   :  { %37 = sbr.rel (!%p35_p2) target bundleno = 16 (0x10), region = 190 }
0x135d   :  { %4436 = vsyncpa [#allocation3], 1 }
0x135e   :  { %4438 = vsyncpa [#allocation3 + $0x1], 1 }

</bundles_post_ra>
